<compile_context>
chip_gen: v7x
topology: tpu7x:2x2x1
jax: 0.10.0
libtpu: 0.0.40
codegen_flags: <defaults>
</compile_context>

<pallas_src>
import math

import jax
import jax.numpy as jnp
from jax import lax
from jax.experimental import pallas as pl
from jax.experimental.pallas import tpu as pltpu

D_MODEL = 32
N_HEADS = 4
D_HEAD = D_MODEL // N_HEADS
D_FF = 64
EPS = 1e-5

# Row indices of the packed per-encoder (8, D_MODEL) vector slab.
_BO, _B2, _G1, _T1, _G2, _T2, _GF, _TF = range(8)


def _layer_norm(x, gamma, beta):
    mu = jnp.mean(x, axis=-1, keepdims=True)
    var = jnp.mean((x - mu) ** 2, axis=-1, keepdims=True)
    return (x - mu) * lax.rsqrt(var + EPS) * gamma + beta


def _make_stack_kernel(B, L, inp_lens):
    lens = [L // (2 ** i) for i in inp_lens]

    def kernel(x_ref, wqkv_ref, bqkv_ref, wo_ref, w1_ref, b1_ref, w2_ref,
               vec_ref, o_ref):
        off = 0
        for e, Lh in enumerate(lens):                  # static: num encoders
            wqkv = wqkv_ref[e]                         # (D, 3D)  (Wq pre-scaled)
            bqkv = bqkv_ref[e]                         # (1, 3D)
            wo = wo_ref[e]                             # (D, D)
            w1 = w1_ref[e]                             # (D, D_FF)
            b1 = b1_ref[e]                             # (1, D_FF)
            w2 = w2_ref[e]                             # (D_FF, D)
            vecs = vec_ref[e]                          # (8, D)
            bo, b2 = vecs[_BO:_BO + 1], vecs[_B2:_B2 + 1]
            g1, t1 = vecs[_G1:_G1 + 1], vecs[_T1:_T1 + 1]
            g2, t2 = vecs[_G2:_G2 + 1], vecs[_T2:_T2 + 1]
            gf, tf = vecs[_GF:_GF + 1], vecs[_TF:_TF + 1]

            for b in range(B):                         # static: batch, unrolled
                xb = x_ref[b, L - Lh:L, :]             # (Lh, D) last Lh steps

                # Fused Q/K/V projection: one (Lh, D) @ (D, 3D) matmul.
                qkv = jnp.dot(xb, wqkv,
                              preferred_element_type=jnp.float32) + bqkv

                # Scaled-dot-product attention core (per-head view only here).
                heads = []
                for h in range(N_HEADS):               # static
                    q = qkv[:, h * D_HEAD:(h + 1) * D_HEAD]
                    k = qkv[:, D_MODEL + h * D_HEAD:D_MODEL + (h + 1) * D_HEAD]
                    v = qkv[:, 2 * D_MODEL + h * D_HEAD:
                            2 * D_MODEL + (h + 1) * D_HEAD]
                    s = lax.dot_general(q, k, (((1,), (1,)), ((), ())),
                                        preferred_element_type=jnp.float32)
                    s = s - jnp.max(s, axis=-1, keepdims=True)
                    p = jnp.exp(s)
                    denom = jnp.sum(p, axis=-1, keepdims=True)
                    a = p * pl.reciprocal(denom, approx=True)
                    heads.append(jnp.dot(a, v,
                                         preferred_element_type=jnp.float32))

                # Single output projection on the concatenated head outputs.
                attn = jnp.concatenate(heads, axis=-1)                 # (Lh, D)
                attn = jnp.dot(attn, wo,
                               preferred_element_type=jnp.float32) + bo

                # x = norm1(x + attention(x))
                x1 = _layer_norm(xb + attn, g1, t1)

                # Position-wise FFN: Conv1d(k=1) -> relu -> Conv1d(k=1)
                # (dropout is identity in eval).
                y = jnp.dot(x1, w1, preferred_element_type=jnp.float32) + b1
                y = jnp.maximum(y, 0.0)
                y = jnp.dot(y, w2, preferred_element_type=jnp.float32) + b2

                # norm2(x + y), then the Encoder's final LayerNorm; write at the
                # concat offset of this encoder.
                x2 = _layer_norm(x1 + y, g2, t2)
                o_ref[b, off:off + Lh, :] = _layer_norm(x2, gf, tf)
            off += Lh

    return kernel


def make_encoder_params(key):
    """Deterministic synthetic parameters for one encoder (natural shapes)."""
    ks = jax.random.split(key, 6)
    w = lambda k, shape: 0.1 * jax.random.normal(k, shape, dtype=jnp.float32)
    zeros = lambda n: jnp.zeros((n,), jnp.float32)
    ones = lambda n: jnp.ones((n,), jnp.float32)
    return dict(
        wq=w(ks[0], (D_MODEL, D_MODEL)), bq=zeros(D_MODEL),
        wk=w(ks[1], (D_MODEL, D_MODEL)), bk=zeros(D_MODEL),
        wv=w(ks[2], (D_MODEL, D_MODEL)), bv=zeros(D_MODEL),
        wo=w(ks[3], (D_MODEL, D_MODEL)), bo=zeros(D_MODEL),
        w1=w(ks[4], (D_MODEL, D_FF)), b1=zeros(D_FF),
        w2=w(ks[5], (D_FF, D_MODEL)), b2=zeros(D_MODEL),
        g1=ones(D_MODEL), t1=zeros(D_MODEL),
        g2=ones(D_MODEL), t2=zeros(D_MODEL),
        gf=ones(D_MODEL), tf=zeros(D_MODEL),
    )


def pack_stack_params(params_list):
    """Pack per-encoder params into 7 slabs (leading dim = #encoders).

    The 1/sqrt(d_head) attention scale is folded into Wq / bq here.
    NOTE: real PyTorch Conv1d(k=1) weights [out, in, 1] must be squeezed and
    transposed to (in, out) before being placed in w1/w2.
    """
    scale = 1.0 / math.sqrt(D_HEAD)
    wqkv, bqkv, wo, w1, b1, w2, vecs = [], [], [], [], [], [], []
    for p in params_list:
        wqkv.append(jnp.concatenate([p["wq"] * scale, p["wk"], p["wv"]], axis=1))
        bqkv.append(jnp.concatenate([p["bq"] * scale, p["bk"], p["bv"]])[None, :])
        wo.append(p["wo"])
        w1.append(p["w1"])
        b1.append(p["b1"][None, :])
        w2.append(p["w2"])
        vecs.append(jnp.stack([p["bo"], p["b2"], p["g1"], p["t1"],
                               p["g2"], p["t2"], p["gf"], p["tf"]]))
    st = jnp.stack
    return (st(wqkv), st(bqkv), st(wo), st(w1), st(b1), st(w2), st(vecs))


def encoder_stack_forward(x, params_list, inp_lens):
    """Mirrors EncoderStack.forward; returns (concat of encoder outputs, attns)."""
    B, L, D = x.shape
    assert D == D_MODEL
    lens = [L // (2 ** i) for i in inp_lens]
    L_total = sum(lens)

    packed = pack_stack_params(params_list)
    kernel = _make_stack_kernel(B, L, inp_lens)
    inputs = (x,) + packed

    def full_spec(arr):
        n = arr.ndim
        return pl.BlockSpec(arr.shape, lambda i, _n=n: (0,) * _n)

    # Advisory cost estimate for XLA scheduling around the custom call.
    flops = 0
    transcendentals = 0
    for Lh in lens:
        per_b = (2 * Lh * D_MODEL * 3 * D_MODEL            # fused QKV
                 + N_HEADS * 2 * (2 * Lh * Lh * D_HEAD)    # scores + AV
                 + 2 * Lh * D_MODEL * D_MODEL              # output projection
                 + 2 * 2 * Lh * D_MODEL * D_FF)            # FFN
        flops += B * per_b
        transcendentals += B * N_HEADS * Lh * Lh           # exp in softmax
    bytes_accessed = sum(int(a.size) * 4 for a in inputs) + B * L_total * D * 4

    out = pl.pallas_call(
        kernel,
        out_shape=jax.ShapeDtypeStruct((B, L_total, D), jnp.float32),
        grid=(1,),  # single step; on v7x this could be split 2-way "parallel"
        in_specs=[full_spec(a) for a in inputs],
        out_specs=pl.BlockSpec((B, L_total, D), lambda i: (0, 0, 0)),
        compiler_params=pltpu.CompilerParams(
            dimension_semantics=("arbitrary",)),
        cost_estimate=pl.CostEstimate(flops=flops,
                                      transcendentals=transcendentals,
                                      bytes_accessed=bytes_accessed),
    )(*inputs)

    attns = [None] * len(inp_lens)  # FullAttention(output_attention=False)
    return out, attns


if __name__ == "__main__":
    B, L = 2, 8
    inp_lens = [0, 1]  # encoder 0: full length, encoder 1: last L//2 steps

    key = jax.random.PRNGKey(0)
    kx, k0, k1 = jax.random.split(key, 3)
    x = jax.random.normal(kx, (B, L, D_MODEL), dtype=jnp.float32)
    params_list = [make_encoder_params(k0), make_encoder_params(k1)]

    out, attns = encoder_stack_forward(x, params_list, inp_lens)
    out = jax.block_until_ready(out)

    expected_len = sum(L // (2 ** i) for i in inp_lens)
    assert out.shape == (B, expected_len, D_MODEL), out.shape
    assert bool(jnp.all(jnp.isfinite(out)))
    assert len(attns) == len(inp_lens)
    print("KERNEL_OK")
</pallas_src>

<mosaic_0001>
module attributes {stable_mosaic.version = 11 : i64} {
  func.func @kernel(%arg0: i32, %arg1: memref<2x8x32xf32, #tpu.memory_space<vmem>>, %arg2: memref<2x32x96xf32, #tpu.memory_space<vmem>>, %arg3: memref<2x1x96xf32, #tpu.memory_space<vmem>>, %arg4: memref<2x32x32xf32, #tpu.memory_space<vmem>>, %arg5: memref<2x32x64xf32, #tpu.memory_space<vmem>>, %arg6: memref<2x1x64xf32, #tpu.memory_space<vmem>>, %arg7: memref<2x64x32xf32, #tpu.memory_space<vmem>>, %arg8: memref<2x8x32xf32, #tpu.memory_space<vmem>>, %arg9: memref<2x12x32xf32, #tpu.memory_space<vmem>>) attributes {dimension_semantics = [#tpu.dimension_semantics<arbitrary>], iteration_bounds = array<i64: 1>, scalar_prefetch = 0 : i64, scratch_operands = 0 : i64, tpu.core_type = #tpu.core_type<tc>, window_params = [{pipeline_mode = #tpu.pipeline_mode<synchronous>, transform_indices = @transform_0, window_bounds = array<i64: 2, 8, 32>}, {pipeline_mode = #tpu.pipeline_mode<synchronous>, transform_indices = @transform_1, window_bounds = array<i64: 2, 32, 96>}, {pipeline_mode = #tpu.pipeline_mode<synchronous>, transform_indices = @transform_2, window_bounds = array<i64: 2, 1, 96>}, {pipeline_mode = #tpu.pipeline_mode<synchronous>, transform_indices = @transform_3, window_bounds = array<i64: 2, 32, 32>}, {pipeline_mode = #tpu.pipeline_mode<synchronous>, transform_indices = @transform_4, window_bounds = array<i64: 2, 32, 64>}, {pipeline_mode = #tpu.pipeline_mode<synchronous>, transform_indices = @transform_5, window_bounds = array<i64: 2, 1, 64>}, {pipeline_mode = #tpu.pipeline_mode<synchronous>, transform_indices = @transform_6, window_bounds = array<i64: 2, 64, 32>}, {pipeline_mode = #tpu.pipeline_mode<synchronous>, transform_indices = @transform_7, window_bounds = array<i64: 2, 8, 32>}, {pipeline_mode = #tpu.pipeline_mode<synchronous>, transform_indices = @transform_8, window_bounds = array<i64: 2, 12, 32>}]} {
    %c0 = arith.constant 0 : index
    %c0_0 = arith.constant 0 : index
    %c0_1 = arith.constant 0 : index
    %0 = vector.load %arg2[%c0, %c0_0, %c0_1] : memref<2x32x96xf32, #tpu.memory_space<vmem>>, vector<1x32x96xf32>
    %1 = vector.shape_cast %0 : vector<1x32x96xf32> to vector<32x96xf32>
    %c0_2 = arith.constant 0 : index
    %c0_3 = arith.constant 0 : index
    %c0_4 = arith.constant 0 : index
    %2 = vector.load %arg3[%c0_2, %c0_3, %c0_4] : memref<2x1x96xf32, #tpu.memory_space<vmem>>, vector<1x1x96xf32>
    %3 = vector.shape_cast %2 : vector<1x1x96xf32> to vector<1x96xf32>
    %c0_5 = arith.constant 0 : index
    %c0_6 = arith.constant 0 : index
    %c0_7 = arith.constant 0 : index
    %4 = vector.load %arg4[%c0_5, %c0_6, %c0_7] : memref<2x32x32xf32, #tpu.memory_space<vmem>>, vector<1x32x32xf32>
    %5 = vector.shape_cast %4 : vector<1x32x32xf32> to vector<32x32xf32>
    %c0_8 = arith.constant 0 : index
    %c0_9 = arith.constant 0 : index
    %c0_10 = arith.constant 0 : index
    %6 = vector.load %arg5[%c0_8, %c0_9, %c0_10] : memref<2x32x64xf32, #tpu.memory_space<vmem>>, vector<1x32x64xf32>
    %7 = vector.shape_cast %6 : vector<1x32x64xf32> to vector<32x64xf32>
    %c0_11 = arith.constant 0 : index
    %c0_12 = arith.constant 0 : index
    %c0_13 = arith.constant 0 : index
    %8 = vector.load %arg6[%c0_11, %c0_12, %c0_13] : memref<2x1x64xf32, #tpu.memory_space<vmem>>, vector<1x1x64xf32>
    %9 = vector.shape_cast %8 : vector<1x1x64xf32> to vector<1x64xf32>
    %c0_14 = arith.constant 0 : index
    %c0_15 = arith.constant 0 : index
    %c0_16 = arith.constant 0 : index
    %10 = vector.load %arg7[%c0_14, %c0_15, %c0_16] : memref<2x64x32xf32, #tpu.memory_space<vmem>>, vector<1x64x32xf32>
    %11 = vector.shape_cast %10 : vector<1x64x32xf32> to vector<64x32xf32>
    %c0_17 = arith.constant 0 : index
    %c0_18 = arith.constant 0 : index
    %c0_19 = arith.constant 0 : index
    %12 = vector.load %arg8[%c0_17, %c0_18, %c0_19] : memref<2x8x32xf32, #tpu.memory_space<vmem>>, vector<1x8x32xf32>
    %13 = vector.shape_cast %12 : vector<1x8x32xf32> to vector<8x32xf32>
    %14 = vector.extract_strided_slice %13 {offsets = [0, 0], sizes = [1, 32], strides = [1, 1]} : vector<8x32xf32> to vector<1x32xf32>
    %15 = vector.extract_strided_slice %13 {offsets = [1, 0], sizes = [1, 32], strides = [1, 1]} : vector<8x32xf32> to vector<1x32xf32>
    %16 = vector.extract_strided_slice %13 {offsets = [2, 0], sizes = [1, 32], strides = [1, 1]} : vector<8x32xf32> to vector<1x32xf32>
    %17 = vector.extract_strided_slice %13 {offsets = [3, 0], sizes = [1, 32], strides = [1, 1]} : vector<8x32xf32> to vector<1x32xf32>
    %18 = vector.extract_strided_slice %13 {offsets = [4, 0], sizes = [1, 32], strides = [1, 1]} : vector<8x32xf32> to vector<1x32xf32>
    %19 = vector.extract_strided_slice %13 {offsets = [5, 0], sizes = [1, 32], strides = [1, 1]} : vector<8x32xf32> to vector<1x32xf32>
    %20 = vector.extract_strided_slice %13 {offsets = [6, 0], sizes = [1, 32], strides = [1, 1]} : vector<8x32xf32> to vector<1x32xf32>
    %21 = vector.extract_strided_slice %13 {offsets = [7, 0], sizes = [1, 32], strides = [1, 1]} : vector<8x32xf32> to vector<1x32xf32>
    %c0_20 = arith.constant 0 : index
    %c0_21 = arith.constant 0 : index
    %c0_22 = arith.constant 0 : index
    %22 = vector.load %arg1[%c0_20, %c0_21, %c0_22] : memref<2x8x32xf32, #tpu.memory_space<vmem>>, vector<1x8x32xf32>
    %23 = vector.shape_cast %22 : vector<1x8x32xf32> to vector<8x32xf32>
    %cst = arith.constant dense<0.000000e+00> : vector<8x96xf32>
    %24 = tpu.matmul %23, %1, %cst {dimension_numbers = #tpu.dot_dimension_numbers<[1], [0], [0], [1], [0, 0, 1, 1], [], []>} : vector<8x32xf32>, vector<32x96xf32>, vector<8x96xf32> -> vector<8x96xf32>
    %25 = vector.broadcast %3 : vector<1x96xf32> to vector<8x96xf32>
    %26 = arith.addf %24, %25 : vector<8x96xf32>
    %27 = vector.extract_strided_slice %26 {offsets = [0, 0], sizes = [8, 8], strides = [1, 1]} : vector<8x96xf32> to vector<8x8xf32>
    %28 = vector.extract_strided_slice %26 {offsets = [0, 32], sizes = [8, 8], strides = [1, 1]} : vector<8x96xf32> to vector<8x8xf32>
    %29 = vector.extract_strided_slice %26 {offsets = [0, 64], sizes = [8, 8], strides = [1, 1]} : vector<8x96xf32> to vector<8x8xf32>
    %cst_23 = arith.constant dense<0.000000e+00> : vector<8x8xf32>
    %30 = tpu.matmul %27, %28, %cst_23 {dimension_numbers = #tpu.dot_dimension_numbers<[1], [1], [0], [0], [0, 0, 1, 0], [], []>} : vector<8x8xf32>, vector<8x8xf32>, vector<8x8xf32> -> vector<8x8xf32>
    %cst_24 = arith.constant dense<0xFF800000> : vector<8xf32>
    %31 = vector.multi_reduction <maximumf>, %30, %cst_24 [1] : vector<8x8xf32> to vector<8xf32>
    %32 = vector.shape_cast %31 : vector<8xf32> to vector<8x1xf32>
    %33 = vector.broadcast %32 : vector<8x1xf32> to vector<8x8xf32>
    %34 = arith.subf %30, %33 : vector<8x8xf32>
    %35 = math.exp %34 : vector<8x8xf32>
    %cst_25 = arith.constant dense<0.000000e+00> : vector<8xf32>
    %36 = vector.multi_reduction <add>, %35, %cst_25 [1] : vector<8x8xf32> to vector<8xf32>
    %37 = vector.shape_cast %36 : vector<8xf32> to vector<8x1xf32>
    %38 = tpu.reciprocal %37 {approx = true} : vector<8x1xf32> -> vector<8x1xf32>
    %39 = vector.broadcast %38 : vector<8x1xf32> to vector<8x8xf32>
    %40 = arith.mulf %35, %39 : vector<8x8xf32>
    %cst_26 = arith.constant dense<0.000000e+00> : vector<8x8xf32>
    %41 = tpu.matmul %40, %29, %cst_26 {dimension_numbers = #tpu.dot_dimension_numbers<[1], [0], [0], [1], [0, 0, 1, 1], [], []>} : vector<8x8xf32>, vector<8x8xf32>, vector<8x8xf32> -> vector<8x8xf32>
    %42 = vector.extract_strided_slice %26 {offsets = [0, 8], sizes = [8, 8], strides = [1, 1]} : vector<8x96xf32> to vector<8x8xf32>
    %43 = vector.extract_strided_slice %26 {offsets = [0, 40], sizes = [8, 8], strides = [1, 1]} : vector<8x96xf32> to vector<8x8xf32>
    %44 = vector.extract_strided_slice %26 {offsets = [0, 72], sizes = [8, 8], strides = [1, 1]} : vector<8x96xf32> to vector<8x8xf32>
    %cst_27 = arith.constant dense<0.000000e+00> : vector<8x8xf32>
    %45 = tpu.matmul %42, %43, %cst_27 {dimension_numbers = #tpu.dot_dimension_numbers<[1], [1], [0], [0], [0, 0, 1, 0], [], []>} : vector<8x8xf32>, vector<8x8xf32>, vector<8x8xf32> -> vector<8x8xf32>
    %cst_28 = arith.constant dense<0xFF800000> : vector<8xf32>
    %46 = vector.multi_reduction <maximumf>, %45, %cst_28 [1] : vector<8x8xf32> to vector<8xf32>
    %47 = vector.shape_cast %46 : vector<8xf32> to vector<8x1xf32>
    %48 = vector.broadcast %47 : vector<8x1xf32> to vector<8x8xf32>
    %49 = arith.subf %45, %48 : vector<8x8xf32>
    %50 = math.exp %49 : vector<8x8xf32>
    %cst_29 = arith.constant dense<0.000000e+00> : vector<8xf32>
    %51 = vector.multi_reduction <add>, %50, %cst_29 [1] : vector<8x8xf32> to vector<8xf32>
    %52 = vector.shape_cast %51 : vector<8xf32> to vector<8x1xf32>
    %53 = tpu.reciprocal %52 {approx = true} : vector<8x1xf32> -> vector<8x1xf32>
    %54 = vector.broadcast %53 : vector<8x1xf32> to vector<8x8xf32>
    %55 = arith.mulf %50, %54 : vector<8x8xf32>
    %cst_30 = arith.constant dense<0.000000e+00> : vector<8x8xf32>
    %56 = tpu.matmul %55, %44, %cst_30 {dimension_numbers = #tpu.dot_dimension_numbers<[1], [0], [0], [1], [0, 0, 1, 1], [], []>} : vector<8x8xf32>, vector<8x8xf32>, vector<8x8xf32> -> vector<8x8xf32>
    %57 = vector.extract_strided_slice %26 {offsets = [0, 16], sizes = [8, 8], strides = [1, 1]} : vector<8x96xf32> to vector<8x8xf32>
    %58 = vector.extract_strided_slice %26 {offsets = [0, 48], sizes = [8, 8], strides = [1, 1]} : vector<8x96xf32> to vector<8x8xf32>
    %59 = vector.extract_strided_slice %26 {offsets = [0, 80], sizes = [8, 8], strides = [1, 1]} : vector<8x96xf32> to vector<8x8xf32>
    %cst_31 = arith.constant dense<0.000000e+00> : vector<8x8xf32>
    %60 = tpu.matmul %57, %58, %cst_31 {dimension_numbers = #tpu.dot_dimension_numbers<[1], [1], [0], [0], [0, 0, 1, 0], [], []>} : vector<8x8xf32>, vector<8x8xf32>, vector<8x8xf32> -> vector<8x8xf32>
    %cst_32 = arith.constant dense<0xFF800000> : vector<8xf32>
    %61 = vector.multi_reduction <maximumf>, %60, %cst_32 [1] : vector<8x8xf32> to vector<8xf32>
    %62 = vector.shape_cast %61 : vector<8xf32> to vector<8x1xf32>
    %63 = vector.broadcast %62 : vector<8x1xf32> to vector<8x8xf32>
    %64 = arith.subf %60, %63 : vector<8x8xf32>
    %65 = math.exp %64 : vector<8x8xf32>
    %cst_33 = arith.constant dense<0.000000e+00> : vector<8xf32>
    %66 = vector.multi_reduction <add>, %65, %cst_33 [1] : vector<8x8xf32> to vector<8xf32>
    %67 = vector.shape_cast %66 : vector<8xf32> to vector<8x1xf32>
    %68 = tpu.reciprocal %67 {approx = true} : vector<8x1xf32> -> vector<8x1xf32>
    %69 = vector.broadcast %68 : vector<8x1xf32> to vector<8x8xf32>
    %70 = arith.mulf %65, %69 : vector<8x8xf32>
    %cst_34 = arith.constant dense<0.000000e+00> : vector<8x8xf32>
    %71 = tpu.matmul %70, %59, %cst_34 {dimension_numbers = #tpu.dot_dimension_numbers<[1], [0], [0], [1], [0, 0, 1, 1], [], []>} : vector<8x8xf32>, vector<8x8xf32>, vector<8x8xf32> -> vector<8x8xf32>
    %72 = vector.extract_strided_slice %26 {offsets = [0, 24], sizes = [8, 8], strides = [1, 1]} : vector<8x96xf32> to vector<8x8xf32>
    %73 = vector.extract_strided_slice %26 {offsets = [0, 56], sizes = [8, 8], strides = [1, 1]} : vector<8x96xf32> to vector<8x8xf32>
    %74 = vector.extract_strided_slice %26 {offsets = [0, 88], sizes = [8, 8], strides = [1, 1]} : vector<8x96xf32> to vector<8x8xf32>
    %cst_35 = arith.constant dense<0.000000e+00> : vector<8x8xf32>
    %75 = tpu.matmul %72, %73, %cst_35 {dimension_numbers = #tpu.dot_dimension_numbers<[1], [1], [0], [0], [0, 0, 1, 0], [], []>} : vector<8x8xf32>, vector<8x8xf32>, vector<8x8xf32> -> vector<8x8xf32>
    %cst_36 = arith.constant dense<0xFF800000> : vector<8xf32>
    %76 = vector.multi_reduction <maximumf>, %75, %cst_36 [1] : vector<8x8xf32> to vector<8xf32>
    %77 = vector.shape_cast %76 : vector<8xf32> to vector<8x1xf32>
    %78 = vector.broadcast %77 : vector<8x1xf32> to vector<8x8xf32>
    %79 = arith.subf %75, %78 : vector<8x8xf32>
    %80 = math.exp %79 : vector<8x8xf32>
    %cst_37 = arith.constant dense<0.000000e+00> : vector<8xf32>
    %81 = vector.multi_reduction <add>, %80, %cst_37 [1] : vector<8x8xf32> to vector<8xf32>
    %82 = vector.shape_cast %81 : vector<8xf32> to vector<8x1xf32>
    %83 = tpu.reciprocal %82 {approx = true} : vector<8x1xf32> -> vector<8x1xf32>
    %84 = vector.broadcast %83 : vector<8x1xf32> to vector<8x8xf32>
    %85 = arith.mulf %80, %84 : vector<8x8xf32>
    %cst_38 = arith.constant dense<0.000000e+00> : vector<8x8xf32>
    %86 = tpu.matmul %85, %74, %cst_38 {dimension_numbers = #tpu.dot_dimension_numbers<[1], [0], [0], [1], [0, 0, 1, 1], [], []>} : vector<8x8xf32>, vector<8x8xf32>, vector<8x8xf32> -> vector<8x8xf32>
    %87 = tpu.concatenate %41, %56, %71, %86 in 1 : vector<8x8xf32>, vector<8x8xf32>, vector<8x8xf32>, vector<8x8xf32> -> vector<8x32xf32>
    %cst_39 = arith.constant dense<0.000000e+00> : vector<8x32xf32>
    %88 = tpu.matmul %87, %5, %cst_39 {dimension_numbers = #tpu.dot_dimension_numbers<[1], [0], [0], [1], [0, 0, 1, 1], [], []>} : vector<8x32xf32>, vector<32x32xf32>, vector<8x32xf32> -> vector<8x32xf32>
    %89 = vector.broadcast %14 : vector<1x32xf32> to vector<8x32xf32>
    %90 = arith.addf %88, %89 : vector<8x32xf32>
    %91 = arith.addf %23, %90 : vector<8x32xf32>
    %cst_40 = arith.constant dense<0.000000e+00> : vector<8xf32>
    %92 = vector.multi_reduction <add>, %91, %cst_40 [1] : vector<8x32xf32> to vector<8xf32>
    %93 = vector.shape_cast %92 : vector<8xf32> to vector<8x1xf32>
    %cst_41 = arith.constant 3.200000e+01 : f32
    %94 = vector.broadcast %cst_41 : f32 to vector<8x1xf32>
    %95 = arith.divf %93, %94 : vector<8x1xf32>
    %96 = vector.broadcast %95 : vector<8x1xf32> to vector<8x32xf32>
    %97 = arith.subf %91, %96 : vector<8x32xf32>
    %98 = arith.mulf %97, %97 : vector<8x32xf32>
    %cst_42 = arith.constant dense<0.000000e+00> : vector<8xf32>
    %99 = vector.multi_reduction <add>, %98, %cst_42 [1] : vector<8x32xf32> to vector<8xf32>
    %100 = vector.shape_cast %99 : vector<8xf32> to vector<8x1xf32>
    %cst_43 = arith.constant 3.200000e+01 : f32
    %101 = vector.broadcast %cst_43 : f32 to vector<8x1xf32>
    %102 = arith.divf %100, %101 : vector<8x1xf32>
    %103 = vector.broadcast %95 : vector<8x1xf32> to vector<8x32xf32>
    %104 = arith.subf %91, %103 : vector<8x32xf32>
    %cst_44 = arith.constant 9.99999974E-6 : f32
    %105 = vector.broadcast %cst_44 : f32 to vector<8x1xf32>
    %106 = arith.addf %102, %105 : vector<8x1xf32>
    %107 = math.rsqrt %106 : vector<8x1xf32>
    %108 = vector.broadcast %107 : vector<8x1xf32> to vector<8x32xf32>
    %109 = arith.mulf %104, %108 : vector<8x32xf32>
    %110 = vector.broadcast %16 : vector<1x32xf32> to vector<8x32xf32>
    %111 = arith.mulf %109, %110 : vector<8x32xf32>
    %112 = vector.broadcast %17 : vector<1x32xf32> to vector<8x32xf32>
    %113 = arith.addf %111, %112 : vector<8x32xf32>
    %cst_45 = arith.constant dense<0.000000e+00> : vector<8x64xf32>
    %114 = tpu.matmul %113, %7, %cst_45 {dimension_numbers = #tpu.dot_dimension_numbers<[1], [0], [0], [1], [0, 0, 1, 1], [], []>} : vector<8x32xf32>, vector<32x64xf32>, vector<8x64xf32> -> vector<8x64xf32>
    %115 = vector.broadcast %9 : vector<1x64xf32> to vector<8x64xf32>
    %116 = arith.addf %114, %115 : vector<8x64xf32>
    %cst_46 = arith.constant 0.000000e+00 : f32
    %117 = vector.broadcast %cst_46 : f32 to vector<8x64xf32>
    %118 = arith.maximumf %116, %117 : vector<8x64xf32>
    %cst_47 = arith.constant dense<0.000000e+00> : vector<8x32xf32>
    %119 = tpu.matmul %118, %11, %cst_47 {dimension_numbers = #tpu.dot_dimension_numbers<[1], [0], [0], [1], [0, 0, 1, 1], [], []>} : vector<8x64xf32>, vector<64x32xf32>, vector<8x32xf32> -> vector<8x32xf32>
    %120 = vector.broadcast %15 : vector<1x32xf32> to vector<8x32xf32>
    %121 = arith.addf %119, %120 : vector<8x32xf32>
    %122 = arith.addf %113, %121 : vector<8x32xf32>
    %cst_48 = arith.constant dense<0.000000e+00> : vector<8xf32>
    %123 = vector.multi_reduction <add>, %122, %cst_48 [1] : vector<8x32xf32> to vector<8xf32>
    %124 = vector.shape_cast %123 : vector<8xf32> to vector<8x1xf32>
    %cst_49 = arith.constant 3.200000e+01 : f32
    %125 = vector.broadcast %cst_49 : f32 to vector<8x1xf32>
    %126 = arith.divf %124, %125 : vector<8x1xf32>
    %127 = vector.broadcast %126 : vector<8x1xf32> to vector<8x32xf32>
    %128 = arith.subf %122, %127 : vector<8x32xf32>
    %129 = arith.mulf %128, %128 : vector<8x32xf32>
    %cst_50 = arith.constant dense<0.000000e+00> : vector<8xf32>
    %130 = vector.multi_reduction <add>, %129, %cst_50 [1] : vector<8x32xf32> to vector<8xf32>
    %131 = vector.shape_cast %130 : vector<8xf32> to vector<8x1xf32>
    %cst_51 = arith.constant 3.200000e+01 : f32
    %132 = vector.broadcast %cst_51 : f32 to vector<8x1xf32>
    %133 = arith.divf %131, %132 : vector<8x1xf32>
    %134 = vector.broadcast %126 : vector<8x1xf32> to vector<8x32xf32>
    %135 = arith.subf %122, %134 : vector<8x32xf32>
    %cst_52 = arith.constant 9.99999974E-6 : f32
    %136 = vector.broadcast %cst_52 : f32 to vector<8x1xf32>
    %137 = arith.addf %133, %136 : vector<8x1xf32>
    %138 = math.rsqrt %137 : vector<8x1xf32>
    %139 = vector.broadcast %138 : vector<8x1xf32> to vector<8x32xf32>
    %140 = arith.mulf %135, %139 : vector<8x32xf32>
    %141 = vector.broadcast %18 : vector<1x32xf32> to vector<8x32xf32>
    %142 = arith.mulf %140, %141 : vector<8x32xf32>
    %143 = vector.broadcast %19 : vector<1x32xf32> to vector<8x32xf32>
    %144 = arith.addf %142, %143 : vector<8x32xf32>
    %cst_53 = arith.constant dense<0.000000e+00> : vector<8xf32>
    %145 = vector.multi_reduction <add>, %144, %cst_53 [1] : vector<8x32xf32> to vector<8xf32>
    %146 = vector.shape_cast %145 : vector<8xf32> to vector<8x1xf32>
    %cst_54 = arith.constant 3.200000e+01 : f32
    %147 = vector.broadcast %cst_54 : f32 to vector<8x1xf32>
    %148 = arith.divf %146, %147 : vector<8x1xf32>
    %149 = vector.broadcast %148 : vector<8x1xf32> to vector<8x32xf32>
    %150 = arith.subf %144, %149 : vector<8x32xf32>
    %151 = arith.mulf %150, %150 : vector<8x32xf32>
    %cst_55 = arith.constant dense<0.000000e+00> : vector<8xf32>
    %152 = vector.multi_reduction <add>, %151, %cst_55 [1] : vector<8x32xf32> to vector<8xf32>
    %153 = vector.shape_cast %152 : vector<8xf32> to vector<8x1xf32>
    %cst_56 = arith.constant 3.200000e+01 : f32
    %154 = vector.broadcast %cst_56 : f32 to vector<8x1xf32>
    %155 = arith.divf %153, %154 : vector<8x1xf32>
    %156 = vector.broadcast %148 : vector<8x1xf32> to vector<8x32xf32>
    %157 = arith.subf %144, %156 : vector<8x32xf32>
    %cst_57 = arith.constant 9.99999974E-6 : f32
    %158 = vector.broadcast %cst_57 : f32 to vector<8x1xf32>
    %159 = arith.addf %155, %158 : vector<8x1xf32>
    %160 = math.rsqrt %159 : vector<8x1xf32>
    %161 = vector.broadcast %160 : vector<8x1xf32> to vector<8x32xf32>
    %162 = arith.mulf %157, %161 : vector<8x32xf32>
    %163 = vector.broadcast %20 : vector<1x32xf32> to vector<8x32xf32>
    %164 = arith.mulf %162, %163 : vector<8x32xf32>
    %165 = vector.broadcast %21 : vector<1x32xf32> to vector<8x32xf32>
    %166 = arith.addf %164, %165 : vector<8x32xf32>
    %c0_58 = arith.constant 0 : index
    %c0_59 = arith.constant 0 : index
    %c0_60 = arith.constant 0 : index
    %167 = vector.load %arg9[%c0_58, %c0_59, %c0_60] : memref<2x12x32xf32, #tpu.memory_space<vmem>>, vector<1x8x32xf32>
    %168 = vector.shape_cast %167 : vector<1x8x32xf32> to vector<8x32xf32>
    %169 = vector.shape_cast %166 : vector<8x32xf32> to vector<1x8x32xf32>
    tpu.vector_store %arg9[%c0_58, %c0_59, %c0_60], %169 {strides = array<i32>} : memref<2x12x32xf32, #tpu.memory_space<vmem>>, vector<1x8x32xf32>,
    %c1 = arith.constant 1 : index
    %c0_61 = arith.constant 0 : index
    %c0_62 = arith.constant 0 : index
    %170 = vector.load %arg1[%c1, %c0_61, %c0_62] : memref<2x8x32xf32, #tpu.memory_space<vmem>>, vector<1x8x32xf32>
    %171 = vector.shape_cast %170 : vector<1x8x32xf32> to vector<8x32xf32>
    %cst_63 = arith.constant dense<0.000000e+00> : vector<8x96xf32>
    %172 = tpu.matmul %171, %1, %cst_63 {dimension_numbers = #tpu.dot_dimension_numbers<[1], [0], [0], [1], [0, 0, 1, 1], [], []>} : vector<8x32xf32>, vector<32x96xf32>, vector<8x96xf32> -> vector<8x96xf32>
    %173 = vector.broadcast %3 : vector<1x96xf32> to vector<8x96xf32>
    %174 = arith.addf %172, %173 : vector<8x96xf32>
    %175 = vector.extract_strided_slice %174 {offsets = [0, 0], sizes = [8, 8], strides = [1, 1]} : vector<8x96xf32> to vector<8x8xf32>
    %176 = vector.extract_strided_slice %174 {offsets = [0, 32], sizes = [8, 8], strides = [1, 1]} : vector<8x96xf32> to vector<8x8xf32>
    %177 = vector.extract_strided_slice %174 {offsets = [0, 64], sizes = [8, 8], strides = [1, 1]} : vector<8x96xf32> to vector<8x8xf32>
    %cst_64 = arith.constant dense<0.000000e+00> : vector<8x8xf32>
    %178 = tpu.matmul %175, %176, %cst_64 {dimension_numbers = #tpu.dot_dimension_numbers<[1], [1], [0], [0], [0, 0, 1, 0], [], []>} : vector<8x8xf32>, vector<8x8xf32>, vector<8x8xf32> -> vector<8x8xf32>
    %cst_65 = arith.constant dense<0xFF800000> : vector<8xf32>
    %179 = vector.multi_reduction <maximumf>, %178, %cst_65 [1] : vector<8x8xf32> to vector<8xf32>
    %180 = vector.shape_cast %179 : vector<8xf32> to vector<8x1xf32>
    %181 = vector.broadcast %180 : vector<8x1xf32> to vector<8x8xf32>
    %182 = arith.subf %178, %181 : vector<8x8xf32>
    %183 = math.exp %182 : vector<8x8xf32>
    %cst_66 = arith.constant dense<0.000000e+00> : vector<8xf32>
    %184 = vector.multi_reduction <add>, %183, %cst_66 [1] : vector<8x8xf32> to vector<8xf32>
    %185 = vector.shape_cast %184 : vector<8xf32> to vector<8x1xf32>
    %186 = tpu.reciprocal %185 {approx = true} : vector<8x1xf32> -> vector<8x1xf32>
    %187 = vector.broadcast %186 : vector<8x1xf32> to vector<8x8xf32>
    %188 = arith.mulf %183, %187 : vector<8x8xf32>
    %cst_67 = arith.constant dense<0.000000e+00> : vector<8x8xf32>
    %189 = tpu.matmul %188, %177, %cst_67 {dimension_numbers = #tpu.dot_dimension_numbers<[1], [0], [0], [1], [0, 0, 1, 1], [], []>} : vector<8x8xf32>, vector<8x8xf32>, vector<8x8xf32> -> vector<8x8xf32>
    %190 = vector.extract_strided_slice %174 {offsets = [0, 8], sizes = [8, 8], strides = [1, 1]} : vector<8x96xf32> to vector<8x8xf32>
    %191 = vector.extract_strided_slice %174 {offsets = [0, 40], sizes = [8, 8], strides = [1, 1]} : vector<8x96xf32> to vector<8x8xf32>
    %192 = vector.extract_strided_slice %174 {offsets = [0, 72], sizes = [8, 8], strides = [1, 1]} : vector<8x96xf32> to vector<8x8xf32>
    %cst_68 = arith.constant dense<0.000000e+00> : vector<8x8xf32>
    %193 = tpu.matmul %190, %191, %cst_68 {dimension_numbers = #tpu.dot_dimension_numbers<[1], [1], [0], [0], [0, 0, 1, 0], [], []>} : vector<8x8xf32>, vector<8x8xf32>, vector<8x8xf32> -> vector<8x8xf32>
    %cst_69 = arith.constant dense<0xFF800000> : vector<8xf32>
    %194 = vector.multi_reduction <maximumf>, %193, %cst_69 [1] : vector<8x8xf32> to vector<8xf32>
    %195 = vector.shape_cast %194 : vector<8xf32> to vector<8x1xf32>
    %196 = vector.broadcast %195 : vector<8x1xf32> to vector<8x8xf32>
    %197 = arith.subf %193, %196 : vector<8x8xf32>
    %198 = math.exp %197 : vector<8x8xf32>
    %cst_70 = arith.constant dense<0.000000e+00> : vector<8xf32>
    %199 = vector.multi_reduction <add>, %198, %cst_70 [1] : vector<8x8xf32> to vector<8xf32>
    %200 = vector.shape_cast %199 : vector<8xf32> to vector<8x1xf32>
    %201 = tpu.reciprocal %200 {approx = true} : vector<8x1xf32> -> vector<8x1xf32>
    %202 = vector.broadcast %201 : vector<8x1xf32> to vector<8x8xf32>
    %203 = arith.mulf %198, %202 : vector<8x8xf32>
    %cst_71 = arith.constant dense<0.000000e+00> : vector<8x8xf32>
    %204 = tpu.matmul %203, %192, %cst_71 {dimension_numbers = #tpu.dot_dimension_numbers<[1], [0], [0], [1], [0, 0, 1, 1], [], []>} : vector<8x8xf32>, vector<8x8xf32>, vector<8x8xf32> -> vector<8x8xf32>
    %205 = vector.extract_strided_slice %174 {offsets = [0, 16], sizes = [8, 8], strides = [1, 1]} : vector<8x96xf32> to vector<8x8xf32>
    %206 = vector.extract_strided_slice %174 {offsets = [0, 48], sizes = [8, 8], strides = [1, 1]} : vector<8x96xf32> to vector<8x8xf32>
    %207 = vector.extract_strided_slice %174 {offsets = [0, 80], sizes = [8, 8], strides = [1, 1]} : vector<8x96xf32> to vector<8x8xf32>
    %cst_72 = arith.constant dense<0.000000e+00> : vector<8x8xf32>
    %208 = tpu.matmul %205, %206, %cst_72 {dimension_numbers = #tpu.dot_dimension_numbers<[1], [1], [0], [0], [0, 0, 1, 0], [], []>} : vector<8x8xf32>, vector<8x8xf32>, vector<8x8xf32> -> vector<8x8xf32>
    %cst_73 = arith.constant dense<0xFF800000> : vector<8xf32>
    %209 = vector.multi_reduction <maximumf>, %208, %cst_73 [1] : vector<8x8xf32> to vector<8xf32>
    %210 = vector.shape_cast %209 : vector<8xf32> to vector<8x1xf32>
    %211 = vector.broadcast %210 : vector<8x1xf32> to vector<8x8xf32>
    %212 = arith.subf %208, %211 : vector<8x8xf32>
    %213 = math.exp %212 : vector<8x8xf32>
    %cst_74 = arith.constant dense<0.000000e+00> : vector<8xf32>
    %214 = vector.multi_reduction <add>, %213, %cst_74 [1] : vector<8x8xf32> to vector<8xf32>
    %215 = vector.shape_cast %214 : vector<8xf32> to vector<8x1xf32>
    %216 = tpu.reciprocal %215 {approx = true} : vector<8x1xf32> -> vector<8x1xf32>
    %217 = vector.broadcast %216 : vector<8x1xf32> to vector<8x8xf32>
    %218 = arith.mulf %213, %217 : vector<8x8xf32>
    %cst_75 = arith.constant dense<0.000000e+00> : vector<8x8xf32>
    %219 = tpu.matmul %218, %207, %cst_75 {dimension_numbers = #tpu.dot_dimension_numbers<[1], [0], [0], [1], [0, 0, 1, 1], [], []>} : vector<8x8xf32>, vector<8x8xf32>, vector<8x8xf32> -> vector<8x8xf32>
    %220 = vector.extract_strided_slice %174 {offsets = [0, 24], sizes = [8, 8], strides = [1, 1]} : vector<8x96xf32> to vector<8x8xf32>
    %221 = vector.extract_strided_slice %174 {offsets = [0, 56], sizes = [8, 8], strides = [1, 1]} : vector<8x96xf32> to vector<8x8xf32>
    %222 = vector.extract_strided_slice %174 {offsets = [0, 88], sizes = [8, 8], strides = [1, 1]} : vector<8x96xf32> to vector<8x8xf32>
    %cst_76 = arith.constant dense<0.000000e+00> : vector<8x8xf32>
    %223 = tpu.matmul %220, %221, %cst_76 {dimension_numbers = #tpu.dot_dimension_numbers<[1], [1], [0], [0], [0, 0, 1, 0], [], []>} : vector<8x8xf32>, vector<8x8xf32>, vector<8x8xf32> -> vector<8x8xf32>
    %cst_77 = arith.constant dense<0xFF800000> : vector<8xf32>
    %224 = vector.multi_reduction <maximumf>, %223, %cst_77 [1] : vector<8x8xf32> to vector<8xf32>
    %225 = vector.shape_cast %224 : vector<8xf32> to vector<8x1xf32>
    %226 = vector.broadcast %225 : vector<8x1xf32> to vector<8x8xf32>
    %227 = arith.subf %223, %226 : vector<8x8xf32>
    %228 = math.exp %227 : vector<8x8xf32>
    %cst_78 = arith.constant dense<0.000000e+00> : vector<8xf32>
    %229 = vector.multi_reduction <add>, %228, %cst_78 [1] : vector<8x8xf32> to vector<8xf32>
    %230 = vector.shape_cast %229 : vector<8xf32> to vector<8x1xf32>
    %231 = tpu.reciprocal %230 {approx = true} : vector<8x1xf32> -> vector<8x1xf32>
    %232 = vector.broadcast %231 : vector<8x1xf32> to vector<8x8xf32>
    %233 = arith.mulf %228, %232 : vector<8x8xf32>
    %cst_79 = arith.constant dense<0.000000e+00> : vector<8x8xf32>
    %234 = tpu.matmul %233, %222, %cst_79 {dimension_numbers = #tpu.dot_dimension_numbers<[1], [0], [0], [1], [0, 0, 1, 1], [], []>} : vector<8x8xf32>, vector<8x8xf32>, vector<8x8xf32> -> vector<8x8xf32>
    %235 = tpu.concatenate %189, %204, %219, %234 in 1 : vector<8x8xf32>, vector<8x8xf32>, vector<8x8xf32>, vector<8x8xf32> -> vector<8x32xf32>
    %cst_80 = arith.constant dense<0.000000e+00> : vector<8x32xf32>
    %236 = tpu.matmul %235, %5, %cst_80 {dimension_numbers = #tpu.dot_dimension_numbers<[1], [0], [0], [1], [0, 0, 1, 1], [], []>} : vector<8x32xf32>, vector<32x32xf32>, vector<8x32xf32> -> vector<8x32xf32>
    %237 = vector.broadcast %14 : vector<1x32xf32> to vector<8x32xf32>
    %238 = arith.addf %236, %237 : vector<8x32xf32>
    %239 = arith.addf %171, %238 : vector<8x32xf32>
    %cst_81 = arith.constant dense<0.000000e+00> : vector<8xf32>
    %240 = vector.multi_reduction <add>, %239, %cst_81 [1] : vector<8x32xf32> to vector<8xf32>
    %241 = vector.shape_cast %240 : vector<8xf32> to vector<8x1xf32>
    %cst_82 = arith.constant 3.200000e+01 : f32
    %242 = vector.broadcast %cst_82 : f32 to vector<8x1xf32>
    %243 = arith.divf %241, %242 : vector<8x1xf32>
    %244 = vector.broadcast %243 : vector<8x1xf32> to vector<8x32xf32>
    %245 = arith.subf %239, %244 : vector<8x32xf32>
    %246 = arith.mulf %245, %245 : vector<8x32xf32>
    %cst_83 = arith.constant dense<0.000000e+00> : vector<8xf32>
    %247 = vector.multi_reduction <add>, %246, %cst_83 [1] : vector<8x32xf32> to vector<8xf32>
    %248 = vector.shape_cast %247 : vector<8xf32> to vector<8x1xf32>
    %cst_84 = arith.constant 3.200000e+01 : f32
    %249 = vector.broadcast %cst_84 : f32 to vector<8x1xf32>
    %250 = arith.divf %248, %249 : vector<8x1xf32>
    %251 = vector.broadcast %243 : vector<8x1xf32> to vector<8x32xf32>
    %252 = arith.subf %239, %251 : vector<8x32xf32>
    %cst_85 = arith.constant 9.99999974E-6 : f32
    %253 = vector.broadcast %cst_85 : f32 to vector<8x1xf32>
    %254 = arith.addf %250, %253 : vector<8x1xf32>
    %255 = math.rsqrt %254 : vector<8x1xf32>
    %256 = vector.broadcast %255 : vector<8x1xf32> to vector<8x32xf32>
    %257 = arith.mulf %252, %256 : vector<8x32xf32>
    %258 = vector.broadcast %16 : vector<1x32xf32> to vector<8x32xf32>
    %259 = arith.mulf %257, %258 : vector<8x32xf32>
    %260 = vector.broadcast %17 : vector<1x32xf32> to vector<8x32xf32>
    %261 = arith.addf %259, %260 : vector<8x32xf32>
    %cst_86 = arith.constant dense<0.000000e+00> : vector<8x64xf32>
    %262 = tpu.matmul %261, %7, %cst_86 {dimension_numbers = #tpu.dot_dimension_numbers<[1], [0], [0], [1], [0, 0, 1, 1], [], []>} : vector<8x32xf32>, vector<32x64xf32>, vector<8x64xf32> -> vector<8x64xf32>
    %263 = vector.broadcast %9 : vector<1x64xf32> to vector<8x64xf32>
    %264 = arith.addf %262, %263 : vector<8x64xf32>
    %cst_87 = arith.constant 0.000000e+00 : f32
    %265 = vector.broadcast %cst_87 : f32 to vector<8x64xf32>
    %266 = arith.maximumf %264, %265 : vector<8x64xf32>
    %cst_88 = arith.constant dense<0.000000e+00> : vector<8x32xf32>
    %267 = tpu.matmul %266, %11, %cst_88 {dimension_numbers = #tpu.dot_dimension_numbers<[1], [0], [0], [1], [0, 0, 1, 1], [], []>} : vector<8x64xf32>, vector<64x32xf32>, vector<8x32xf32> -> vector<8x32xf32>
    %268 = vector.broadcast %15 : vector<1x32xf32> to vector<8x32xf32>
    %269 = arith.addf %267, %268 : vector<8x32xf32>
    %270 = arith.addf %261, %269 : vector<8x32xf32>
    %cst_89 = arith.constant dense<0.000000e+00> : vector<8xf32>
    %271 = vector.multi_reduction <add>, %270, %cst_89 [1] : vector<8x32xf32> to vector<8xf32>
    %272 = vector.shape_cast %271 : vector<8xf32> to vector<8x1xf32>
    %cst_90 = arith.constant 3.200000e+01 : f32
    %273 = vector.broadcast %cst_90 : f32 to vector<8x1xf32>
    %274 = arith.divf %272, %273 : vector<8x1xf32>
    %275 = vector.broadcast %274 : vector<8x1xf32> to vector<8x32xf32>
    %276 = arith.subf %270, %275 : vector<8x32xf32>
    %277 = arith.mulf %276, %276 : vector<8x32xf32>
    %cst_91 = arith.constant dense<0.000000e+00> : vector<8xf32>
    %278 = vector.multi_reduction <add>, %277, %cst_91 [1] : vector<8x32xf32> to vector<8xf32>
    %279 = vector.shape_cast %278 : vector<8xf32> to vector<8x1xf32>
    %cst_92 = arith.constant 3.200000e+01 : f32
    %280 = vector.broadcast %cst_92 : f32 to vector<8x1xf32>
    %281 = arith.divf %279, %280 : vector<8x1xf32>
    %282 = vector.broadcast %274 : vector<8x1xf32> to vector<8x32xf32>
    %283 = arith.subf %270, %282 : vector<8x32xf32>
    %cst_93 = arith.constant 9.99999974E-6 : f32
    %284 = vector.broadcast %cst_93 : f32 to vector<8x1xf32>
    %285 = arith.addf %281, %284 : vector<8x1xf32>
    %286 = math.rsqrt %285 : vector<8x1xf32>
    %287 = vector.broadcast %286 : vector<8x1xf32> to vector<8x32xf32>
    %288 = arith.mulf %283, %287 : vector<8x32xf32>
    %289 = vector.broadcast %18 : vector<1x32xf32> to vector<8x32xf32>
    %290 = arith.mulf %288, %289 : vector<8x32xf32>
    %291 = vector.broadcast %19 : vector<1x32xf32> to vector<8x32xf32>
    %292 = arith.addf %290, %291 : vector<8x32xf32>
    %cst_94 = arith.constant dense<0.000000e+00> : vector<8xf32>
    %293 = vector.multi_reduction <add>, %292, %cst_94 [1] : vector<8x32xf32> to vector<8xf32>
    %294 = vector.shape_cast %293 : vector<8xf32> to vector<8x1xf32>
    %cst_95 = arith.constant 3.200000e+01 : f32
    %295 = vector.broadcast %cst_95 : f32 to vector<8x1xf32>
    %296 = arith.divf %294, %295 : vector<8x1xf32>
    %297 = vector.broadcast %296 : vector<8x1xf32> to vector<8x32xf32>
    %298 = arith.subf %292, %297 : vector<8x32xf32>
    %299 = arith.mulf %298, %298 : vector<8x32xf32>
    %cst_96 = arith.constant dense<0.000000e+00> : vector<8xf32>
    %300 = vector.multi_reduction <add>, %299, %cst_96 [1] : vector<8x32xf32> to vector<8xf32>
    %301 = vector.shape_cast %300 : vector<8xf32> to vector<8x1xf32>
    %cst_97 = arith.constant 3.200000e+01 : f32
    %302 = vector.broadcast %cst_97 : f32 to vector<8x1xf32>
    %303 = arith.divf %301, %302 : vector<8x1xf32>
    %304 = vector.broadcast %296 : vector<8x1xf32> to vector<8x32xf32>
    %305 = arith.subf %292, %304 : vector<8x32xf32>
    %cst_98 = arith.constant 9.99999974E-6 : f32
    %306 = vector.broadcast %cst_98 : f32 to vector<8x1xf32>
    %307 = arith.addf %303, %306 : vector<8x1xf32>
    %308 = math.rsqrt %307 : vector<8x1xf32>
    %309 = vector.broadcast %308 : vector<8x1xf32> to vector<8x32xf32>
    %310 = arith.mulf %305, %309 : vector<8x32xf32>
    %311 = vector.broadcast %20 : vector<1x32xf32> to vector<8x32xf32>
    %312 = arith.mulf %310, %311 : vector<8x32xf32>
    %313 = vector.broadcast %21 : vector<1x32xf32> to vector<8x32xf32>
    %314 = arith.addf %312, %313 : vector<8x32xf32>
    %c1_99 = arith.constant 1 : index
    %c0_100 = arith.constant 0 : index
    %c0_101 = arith.constant 0 : index
    %315 = vector.load %arg9[%c1_99, %c0_100, %c0_101] : memref<2x12x32xf32, #tpu.memory_space<vmem>>, vector<1x8x32xf32>
    %316 = vector.shape_cast %315 : vector<1x8x32xf32> to vector<8x32xf32>
    %317 = vector.shape_cast %314 : vector<8x32xf32> to vector<1x8x32xf32>
    tpu.vector_store %arg9[%c1_99, %c0_100, %c0_101], %317 {strides = array<i32>} : memref<2x12x32xf32, #tpu.memory_space<vmem>>, vector<1x8x32xf32>,
    %c1_102 = arith.constant 1 : index
    %c0_103 = arith.constant 0 : index
    %c0_104 = arith.constant 0 : index
    %318 = vector.load %arg2[%c1_102, %c0_103, %c0_104] : memref<2x32x96xf32, #tpu.memory_space<vmem>>, vector<1x32x96xf32>
    %319 = vector.shape_cast %318 : vector<1x32x96xf32> to vector<32x96xf32>
    %c1_105 = arith.constant 1 : index
    %c0_106 = arith.constant 0 : index
    %c0_107 = arith.constant 0 : index
    %320 = vector.load %arg3[%c1_105, %c0_106, %c0_107] : memref<2x1x96xf32, #tpu.memory_space<vmem>>, vector<1x1x96xf32>
    %321 = vector.shape_cast %320 : vector<1x1x96xf32> to vector<1x96xf32>
    %c1_108 = arith.constant 1 : index
    %c0_109 = arith.constant 0 : index
    %c0_110 = arith.constant 0 : index
    %322 = vector.load %arg4[%c1_108, %c0_109, %c0_110] : memref<2x32x32xf32, #tpu.memory_space<vmem>>, vector<1x32x32xf32>
    %323 = vector.shape_cast %322 : vector<1x32x32xf32> to vector<32x32xf32>
    %c1_111 = arith.constant 1 : index
    %c0_112 = arith.constant 0 : index
    %c0_113 = arith.constant 0 : index
    %324 = vector.load %arg5[%c1_111, %c0_112, %c0_113] : memref<2x32x64xf32, #tpu.memory_space<vmem>>, vector<1x32x64xf32>
    %325 = vector.shape_cast %324 : vector<1x32x64xf32> to vector<32x64xf32>
    %c1_114 = arith.constant 1 : index
    %c0_115 = arith.constant 0 : index
    %c0_116 = arith.constant 0 : index
    %326 = vector.load %arg6[%c1_114, %c0_115, %c0_116] : memref<2x1x64xf32, #tpu.memory_space<vmem>>, vector<1x1x64xf32>
    %327 = vector.shape_cast %326 : vector<1x1x64xf32> to vector<1x64xf32>
    %c1_117 = arith.constant 1 : index
    %c0_118 = arith.constant 0 : index
    %c0_119 = arith.constant 0 : index
    %328 = vector.load %arg7[%c1_117, %c0_118, %c0_119] : memref<2x64x32xf32, #tpu.memory_space<vmem>>, vector<1x64x32xf32>
    %329 = vector.shape_cast %328 : vector<1x64x32xf32> to vector<64x32xf32>
    %c1_120 = arith.constant 1 : index
    %c0_121 = arith.constant 0 : index
    %c0_122 = arith.constant 0 : index
    %330 = vector.load %arg8[%c1_120, %c0_121, %c0_122] : memref<2x8x32xf32, #tpu.memory_space<vmem>>, vector<1x8x32xf32>
    %331 = vector.shape_cast %330 : vector<1x8x32xf32> to vector<8x32xf32>
    %332 = vector.extract_strided_slice %331 {offsets = [0, 0], sizes = [1, 32], strides = [1, 1]} : vector<8x32xf32> to vector<1x32xf32>
    %333 = vector.extract_strided_slice %331 {offsets = [1, 0], sizes = [1, 32], strides = [1, 1]} : vector<8x32xf32> to vector<1x32xf32>
    %334 = vector.extract_strided_slice %331 {offsets = [2, 0], sizes = [1, 32], strides = [1, 1]} : vector<8x32xf32> to vector<1x32xf32>
    %335 = vector.extract_strided_slice %331 {offsets = [3, 0], sizes = [1, 32], strides = [1, 1]} : vector<8x32xf32> to vector<1x32xf32>
    %336 = vector.extract_strided_slice %331 {offsets = [4, 0], sizes = [1, 32], strides = [1, 1]} : vector<8x32xf32> to vector<1x32xf32>
    %337 = vector.extract_strided_slice %331 {offsets = [5, 0], sizes = [1, 32], strides = [1, 1]} : vector<8x32xf32> to vector<1x32xf32>
    %338 = vector.extract_strided_slice %331 {offsets = [6, 0], sizes = [1, 32], strides = [1, 1]} : vector<8x32xf32> to vector<1x32xf32>
    %339 = vector.extract_strided_slice %331 {offsets = [7, 0], sizes = [1, 32], strides = [1, 1]} : vector<8x32xf32> to vector<1x32xf32>
    %c0_123 = arith.constant 0 : index
    %c4 = arith.constant 4 : index
    %c0_124 = arith.constant 0 : index
    %340 = vector.load %arg1[%c0_123, %c4, %c0_124] : memref<2x8x32xf32, #tpu.memory_space<vmem>>, vector<1x4x32xf32>
    %341 = vector.shape_cast %340 : vector<1x4x32xf32> to vector<4x32xf32>
    %cst_125 = arith.constant dense<0.000000e+00> : vector<4x96xf32>
    %342 = tpu.matmul %341, %319, %cst_125 {dimension_numbers = #tpu.dot_dimension_numbers<[1], [0], [0], [1], [0, 0, 1, 1], [], []>} : vector<4x32xf32>, vector<32x96xf32>, vector<4x96xf32> -> vector<4x96xf32>
    %343 = vector.broadcast %321 : vector<1x96xf32> to vector<4x96xf32>
    %344 = arith.addf %342, %343 : vector<4x96xf32>
    %345 = vector.extract_strided_slice %344 {offsets = [0, 0], sizes = [4, 8], strides = [1, 1]} : vector<4x96xf32> to vector<4x8xf32>
    %346 = vector.extract_strided_slice %344 {offsets = [0, 32], sizes = [4, 8], strides = [1, 1]} : vector<4x96xf32> to vector<4x8xf32>
    %347 = vector.extract_strided_slice %344 {offsets = [0, 64], sizes = [4, 8], strides = [1, 1]} : vector<4x96xf32> to vector<4x8xf32>
    %cst_126 = arith.constant dense<0.000000e+00> : vector<4x4xf32>
    %348 = tpu.matmul %345, %346, %cst_126 {dimension_numbers = #tpu.dot_dimension_numbers<[1], [1], [0], [0], [0, 0, 1, 0], [], []>} : vector<4x8xf32>, vector<4x8xf32>, vector<4x4xf32> -> vector<4x4xf32>
    %cst_127 = arith.constant dense<0xFF800000> : vector<4xf32>
    %349 = vector.multi_reduction <maximumf>, %348, %cst_127 [1] : vector<4x4xf32> to vector<4xf32>
    %350 = vector.shape_cast %349 : vector<4xf32> to vector<4x1xf32>
    %351 = vector.broadcast %350 : vector<4x1xf32> to vector<4x4xf32>
    %352 = arith.subf %348, %351 : vector<4x4xf32>
    %353 = math.exp %352 : vector<4x4xf32>
    %cst_128 = arith.constant dense<0.000000e+00> : vector<4xf32>
    %354 = vector.multi_reduction <add>, %353, %cst_128 [1] : vector<4x4xf32> to vector<4xf32>
    %355 = vector.shape_cast %354 : vector<4xf32> to vector<4x1xf32>
    %356 = tpu.reciprocal %355 {approx = true} : vector<4x1xf32> -> vector<4x1xf32>
    %357 = vector.broadcast %356 : vector<4x1xf32> to vector<4x4xf32>
    %358 = arith.mulf %353, %357 : vector<4x4xf32>
    %cst_129 = arith.constant dense<0.000000e+00> : vector<4x8xf32>
    %359 = tpu.matmul %358, %347, %cst_129 {dimension_numbers = #tpu.dot_dimension_numbers<[1], [0], [0], [1], [0, 0, 1, 1], [], []>} : vector<4x4xf32>, vector<4x8xf32>, vector<4x8xf32> -> vector<4x8xf32>
    %360 = vector.extract_strided_slice %344 {offsets = [0, 8], sizes = [4, 8], strides = [1, 1]} : vector<4x96xf32> to vector<4x8xf32>
    %361 = vector.extract_strided_slice %344 {offsets = [0, 40], sizes = [4, 8], strides = [1, 1]} : vector<4x96xf32> to vector<4x8xf32>
    %362 = vector.extract_strided_slice %344 {offsets = [0, 72], sizes = [4, 8], strides = [1, 1]} : vector<4x96xf32> to vector<4x8xf32>
    %cst_130 = arith.constant dense<0.000000e+00> : vector<4x4xf32>
    %363 = tpu.matmul %360, %361, %cst_130 {dimension_numbers = #tpu.dot_dimension_numbers<[1], [1], [0], [0], [0, 0, 1, 0], [], []>} : vector<4x8xf32>, vector<4x8xf32>, vector<4x4xf32> -> vector<4x4xf32>
    %cst_131 = arith.constant dense<0xFF800000> : vector<4xf32>
    %364 = vector.multi_reduction <maximumf>, %363, %cst_131 [1] : vector<4x4xf32> to vector<4xf32>
    %365 = vector.shape_cast %364 : vector<4xf32> to vector<4x1xf32>
    %366 = vector.broadcast %365 : vector<4x1xf32> to vector<4x4xf32>
    %367 = arith.subf %363, %366 : vector<4x4xf32>
    %368 = math.exp %367 : vector<4x4xf32>
    %cst_132 = arith.constant dense<0.000000e+00> : vector<4xf32>
    %369 = vector.multi_reduction <add>, %368, %cst_132 [1] : vector<4x4xf32> to vector<4xf32>
    %370 = vector.shape_cast %369 : vector<4xf32> to vector<4x1xf32>
    %371 = tpu.reciprocal %370 {approx = true} : vector<4x1xf32> -> vector<4x1xf32>
    %372 = vector.broadcast %371 : vector<4x1xf32> to vector<4x4xf32>
    %373 = arith.mulf %368, %372 : vector<4x4xf32>
    %cst_133 = arith.constant dense<0.000000e+00> : vector<4x8xf32>
    %374 = tpu.matmul %373, %362, %cst_133 {dimension_numbers = #tpu.dot_dimension_numbers<[1], [0], [0], [1], [0, 0, 1, 1], [], []>} : vector<4x4xf32>, vector<4x8xf32>, vector<4x8xf32> -> vector<4x8xf32>
    %375 = vector.extract_strided_slice %344 {offsets = [0, 16], sizes = [4, 8], strides = [1, 1]} : vector<4x96xf32> to vector<4x8xf32>
    %376 = vector.extract_strided_slice %344 {offsets = [0, 48], sizes = [4, 8], strides = [1, 1]} : vector<4x96xf32> to vector<4x8xf32>
    %377 = vector.extract_strided_slice %344 {offsets = [0, 80], sizes = [4, 8], strides = [1, 1]} : vector<4x96xf32> to vector<4x8xf32>
    %cst_134 = arith.constant dense<0.000000e+00> : vector<4x4xf32>
    %378 = tpu.matmul %375, %376, %cst_134 {dimension_numbers = #tpu.dot_dimension_numbers<[1], [1], [0], [0], [0, 0, 1, 0], [], []>} : vector<4x8xf32>, vector<4x8xf32>, vector<4x4xf32> -> vector<4x4xf32>
    %cst_135 = arith.constant dense<0xFF800000> : vector<4xf32>
    %379 = vector.multi_reduction <maximumf>, %378, %cst_135 [1] : vector<4x4xf32> to vector<4xf32>
    %380 = vector.shape_cast %379 : vector<4xf32> to vector<4x1xf32>
    %381 = vector.broadcast %380 : vector<4x1xf32> to vector<4x4xf32>
    %382 = arith.subf %378, %381 : vector<4x4xf32>
    %383 = math.exp %382 : vector<4x4xf32>
    %cst_136 = arith.constant dense<0.000000e+00> : vector<4xf32>
    %384 = vector.multi_reduction <add>, %383, %cst_136 [1] : vector<4x4xf32> to vector<4xf32>
    %385 = vector.shape_cast %384 : vector<4xf32> to vector<4x1xf32>
    %386 = tpu.reciprocal %385 {approx = true} : vector<4x1xf32> -> vector<4x1xf32>
    %387 = vector.broadcast %386 : vector<4x1xf32> to vector<4x4xf32>
    %388 = arith.mulf %383, %387 : vector<4x4xf32>
    %cst_137 = arith.constant dense<0.000000e+00> : vector<4x8xf32>
    %389 = tpu.matmul %388, %377, %cst_137 {dimension_numbers = #tpu.dot_dimension_numbers<[1], [0], [0], [1], [0, 0, 1, 1], [], []>} : vector<4x4xf32>, vector<4x8xf32>, vector<4x8xf32> -> vector<4x8xf32>
    %390 = vector.extract_strided_slice %344 {offsets = [0, 24], sizes = [4, 8], strides = [1, 1]} : vector<4x96xf32> to vector<4x8xf32>
    %391 = vector.extract_strided_slice %344 {offsets = [0, 56], sizes = [4, 8], strides = [1, 1]} : vector<4x96xf32> to vector<4x8xf32>
    %392 = vector.extract_strided_slice %344 {offsets = [0, 88], sizes = [4, 8], strides = [1, 1]} : vector<4x96xf32> to vector<4x8xf32>
    %cst_138 = arith.constant dense<0.000000e+00> : vector<4x4xf32>
    %393 = tpu.matmul %390, %391, %cst_138 {dimension_numbers = #tpu.dot_dimension_numbers<[1], [1], [0], [0], [0, 0, 1, 0], [], []>} : vector<4x8xf32>, vector<4x8xf32>, vector<4x4xf32> -> vector<4x4xf32>
    %cst_139 = arith.constant dense<0xFF800000> : vector<4xf32>
    %394 = vector.multi_reduction <maximumf>, %393, %cst_139 [1] : vector<4x4xf32> to vector<4xf32>
    %395 = vector.shape_cast %394 : vector<4xf32> to vector<4x1xf32>
    %396 = vector.broadcast %395 : vector<4x1xf32> to vector<4x4xf32>
    %397 = arith.subf %393, %396 : vector<4x4xf32>
    %398 = math.exp %397 : vector<4x4xf32>
    %cst_140 = arith.constant dense<0.000000e+00> : vector<4xf32>
    %399 = vector.multi_reduction <add>, %398, %cst_140 [1] : vector<4x4xf32> to vector<4xf32>
    %400 = vector.shape_cast %399 : vector<4xf32> to vector<4x1xf32>
    %401 = tpu.reciprocal %400 {approx = true} : vector<4x1xf32> -> vector<4x1xf32>
    %402 = vector.broadcast %401 : vector<4x1xf32> to vector<4x4xf32>
    %403 = arith.mulf %398, %402 : vector<4x4xf32>
    %cst_141 = arith.constant dense<0.000000e+00> : vector<4x8xf32>
    %404 = tpu.matmul %403, %392, %cst_141 {dimension_numbers = #tpu.dot_dimension_numbers<[1], [0], [0], [1], [0, 0, 1, 1], [], []>} : vector<4x4xf32>, vector<4x8xf32>, vector<4x8xf32> -> vector<4x8xf32>
    %405 = tpu.concatenate %359, %374, %389, %404 in 1 : vector<4x8xf32>, vector<4x8xf32>, vector<4x8xf32>, vector<4x8xf32> -> vector<4x32xf32>
    %cst_142 = arith.constant dense<0.000000e+00> : vector<4x32xf32>
    %406 = tpu.matmul %405, %323, %cst_142 {dimension_numbers = #tpu.dot_dimension_numbers<[1], [0], [0], [1], [0, 0, 1, 1], [], []>} : vector<4x32xf32>, vector<32x32xf32>, vector<4x32xf32> -> vector<4x32xf32>
    %407 = vector.broadcast %332 : vector<1x32xf32> to vector<4x32xf32>
    %408 = arith.addf %406, %407 : vector<4x32xf32>
    %409 = arith.addf %341, %408 : vector<4x32xf32>
    %cst_143 = arith.constant dense<0.000000e+00> : vector<4xf32>
    %410 = vector.multi_reduction <add>, %409, %cst_143 [1] : vector<4x32xf32> to vector<4xf32>
    %411 = vector.shape_cast %410 : vector<4xf32> to vector<4x1xf32>
    %cst_144 = arith.constant 3.200000e+01 : f32
    %412 = vector.broadcast %cst_144 : f32 to vector<4x1xf32>
    %413 = arith.divf %411, %412 : vector<4x1xf32>
    %414 = vector.broadcast %413 : vector<4x1xf32> to vector<4x32xf32>
    %415 = arith.subf %409, %414 : vector<4x32xf32>
    %416 = arith.mulf %415, %415 : vector<4x32xf32>
    %cst_145 = arith.constant dense<0.000000e+00> : vector<4xf32>
    %417 = vector.multi_reduction <add>, %416, %cst_145 [1] : vector<4x32xf32> to vector<4xf32>
    %418 = vector.shape_cast %417 : vector<4xf32> to vector<4x1xf32>
    %cst_146 = arith.constant 3.200000e+01 : f32
    %419 = vector.broadcast %cst_146 : f32 to vector<4x1xf32>
    %420 = arith.divf %418, %419 : vector<4x1xf32>
    %421 = vector.broadcast %413 : vector<4x1xf32> to vector<4x32xf32>
    %422 = arith.subf %409, %421 : vector<4x32xf32>
    %cst_147 = arith.constant 9.99999974E-6 : f32
    %423 = vector.broadcast %cst_147 : f32 to vector<4x1xf32>
    %424 = arith.addf %420, %423 : vector<4x1xf32>
    %425 = math.rsqrt %424 : vector<4x1xf32>
    %426 = vector.broadcast %425 : vector<4x1xf32> to vector<4x32xf32>
    %427 = arith.mulf %422, %426 : vector<4x32xf32>
    %428 = vector.broadcast %334 : vector<1x32xf32> to vector<4x32xf32>
    %429 = arith.mulf %427, %428 : vector<4x32xf32>
    %430 = vector.broadcast %335 : vector<1x32xf32> to vector<4x32xf32>
    %431 = arith.addf %429, %430 : vector<4x32xf32>
    %cst_148 = arith.constant dense<0.000000e+00> : vector<4x64xf32>
    %432 = tpu.matmul %431, %325, %cst_148 {dimension_numbers = #tpu.dot_dimension_numbers<[1], [0], [0], [1], [0, 0, 1, 1], [], []>} : vector<4x32xf32>, vector<32x64xf32>, vector<4x64xf32> -> vector<4x64xf32>
    %433 = vector.broadcast %327 : vector<1x64xf32> to vector<4x64xf32>
    %434 = arith.addf %432, %433 : vector<4x64xf32>
    %cst_149 = arith.constant 0.000000e+00 : f32
    %435 = vector.broadcast %cst_149 : f32 to vector<4x64xf32>
    %436 = arith.maximumf %434, %435 : vector<4x64xf32>
    %cst_150 = arith.constant dense<0.000000e+00> : vector<4x32xf32>
    %437 = tpu.matmul %436, %329, %cst_150 {dimension_numbers = #tpu.dot_dimension_numbers<[1], [0], [0], [1], [0, 0, 1, 1], [], []>} : vector<4x64xf32>, vector<64x32xf32>, vector<4x32xf32> -> vector<4x32xf32>
    %438 = vector.broadcast %333 : vector<1x32xf32> to vector<4x32xf32>
    %439 = arith.addf %437, %438 : vector<4x32xf32>
    %440 = arith.addf %431, %439 : vector<4x32xf32>
    %cst_151 = arith.constant dense<0.000000e+00> : vector<4xf32>
    %441 = vector.multi_reduction <add>, %440, %cst_151 [1] : vector<4x32xf32> to vector<4xf32>
    %442 = vector.shape_cast %441 : vector<4xf32> to vector<4x1xf32>
    %cst_152 = arith.constant 3.200000e+01 : f32
    %443 = vector.broadcast %cst_152 : f32 to vector<4x1xf32>
    %444 = arith.divf %442, %443 : vector<4x1xf32>
    %445 = vector.broadcast %444 : vector<4x1xf32> to vector<4x32xf32>
    %446 = arith.subf %440, %445 : vector<4x32xf32>
    %447 = arith.mulf %446, %446 : vector<4x32xf32>
    %cst_153 = arith.constant dense<0.000000e+00> : vector<4xf32>
    %448 = vector.multi_reduction <add>, %447, %cst_153 [1] : vector<4x32xf32> to vector<4xf32>
    %449 = vector.shape_cast %448 : vector<4xf32> to vector<4x1xf32>
    %cst_154 = arith.constant 3.200000e+01 : f32
    %450 = vector.broadcast %cst_154 : f32 to vector<4x1xf32>
    %451 = arith.divf %449, %450 : vector<4x1xf32>
    %452 = vector.broadcast %444 : vector<4x1xf32> to vector<4x32xf32>
    %453 = arith.subf %440, %452 : vector<4x32xf32>
    %cst_155 = arith.constant 9.99999974E-6 : f32
    %454 = vector.broadcast %cst_155 : f32 to vector<4x1xf32>
    %455 = arith.addf %451, %454 : vector<4x1xf32>
    %456 = math.rsqrt %455 : vector<4x1xf32>
    %457 = vector.broadcast %456 : vector<4x1xf32> to vector<4x32xf32>
    %458 = arith.mulf %453, %457 : vector<4x32xf32>
    %459 = vector.broadcast %336 : vector<1x32xf32> to vector<4x32xf32>
    %460 = arith.mulf %458, %459 : vector<4x32xf32>
    %461 = vector.broadcast %337 : vector<1x32xf32> to vector<4x32xf32>
    %462 = arith.addf %460, %461 : vector<4x32xf32>
    %cst_156 = arith.constant dense<0.000000e+00> : vector<4xf32>
    %463 = vector.multi_reduction <add>, %462, %cst_156 [1] : vector<4x32xf32> to vector<4xf32>
    %464 = vector.shape_cast %463 : vector<4xf32> to vector<4x1xf32>
    %cst_157 = arith.constant 3.200000e+01 : f32
    %465 = vector.broadcast %cst_157 : f32 to vector<4x1xf32>
    %466 = arith.divf %464, %465 : vector<4x1xf32>
    %467 = vector.broadcast %466 : vector<4x1xf32> to vector<4x32xf32>
    %468 = arith.subf %462, %467 : vector<4x32xf32>
    %469 = arith.mulf %468, %468 : vector<4x32xf32>
    %cst_158 = arith.constant dense<0.000000e+00> : vector<4xf32>
    %470 = vector.multi_reduction <add>, %469, %cst_158 [1] : vector<4x32xf32> to vector<4xf32>
    %471 = vector.shape_cast %470 : vector<4xf32> to vector<4x1xf32>
    %cst_159 = arith.constant 3.200000e+01 : f32
    %472 = vector.broadcast %cst_159 : f32 to vector<4x1xf32>
    %473 = arith.divf %471, %472 : vector<4x1xf32>
    %474 = vector.broadcast %466 : vector<4x1xf32> to vector<4x32xf32>
    %475 = arith.subf %462, %474 : vector<4x32xf32>
    %cst_160 = arith.constant 9.99999974E-6 : f32
    %476 = vector.broadcast %cst_160 : f32 to vector<4x1xf32>
    %477 = arith.addf %473, %476 : vector<4x1xf32>
    %478 = math.rsqrt %477 : vector<4x1xf32>
    %479 = vector.broadcast %478 : vector<4x1xf32> to vector<4x32xf32>
    %480 = arith.mulf %475, %479 : vector<4x32xf32>
    %481 = vector.broadcast %338 : vector<1x32xf32> to vector<4x32xf32>
    %482 = arith.mulf %480, %481 : vector<4x32xf32>
    %483 = vector.broadcast %339 : vector<1x32xf32> to vector<4x32xf32>
    %484 = arith.addf %482, %483 : vector<4x32xf32>
    %c0_161 = arith.constant 0 : index
    %c8 = arith.constant 8 : index
    %c0_162 = arith.constant 0 : index
    %485 = vector.load %arg9[%c0_161, %c8, %c0_162] : memref<2x12x32xf32, #tpu.memory_space<vmem>>, vector<1x4x32xf32>
    %486 = vector.shape_cast %485 : vector<1x4x32xf32> to vector<4x32xf32>
    %487 = vector.shape_cast %484 : vector<4x32xf32> to vector<1x4x32xf32>
    tpu.vector_store %arg9[%c0_161, %c8, %c0_162], %487 {strides = array<i32>} : memref<2x12x32xf32, #tpu.memory_space<vmem>>, vector<1x4x32xf32>,
    %c1_163 = arith.constant 1 : index
    %c4_164 = arith.constant 4 : index
    %c0_165 = arith.constant 0 : index
    %488 = vector.load %arg1[%c1_163, %c4_164, %c0_165] : memref<2x8x32xf32, #tpu.memory_space<vmem>>, vector<1x4x32xf32>
    %489 = vector.shape_cast %488 : vector<1x4x32xf32> to vector<4x32xf32>
    %cst_166 = arith.constant dense<0.000000e+00> : vector<4x96xf32>
    %490 = tpu.matmul %489, %319, %cst_166 {dimension_numbers = #tpu.dot_dimension_numbers<[1], [0], [0], [1], [0, 0, 1, 1], [], []>} : vector<4x32xf32>, vector<32x96xf32>, vector<4x96xf32> -> vector<4x96xf32>
    %491 = vector.broadcast %321 : vector<1x96xf32> to vector<4x96xf32>
    %492 = arith.addf %490, %491 : vector<4x96xf32>
    %493 = vector.extract_strided_slice %492 {offsets = [0, 0], sizes = [4, 8], strides = [1, 1]} : vector<4x96xf32> to vector<4x8xf32>
    %494 = vector.extract_strided_slice %492 {offsets = [0, 32], sizes = [4, 8], strides = [1, 1]} : vector<4x96xf32> to vector<4x8xf32>
    %495 = vector.extract_strided_slice %492 {offsets = [0, 64], sizes = [4, 8], strides = [1, 1]} : vector<4x96xf32> to vector<4x8xf32>
    %cst_167 = arith.constant dense<0.000000e+00> : vector<4x4xf32>
    %496 = tpu.matmul %493, %494, %cst_167 {dimension_numbers = #tpu.dot_dimension_numbers<[1], [1], [0], [0], [0, 0, 1, 0], [], []>} : vector<4x8xf32>, vector<4x8xf32>, vector<4x4xf32> -> vector<4x4xf32>
    %cst_168 = arith.constant dense<0xFF800000> : vector<4xf32>
    %497 = vector.multi_reduction <maximumf>, %496, %cst_168 [1] : vector<4x4xf32> to vector<4xf32>
    %498 = vector.shape_cast %497 : vector<4xf32> to vector<4x1xf32>
    %499 = vector.broadcast %498 : vector<4x1xf32> to vector<4x4xf32>
    %500 = arith.subf %496, %499 : vector<4x4xf32>
    %501 = math.exp %500 : vector<4x4xf32>
    %cst_169 = arith.constant dense<0.000000e+00> : vector<4xf32>
    %502 = vector.multi_reduction <add>, %501, %cst_169 [1] : vector<4x4xf32> to vector<4xf32>
    %503 = vector.shape_cast %502 : vector<4xf32> to vector<4x1xf32>
    %504 = tpu.reciprocal %503 {approx = true} : vector<4x1xf32> -> vector<4x1xf32>
    %505 = vector.broadcast %504 : vector<4x1xf32> to vector<4x4xf32>
    %506 = arith.mulf %501, %505 : vector<4x4xf32>
    %cst_170 = arith.constant dense<0.000000e+00> : vector<4x8xf32>
    %507 = tpu.matmul %506, %495, %cst_170 {dimension_numbers = #tpu.dot_dimension_numbers<[1], [0], [0], [1], [0, 0, 1, 1], [], []>} : vector<4x4xf32>, vector<4x8xf32>, vector<4x8xf32> -> vector<4x8xf32>
    %508 = vector.extract_strided_slice %492 {offsets = [0, 8], sizes = [4, 8], strides = [1, 1]} : vector<4x96xf32> to vector<4x8xf32>
    %509 = vector.extract_strided_slice %492 {offsets = [0, 40], sizes = [4, 8], strides = [1, 1]} : vector<4x96xf32> to vector<4x8xf32>
    %510 = vector.extract_strided_slice %492 {offsets = [0, 72], sizes = [4, 8], strides = [1, 1]} : vector<4x96xf32> to vector<4x8xf32>
    %cst_171 = arith.constant dense<0.000000e+00> : vector<4x4xf32>
    %511 = tpu.matmul %508, %509, %cst_171 {dimension_numbers = #tpu.dot_dimension_numbers<[1], [1], [0], [0], [0, 0, 1, 0], [], []>} : vector<4x8xf32>, vector<4x8xf32>, vector<4x4xf32> -> vector<4x4xf32>
    %cst_172 = arith.constant dense<0xFF800000> : vector<4xf32>
    %512 = vector.multi_reduction <maximumf>, %511, %cst_172 [1] : vector<4x4xf32> to vector<4xf32>
    %513 = vector.shape_cast %512 : vector<4xf32> to vector<4x1xf32>
    %514 = vector.broadcast %513 : vector<4x1xf32> to vector<4x4xf32>
    %515 = arith.subf %511, %514 : vector<4x4xf32>
    %516 = math.exp %515 : vector<4x4xf32>
    %cst_173 = arith.constant dense<0.000000e+00> : vector<4xf32>
    %517 = vector.multi_reduction <add>, %516, %cst_173 [1] : vector<4x4xf32> to vector<4xf32>
    %518 = vector.shape_cast %517 : vector<4xf32> to vector<4x1xf32>
    %519 = tpu.reciprocal %518 {approx = true} : vector<4x1xf32> -> vector<4x1xf32>
    %520 = vector.broadcast %519 : vector<4x1xf32> to vector<4x4xf32>
    %521 = arith.mulf %516, %520 : vector<4x4xf32>
    %cst_174 = arith.constant dense<0.000000e+00> : vector<4x8xf32>
    %522 = tpu.matmul %521, %510, %cst_174 {dimension_numbers = #tpu.dot_dimension_numbers<[1], [0], [0], [1], [0, 0, 1, 1], [], []>} : vector<4x4xf32>, vector<4x8xf32>, vector<4x8xf32> -> vector<4x8xf32>
    %523 = vector.extract_strided_slice %492 {offsets = [0, 16], sizes = [4, 8], strides = [1, 1]} : vector<4x96xf32> to vector<4x8xf32>
    %524 = vector.extract_strided_slice %492 {offsets = [0, 48], sizes = [4, 8], strides = [1, 1]} : vector<4x96xf32> to vector<4x8xf32>
    %525 = vector.extract_strided_slice %492 {offsets = [0, 80], sizes = [4, 8], strides = [1, 1]} : vector<4x96xf32> to vector<4x8xf32>
    %cst_175 = arith.constant dense<0.000000e+00> : vector<4x4xf32>
    %526 = tpu.matmul %523, %524, %cst_175 {dimension_numbers = #tpu.dot_dimension_numbers<[1], [1], [0], [0], [0, 0, 1, 0], [], []>} : vector<4x8xf32>, vector<4x8xf32>, vector<4x4xf32> -> vector<4x4xf32>
    %cst_176 = arith.constant dense<0xFF800000> : vector<4xf32>
    %527 = vector.multi_reduction <maximumf>, %526, %cst_176 [1] : vector<4x4xf32> to vector<4xf32>
    %528 = vector.shape_cast %527 : vector<4xf32> to vector<4x1xf32>
    %529 = vector.broadcast %528 : vector<4x1xf32> to vector<4x4xf32>
    %530 = arith.subf %526, %529 : vector<4x4xf32>
    %531 = math.exp %530 : vector<4x4xf32>
    %cst_177 = arith.constant dense<0.000000e+00> : vector<4xf32>
    %532 = vector.multi_reduction <add>, %531, %cst_177 [1] : vector<4x4xf32> to vector<4xf32>
    %533 = vector.shape_cast %532 : vector<4xf32> to vector<4x1xf32>
    %534 = tpu.reciprocal %533 {approx = true} : vector<4x1xf32> -> vector<4x1xf32>
    %535 = vector.broadcast %534 : vector<4x1xf32> to vector<4x4xf32>
    %536 = arith.mulf %531, %535 : vector<4x4xf32>
    %cst_178 = arith.constant dense<0.000000e+00> : vector<4x8xf32>
    %537 = tpu.matmul %536, %525, %cst_178 {dimension_numbers = #tpu.dot_dimension_numbers<[1], [0], [0], [1], [0, 0, 1, 1], [], []>} : vector<4x4xf32>, vector<4x8xf32>, vector<4x8xf32> -> vector<4x8xf32>
    %538 = vector.extract_strided_slice %492 {offsets = [0, 24], sizes = [4, 8], strides = [1, 1]} : vector<4x96xf32> to vector<4x8xf32>
    %539 = vector.extract_strided_slice %492 {offsets = [0, 56], sizes = [4, 8], strides = [1, 1]} : vector<4x96xf32> to vector<4x8xf32>
    %540 = vector.extract_strided_slice %492 {offsets = [0, 88], sizes = [4, 8], strides = [1, 1]} : vector<4x96xf32> to vector<4x8xf32>
    %cst_179 = arith.constant dense<0.000000e+00> : vector<4x4xf32>
    %541 = tpu.matmul %538, %539, %cst_179 {dimension_numbers = #tpu.dot_dimension_numbers<[1], [1], [0], [0], [0, 0, 1, 0], [], []>} : vector<4x8xf32>, vector<4x8xf32>, vector<4x4xf32> -> vector<4x4xf32>
    %cst_180 = arith.constant dense<0xFF800000> : vector<4xf32>
    %542 = vector.multi_reduction <maximumf>, %541, %cst_180 [1] : vector<4x4xf32> to vector<4xf32>
    %543 = vector.shape_cast %542 : vector<4xf32> to vector<4x1xf32>
    %544 = vector.broadcast %543 : vector<4x1xf32> to vector<4x4xf32>
    %545 = arith.subf %541, %544 : vector<4x4xf32>
    %546 = math.exp %545 : vector<4x4xf32>
    %cst_181 = arith.constant dense<0.000000e+00> : vector<4xf32>
    %547 = vector.multi_reduction <add>, %546, %cst_181 [1] : vector<4x4xf32> to vector<4xf32>
    %548 = vector.shape_cast %547 : vector<4xf32> to vector<4x1xf32>
    %549 = tpu.reciprocal %548 {approx = true} : vector<4x1xf32> -> vector<4x1xf32>
    %550 = vector.broadcast %549 : vector<4x1xf32> to vector<4x4xf32>
    %551 = arith.mulf %546, %550 : vector<4x4xf32>
    %cst_182 = arith.constant dense<0.000000e+00> : vector<4x8xf32>
    %552 = tpu.matmul %551, %540, %cst_182 {dimension_numbers = #tpu.dot_dimension_numbers<[1], [0], [0], [1], [0, 0, 1, 1], [], []>} : vector<4x4xf32>, vector<4x8xf32>, vector<4x8xf32> -> vector<4x8xf32>
    %553 = tpu.concatenate %507, %522, %537, %552 in 1 : vector<4x8xf32>, vector<4x8xf32>, vector<4x8xf32>, vector<4x8xf32> -> vector<4x32xf32>
    %cst_183 = arith.constant dense<0.000000e+00> : vector<4x32xf32>
    %554 = tpu.matmul %553, %323, %cst_183 {dimension_numbers = #tpu.dot_dimension_numbers<[1], [0], [0], [1], [0, 0, 1, 1], [], []>} : vector<4x32xf32>, vector<32x32xf32>, vector<4x32xf32> -> vector<4x32xf32>
    %555 = vector.broadcast %332 : vector<1x32xf32> to vector<4x32xf32>
    %556 = arith.addf %554, %555 : vector<4x32xf32>
    %557 = arith.addf %489, %556 : vector<4x32xf32>
    %cst_184 = arith.constant dense<0.000000e+00> : vector<4xf32>
    %558 = vector.multi_reduction <add>, %557, %cst_184 [1] : vector<4x32xf32> to vector<4xf32>
    %559 = vector.shape_cast %558 : vector<4xf32> to vector<4x1xf32>
    %cst_185 = arith.constant 3.200000e+01 : f32
    %560 = vector.broadcast %cst_185 : f32 to vector<4x1xf32>
    %561 = arith.divf %559, %560 : vector<4x1xf32>
    %562 = vector.broadcast %561 : vector<4x1xf32> to vector<4x32xf32>
    %563 = arith.subf %557, %562 : vector<4x32xf32>
    %564 = arith.mulf %563, %563 : vector<4x32xf32>
    %cst_186 = arith.constant dense<0.000000e+00> : vector<4xf32>
    %565 = vector.multi_reduction <add>, %564, %cst_186 [1] : vector<4x32xf32> to vector<4xf32>
    %566 = vector.shape_cast %565 : vector<4xf32> to vector<4x1xf32>
    %cst_187 = arith.constant 3.200000e+01 : f32
    %567 = vector.broadcast %cst_187 : f32 to vector<4x1xf32>
    %568 = arith.divf %566, %567 : vector<4x1xf32>
    %569 = vector.broadcast %561 : vector<4x1xf32> to vector<4x32xf32>
    %570 = arith.subf %557, %569 : vector<4x32xf32>
    %cst_188 = arith.constant 9.99999974E-6 : f32
    %571 = vector.broadcast %cst_188 : f32 to vector<4x1xf32>
    %572 = arith.addf %568, %571 : vector<4x1xf32>
    %573 = math.rsqrt %572 : vector<4x1xf32>
    %574 = vector.broadcast %573 : vector<4x1xf32> to vector<4x32xf32>
    %575 = arith.mulf %570, %574 : vector<4x32xf32>
    %576 = vector.broadcast %334 : vector<1x32xf32> to vector<4x32xf32>
    %577 = arith.mulf %575, %576 : vector<4x32xf32>
    %578 = vector.broadcast %335 : vector<1x32xf32> to vector<4x32xf32>
    %579 = arith.addf %577, %578 : vector<4x32xf32>
    %cst_189 = arith.constant dense<0.000000e+00> : vector<4x64xf32>
    %580 = tpu.matmul %579, %325, %cst_189 {dimension_numbers = #tpu.dot_dimension_numbers<[1], [0], [0], [1], [0, 0, 1, 1], [], []>} : vector<4x32xf32>, vector<32x64xf32>, vector<4x64xf32> -> vector<4x64xf32>
    %581 = vector.broadcast %327 : vector<1x64xf32> to vector<4x64xf32>
    %582 = arith.addf %580, %581 : vector<4x64xf32>
    %cst_190 = arith.constant 0.000000e+00 : f32
    %583 = vector.broadcast %cst_190 : f32 to vector<4x64xf32>
    %584 = arith.maximumf %582, %583 : vector<4x64xf32>
    %cst_191 = arith.constant dense<0.000000e+00> : vector<4x32xf32>
    %585 = tpu.matmul %584, %329, %cst_191 {dimension_numbers = #tpu.dot_dimension_numbers<[1], [0], [0], [1], [0, 0, 1, 1], [], []>} : vector<4x64xf32>, vector<64x32xf32>, vector<4x32xf32> -> vector<4x32xf32>
    %586 = vector.broadcast %333 : vector<1x32xf32> to vector<4x32xf32>
    %587 = arith.addf %585, %586 : vector<4x32xf32>
    %588 = arith.addf %579, %587 : vector<4x32xf32>
    %cst_192 = arith.constant dense<0.000000e+00> : vector<4xf32>
    %589 = vector.multi_reduction <add>, %588, %cst_192 [1] : vector<4x32xf32> to vector<4xf32>
    %590 = vector.shape_cast %589 : vector<4xf32> to vector<4x1xf32>
    %cst_193 = arith.constant 3.200000e+01 : f32
    %591 = vector.broadcast %cst_193 : f32 to vector<4x1xf32>
    %592 = arith.divf %590, %591 : vector<4x1xf32>
    %593 = vector.broadcast %592 : vector<4x1xf32> to vector<4x32xf32>
    %594 = arith.subf %588, %593 : vector<4x32xf32>
    %595 = arith.mulf %594, %594 : vector<4x32xf32>
    %cst_194 = arith.constant dense<0.000000e+00> : vector<4xf32>
    %596 = vector.multi_reduction <add>, %595, %cst_194 [1] : vector<4x32xf32> to vector<4xf32>
    %597 = vector.shape_cast %596 : vector<4xf32> to vector<4x1xf32>
    %cst_195 = arith.constant 3.200000e+01 : f32
    %598 = vector.broadcast %cst_195 : f32 to vector<4x1xf32>
    %599 = arith.divf %597, %598 : vector<4x1xf32>
    %600 = vector.broadcast %592 : vector<4x1xf32> to vector<4x32xf32>
    %601 = arith.subf %588, %600 : vector<4x32xf32>
    %cst_196 = arith.constant 9.99999974E-6 : f32
    %602 = vector.broadcast %cst_196 : f32 to vector<4x1xf32>
    %603 = arith.addf %599, %602 : vector<4x1xf32>
    %604 = math.rsqrt %603 : vector<4x1xf32>
    %605 = vector.broadcast %604 : vector<4x1xf32> to vector<4x32xf32>
    %606 = arith.mulf %601, %605 : vector<4x32xf32>
    %607 = vector.broadcast %336 : vector<1x32xf32> to vector<4x32xf32>
    %608 = arith.mulf %606, %607 : vector<4x32xf32>
    %609 = vector.broadcast %337 : vector<1x32xf32> to vector<4x32xf32>
    %610 = arith.addf %608, %609 : vector<4x32xf32>
    %cst_197 = arith.constant dense<0.000000e+00> : vector<4xf32>
    %611 = vector.multi_reduction <add>, %610, %cst_197 [1] : vector<4x32xf32> to vector<4xf32>
    %612 = vector.shape_cast %611 : vector<4xf32> to vector<4x1xf32>
    %cst_198 = arith.constant 3.200000e+01 : f32
    %613 = vector.broadcast %cst_198 : f32 to vector<4x1xf32>
    %614 = arith.divf %612, %613 : vector<4x1xf32>
    %615 = vector.broadcast %614 : vector<4x1xf32> to vector<4x32xf32>
    %616 = arith.subf %610, %615 : vector<4x32xf32>
    %617 = arith.mulf %616, %616 : vector<4x32xf32>
    %cst_199 = arith.constant dense<0.000000e+00> : vector<4xf32>
    %618 = vector.multi_reduction <add>, %617, %cst_199 [1] : vector<4x32xf32> to vector<4xf32>
    %619 = vector.shape_cast %618 : vector<4xf32> to vector<4x1xf32>
    %cst_200 = arith.constant 3.200000e+01 : f32
    %620 = vector.broadcast %cst_200 : f32 to vector<4x1xf32>
    %621 = arith.divf %619, %620 : vector<4x1xf32>
    %622 = vector.broadcast %614 : vector<4x1xf32> to vector<4x32xf32>
    %623 = arith.subf %610, %622 : vector<4x32xf32>
    %cst_201 = arith.constant 9.99999974E-6 : f32
    %624 = vector.broadcast %cst_201 : f32 to vector<4x1xf32>
    %625 = arith.addf %621, %624 : vector<4x1xf32>
    %626 = math.rsqrt %625 : vector<4x1xf32>
    %627 = vector.broadcast %626 : vector<4x1xf32> to vector<4x32xf32>
    %628 = arith.mulf %623, %627 : vector<4x32xf32>
    %629 = vector.broadcast %338 : vector<1x32xf32> to vector<4x32xf32>
    %630 = arith.mulf %628, %629 : vector<4x32xf32>
    %631 = vector.broadcast %339 : vector<1x32xf32> to vector<4x32xf32>
    %632 = arith.addf %630, %631 : vector<4x32xf32>
    %c1_202 = arith.constant 1 : index
    %c8_203 = arith.constant 8 : index
    %c0_204 = arith.constant 0 : index
    %633 = vector.load %arg9[%c1_202, %c8_203, %c0_204] : memref<2x12x32xf32, #tpu.memory_space<vmem>>, vector<1x4x32xf32>
    %634 = vector.shape_cast %633 : vector<1x4x32xf32> to vector<4x32xf32>
    %635 = vector.shape_cast %632 : vector<4x32xf32> to vector<1x4x32xf32>
    tpu.vector_store %arg9[%c1_202, %c8_203, %c0_204], %635 {strides = array<i32>} : memref<2x12x32xf32, #tpu.memory_space<vmem>>, vector<1x4x32xf32>,
    return
  }
  func.func @transform_0(%arg0: i32) -> (i32, i32, i32) {
    %c0_i32 = arith.constant 0 : i32
    %c0_i32_0 = arith.constant 0 : i32
    %c0_i32_1 = arith.constant 0 : i32
    %c0_i32_2 = arith.constant 0 : i32
    return %c0_i32, %c0_i32_0, %c0_i32_1 : i32, i32, i32
  }
  func.func @transform_1(%arg0: i32) -> (i32, i32, i32) {
    %c0_i32 = arith.constant 0 : i32
    %c0_i32_0 = arith.constant 0 : i32
    %c0_i32_1 = arith.constant 0 : i32
    %c0_i32_2 = arith.constant 0 : i32
    return %c0_i32, %c0_i32_0, %c0_i32_1 : i32, i32, i32
  }
  func.func @transform_2(%arg0: i32) -> (i32, i32, i32) {
    %c0_i32 = arith.constant 0 : i32
    %c0_i32_0 = arith.constant 0 : i32
    %c0_i32_1 = arith.constant 0 : i32
    %c0_i32_2 = arith.constant 0 : i32
    return %c0_i32, %c0_i32_0, %c0_i32_1 : i32, i32, i32
  }
  func.func @transform_3(%arg0: i32) -> (i32, i32, i32) {
    %c0_i32 = arith.constant 0 : i32
    %c0_i32_0 = arith.constant 0 : i32
    %c0_i32_1 = arith.constant 0 : i32
    %c0_i32_2 = arith.constant 0 : i32
    return %c0_i32, %c0_i32_0, %c0_i32_1 : i32, i32, i32
  }
  func.func @transform_4(%arg0: i32) -> (i32, i32, i32) {
    %c0_i32 = arith.constant 0 : i32
    %c0_i32_0 = arith.constant 0 : i32
    %c0_i32_1 = arith.constant 0 : i32
    %c0_i32_2 = arith.constant 0 : i32
    return %c0_i32, %c0_i32_0, %c0_i32_1 : i32, i32, i32
  }
  func.func @transform_5(%arg0: i32) -> (i32, i32, i32) {
    %c0_i32 = arith.constant 0 : i32
    %c0_i32_0 = arith.constant 0 : i32
    %c0_i32_1 = arith.constant 0 : i32
    %c0_i32_2 = arith.constant 0 : i32
    return %c0_i32, %c0_i32_0, %c0_i32_1 : i32, i32, i32
  }
  func.func @transform_6(%arg0: i32) -> (i32, i32, i32) {
    %c0_i32 = arith.constant 0 : i32
    %c0_i32_0 = arith.constant 0 : i32
    %c0_i32_1 = arith.constant 0 : i32
    %c0_i32_2 = arith.constant 0 : i32
    return %c0_i32, %c0_i32_0, %c0_i32_1 : i32, i32, i32
  }
  func.func @transform_7(%arg0: i32) -> (i32, i32, i32) {
    %c0_i32 = arith.constant 0 : i32
    %c0_i32_0 = arith.constant 0 : i32
    %c0_i32_1 = arith.constant 0 : i32
    %c0_i32_2 = arith.constant 0 : i32
    return %c0_i32, %c0_i32_0, %c0_i32_1 : i32, i32, i32
  }
  func.func @transform_8(%arg0: i32) -> (i32, i32, i32) {
    %c0_i32 = arith.constant 0 : i32
    %c0_i32_0 = arith.constant 0 : i32
    %c0_i32_1 = arith.constant 0 : i32
    %c0_i32_2 = arith.constant 0 : i32
    return %c0_i32, %c0_i32_0, %c0_i32_1 : i32, i32, i32
  }
}

</mosaic_0001>

<bundles_post_ra>
// kernel: tpu_custom_call.1
= control target key start
LH: loop header
LB: loop body
LE: loop exit
PB: predicated region body
PF: predicated region fallthrough
CT: control target
= control target key end

     0   :  { %13 = vsyncpa [#allocation3], 0  ;;  %s6062_s0 = inlined_call_operand.hbm [shape: f32[2,8,32], index: 0, kind: input, shape index: {}]   ;;  %s6063_s1 = inlined_call_operand.vmem [shape: f32[2,32,96], index: 1, kind: input, shape index: {}]   ;;  %s6064_s2 = inlined_call_operand.vmem [shape: f32[2,1,96], index: 2, kind: input, shape index: {}]   ;;  %s6065_s3 = inlined_call_operand.vmem [shape: f32[2,32,32], index: 3, kind: input, shape index: {}]   ;;  %s6066_s4 = inlined_call_operand.vmem [shape: f32[2,32,64], index: 4, kind: input, shape index: {}]   ;;  %s6067_s5 = inlined_call_operand.hbm [shape: f32[2,1,64], index: 5, kind: input, shape index: {}]   ;;  %s6068_s6 = inlined_call_operand.vmem [shape: f32[2,64,32], index: 6, kind: input, shape index: {}]   ;;  %s6069_s7 = inlined_call_operand.vmem [shape: f32[2,8,32], index: 7, kind: input, shape index: {}]   ;;  %s6070_s8 = inlined_call_operand.vmem [shape: f32[2,12,32], index: 8, kind: output, shape index: {}]  }
   0x1   :  { %14 = vsyncpa [#allocation5], 0  ;;  %s5194_s27 = smov [#allocation2]   ;;  %s5146_s9 = scalar_lea.hbm %s6062_s0, 256 }
   0x2   :  { %s20_s28 = sshll.u32 %s5194_s27, 4  ;;  %p5147_p0 = scmp.ne.s32.totalorder %s6062_s0, %s5146_s9  ;;  %s21_s28 = int_to_ptr.vmem [resolvable:$true] %s20_s28 }
   0x3   :  { %p5150_p1 = scmp.lt.u32.totalorder %s5146_s9, %s6062_s0 }
   0x5   :  { %p5152_p2 = pnand %p5150_p1, %p5147_p0 }
   0x7   :  { %5155 = shalt.err (!%p5152_p2)
}
   0x8   :  { %s5156_s14 = scalar_lea.vmem %s21_s28, 256  ;;  %p5161_p4 = scmp.lt.s32.totalorder %s21_s28, %s21_s28 }
   0x9   :  { %p5157_p3 = scmp.ne.s32.totalorder %s21_s28, %s5156_s14  ;;  %p5162_p5 = scmp.lt.s32.totalorder %s5156_s14, %s5156_s14 }
   0xb   :  { %p5163_p6 = por %p5162_p5, %p5161_p4 }
   0xd   :  { %p5164_p7 = pnand %p5163_p6, %p5157_p3 }
   0xf   :  { %5167 = shalt.err (!%p5164_p7)
}
  0x10   :  { %s5195_s15 = smov 128   ;;  %s5196_s16 = smov 8  }
  0x11   :  { %26 = dma.hbm_to_vmem [thread:$0]  %s6062_s0, 256, %s21_s28, [#allocation3], %s5195_s15, %s5195_s15, %s5196_s16  }
  0x12   :  { %s5197_s19 = smov [#allocation4]   ;;  %s5168_s23 = scalar_lea.hbm %s6067_s5, 32 }
  0x13   :  { %s40_s20 = sshll.u32 %s5197_s19, 4  ;;  %p5169_p8 = scmp.ne.s32.totalorder %s6067_s5, %s5168_s23  ;;  %s41_s20 = int_to_ptr.vmem [resolvable:$true] %s40_s20 }
  0x14   :  { %p5172_p9 = scmp.lt.u32.totalorder %s5168_s23, %s6067_s5 }
  0x16   :  { %p5174_p10 = pnand %p5172_p9, %p5169_p8 }
  0x18   :  { %5177 = shalt.err (!%p5174_p10)
}
  0x19   :  { %s5178_s29 = scalar_lea.vmem %s41_s20, 32  ;;  %p5183_p12 = scmp.lt.s32.totalorder %s41_s20, %s41_s20 }
  0x1a   :  { %p5179_p11 = scmp.ne.s32.totalorder %s41_s20, %s5178_s29  ;;  %p5184_p13 = scmp.lt.s32.totalorder %s5178_s29, %s5178_s29 }
  0x1c   :  { %p5185_p0 = por %p5184_p13, %p5183_p12 }
  0x1e   :  { %p5186_p1 = pnand %p5185_p0, %p5179_p11 }
  0x20   :  { %5189 = shalt.err (!%p5186_p1)
}
  0x21   :  { %s5198_s0 = smov 16   ;;  %s5199_s28 = smov 1  }
  0x22   :  { %46 = dma.hbm_to_vmem [thread:$0]  %s6067_s5, 32, %s41_s20, [#allocation5], %s5198_s0, %s5198_s0, %s5199_s28  }
  0x23   :  { %5190 = dma.done.wait [#allocation3], 256  }
  0x24   :  { %5191 = vsyncadd [#allocation3], 4294967040 }
  0x25   :  { %5192 = dma.done.wait [#allocation5], 32  }
  0x26   :  { %5193 = vsyncadd [#allocation5], 4294967264  ;;  %v5200_v0 = vmov 0.0|0.0   ;;  %vm5201_vm0 = vmmov 0   ;;  %v5202_v1 = vmov 0.0   ;;  %v57_v2 = vld [vmem:[%s6063_s1] sm:$0xff] }
  0x27   :  { %4916 = vmatprep.subr.bf16.mxu1 %v5200_v0  ;;  %4556 = vmatprep.mubr.msk.f32.mxu1 %vm5201_vm0, %v5202_v1  ;;  %v58_v3 = vld [vmem:[%s6063_s1 + $0x8] sm:$0xff]  ;;  %v59_v4 = vld [vmem:[%s6063_s1 + $0x10] sm:$0xff]  ;;  %v60_v6 = vld [vmem:[%s6063_s1 + $0x18] sm:$0xff]  ;;  %vm87_vm1 = vcmask 261120   ;;  %s5203_s20 = smov 120   ;;  %s5204_s21 = smov 96  }
  0x28   :  { %4569 = vmatprep.subr.mxu0 %v5202_v1  ;;  %4571 = vmatprep.mubr.msk.f32.mxu0 %vm5201_vm0, %v5202_v1  ;;  %v5302_v5 = vpack.c.bf16 %v58_v3, %v57_v2  ;;  %v5308_v7 = vpack.c.bf16 %v60_v6, %v59_v4  ;;  %v5312_v8 = vld [vmem:[#allocation2] sm:$0xff]  ;;  %s5205_s22 = smov 80   ;;  %s5206_s23 = smov 88   ;;  %vm164_vm2 = vcmask 64512   ;;  %vm834_vm3 = vcmask 130048  }
  0x29   :  { %v5322_v9 = vld [vmem:[%s6064_s2] ss:$0 sm:$0xff]  ;;  %s5207_s24 = smov 72   ;;  %s5208_s25 = smov 112   ;;  %vm836_vm4 = vcmask 195584   ;;  %vm1024_vm5 = vcmask 523264  }
  0x2a   :  { %4918 = vmatpush3.bf16.msra.mxu1 %v5302_v5  ;;  %s5209_s26 = smov 104   ;;  %s5210_s27 = smov 56   ;;  %vm2351_vm6 = vcmask 27648   ;;  %vm2369_vm7 = vcmask 1043456   ;;  %vm2365_vm8 = vcmask 31744   ;;  %vm3033_vm9 = vcmask 257024  }
  0x2b   :  { %4919 = vmatprep.subr.bf16.mxu1 %v5200_v0  ;;  %s5211_s29 = smov 64   ;;  %s5212_s28 = smov 48  }
  0x2c   :  { %s5213_s30 = smov 40   ;;  %s5214_s17 = smov 24  }
  0x2e   :  { %4921 = vmatpush3.bf16.msra.mxu1 %v5308_v7 }
  0x2f   :  { %4559 = vmatprep.subr.mxu1 %v5202_v1 }
  0x31   :  { %4557 = vmatmul.mubr.msk.f32.vlgmr.msra.gmra.mrb[0].mxu1 %vm87_vm1, %v5312_v8 }
  0x32   :  { %4561 = vmatprep.mubr.msk.f32.mxu1 %vm5201_vm0, %v5202_v1 }
 0x104   :  { %v157_v10 = vpop.f32.mrb[0].mxu1 }
 0x105   :  { %v5325_v11 = vadd.f32 %v5322_v9, %v157_v10  ;;  %v4558_v12 = vpop.f32.mrb[1].mxu1  ;;  %v62_v10 = vld [vmem:[%s6065_s3] sm:$0xff] }
 0x107   :  { %326 = vrot.lane.b32.xlu1 %v5325_v11, %s5203_s20  ;;  %162 = vrot.lane.b32.xlu0 %v5325_v11, %s5204_s21 }
 0x10b   :  { %493 = vrot.lane.b32.xlu1 %v5325_v11, %s5205_s22  ;;  %328 = vrot.lane.b32.xlu0 %v5325_v11, %s5206_s23 }
 0x10f   :  { %658 = vrot.lane.b32.xlu1 %v5325_v11, %s5207_s24  ;;  %491 = vrot.lane.b32.xlu0 %v5325_v11, %s5208_s25 }
 0x113   :  { %656 = vrot.lane.b32.xlu0 %v5325_v11, %s5209_s26 }
 0x179   :  { %v327_v13 = vpop.permute.xlu1 %326  ;;  %v163_v14 = vpop.permute.xlu0 %162 }
 0x17a   :  { %4560 = vmatpush3.xpose.msk.msra.mxu1 %vm164_vm2, %v163_v14 }
 0x17b   :  { %4564 = vmatprep.subr.mxu1 %v5202_v1 }
 0x17d   :  { %4562 = vmatmul.mubr.msk.f32.vlgmr.msra.gmra.mrb[2].mxu1 %vm164_vm2, %v5325_v11  ;;  %v329_v15 = vpop.permute.xlu0 %328  ;;  %v494_v16 = vpop.permute.xlu1 %493 }
 0x17e   :  { %4570 = vmatpush3.xpose.msk.msra.mxu0 %vm164_vm2, %v329_v15  ;;  %4566 = vmatprep.mubr.msk.f32.mxu1 %vm5201_vm0, %v5202_v1 }
 0x17f   :  { %4579 = vmatprep.subr.mxu0 %v5202_v1 }
 0x181   :  { %4572 = vmatmul.mubr.msk.f32.vlgmr.msra.gmra.mrb[0].mxu0 %vm164_vm2, %v327_v13  ;;  %v492_v17 = vpop.permute.xlu0 %491  ;;  %v659_v18 = vpop.permute.xlu1 %658 }
 0x182   :  { %4580 = vmatpush3.xpose.msk.msra.mxu0 %vm164_vm2, %v494_v16  ;;  %4581 = vmatprep.mubr.msk.f32.mxu0 %vm5201_vm0, %v5202_v1 }
 0x183   :  { %4589 = vmatprep.subr.mxu0 %v5202_v1 }
 0x185   :  { %4582 = vmatmul.mubr.msk.f32.vlgmr.msra.gmra.mrb[2].mxu0 %vm164_vm2, %v492_v17  ;;  %v657_v19 = vpop.permute.xlu0 %656  ;;  %v64_v17 = vld [vmem:[%s6065_s3 + $0x10] sm:$0xff] }
 0x186   :  { %4590 = vmatpush3.xpose.msk.msra.mxu0 %vm164_vm2, %v659_v18  ;;  %4591 = vmatprep.mubr.msk.f32.mxu0 %vm5201_vm0, %v5202_v1  ;;  %v65_v18 = vld [vmem:[%s6065_s3 + $0x18] sm:$0xff] }
 0x187   :  { %4922 = vmatprep.subr.bf16.mxu0 %v5200_v0 }
 0x189   :  { %4592 = vmatmul.mubr.msk.f32.vlgmr.msra.gmra.mrb[4].mxu0 %vm164_vm2, %v657_v19  ;;  %v5411_v19 = vpack.c.bf16 %v65_v18, %v64_v17 }
 0x18a   :  { %4607 = vmatprep.mubr.msk.f32.mxu0 %vm5201_vm0, %v5202_v1 }
 0x250   :  { %v235_v20 = vpop.f32.mrb[2].mxu1 }
 0x251   :  { %v4563_v21 = vpop.f32.mrb[3].mxu1  ;;  %v239_v22 = vsel %vm164_vm2, %v235_v20, -inf }
 0x252   :  { %240 = vmax.xlane.f32.xlu1 %v239_v22 }
 0x254   :  { %v400_v23 = vpop.f32.mrb[0].mxu0 }
 0x255   :  { %v4573_v24 = vpop.f32.mrb[1].mxu0  ;;  %v404_v25 = vsel %vm164_vm2, %v400_v23, -inf }
 0x256   :  { %405 = vmax.xlane.f32.xlu0 %v404_v25 }
 0x258   :  { %v565_v26 = vpop.f32.mrb[2].mxu0 }
 0x259   :  { %v4583_v27 = vpop.f32.mrb[3].mxu0  ;;  %v569_v28 = vsel %vm164_vm2, %v565_v26, -inf }
 0x25a   :  { %570 = vmax.xlane.f32.xlu0 %v569_v28 }
 0x25c   :  { %v730_v29 = vpop.f32.mrb[4].mxu0 }
 0x25d   :  { %v4593_v30 = vpop.f32.mrb[5].mxu0  ;;  %v734_v31 = vsel %vm164_vm2, %v730_v29, -inf }
 0x25e   :  { %735 = vmax.xlane.f32.xlu1 %v734_v31  ;;  %v838_v30 = vlaneseq }
 0x260   :  { %v5423_v31 = vshrl.u32 %v838_v30, 7 }
 0x26f   :  { %415 = vrot.lane.b32.xlu1 %v5325_v11, %s5210_s27 }
 0x2df   :  { %v241_v32 = vpop.xlane.xlu1 %240 }
 0x2e0   :  { %v242_v33 = vsub.f32 %v235_v20, %v241_v32  ;;  %v840_v32 = vsub.s32 0, %v5423_v31 }
 0x2e2   :  { %v243_v34 = vmul.f32 1.442695, %v242_v33  ;;  %v79_v33 = vld [vmem:[%s6069_s7] sm:$0xff] }
 0x2e3   :  { %v406_v35 = vpop.xlane.xlu0 %405 }
 0x2e4   :  { %5057 = vpow2.f32 %v243_v34  ;;  %v407_v36 = vsub.f32 %v400_v23, %v406_v35  ;;  %v5431_v34 = vrot.slane %v79_v33, %v840_v32 }
 0x2e6   :  { %v408_v37 = vmul.f32 1.442695, %v407_v36 }
 0x2e7   :  { %v571_v47 = vpop.xlane.xlu0 %570 }
 0x2e8   :  { %5059 = vpow2.f32 %v408_v37  ;;  %v572_v48 = vsub.f32 %v565_v26, %v571_v47 }
 0x2ea   :  { %v573_v49 = vmul.f32 1.442695, %v572_v48  ;;  %v69_v48 = vld [vmem:[%s6066_s4 + $0x18] sm:$0xff] }
 0x2eb   :  { %v736_v38 = vpop.xlane.xlu1 %735 }
 0x2ec   :  { %v737_v39 = vsub.f32 %v730_v29, %v736_v38 }
 0x2ee   :  { %v5058_v40 = vpop.eup %5057  ;;  %v738_v41 = vmul.f32 1.442695, %v737_v39 }
 0x2ef   :  { %v245_v42 = vsel %vm164_vm2, %v5058_v40, 0.0  ;;  %v416_v52 = vpop.permute.xlu1 %415 }
 0x2f0   :  { %5061 = vpow2.f32 %v738_v41  ;;  %246 = vadd.xlane.f32.xlu0 %v245_v42 }
 0x2f1   :  { %5063 = vpow2.f32 %v573_v49 }
 0x2f2   :  { %v5060_v43 = vpop.eup %5059 }
 0x2f3   :  { %v410_v44 = vsel %vm164_vm2, %v5060_v43, 0.0 }
 0x2f4   :  { %411 = vadd.xlane.f32.xlu1 %v410_v44 }
 0x2fa   :  { %v5062_v45 = vpop.eup %5061 }
 0x2fb   :  { %v740_v46 = vsel %vm164_vm2, %v5062_v45, 0.0  ;;  %v5064_v50 = vpop.eup %5063 }
 0x2fc   :  { %741 = vadd.xlane.f32.xlu1 %v740_v46  ;;  %v575_v51 = vsel %vm164_vm2, %v5064_v50, 0.0  ;;  %v67_v46 = vld [vmem:[%s6066_s4 + $0x8] sm:$0xff] }
 0x306   :  { %250 = vrot.lane.b32.xlu0 %v5325_v11, %s5211_s29 }
 0x30d   :  { %580 = vrot.lane.b32.xlu1 %v5325_v11, %s5212_s28 }
 0x325   :  { %576 = vadd.xlane.f32.xlu0 %v575_v51  ;;  %v72_v51 = vld [vmem:[%s6068_s6 + $0x8] sm:$0xff] }
 0x33b   :  { %745 = vrot.lane.b32.xlu0 %v5325_v11, %s5213_s30  ;;  %v63_v11 = vld [vmem:[%s6065_s3 + $0x8] sm:$0xff] }
 0x33c   :  { %v5400_v12 = vpack.c.bf16 %v63_v11, %v62_v10 }
 0x33e   :  { %4924 = vmatpush3.bf16.msra.mxu0 %v5400_v12 }
 0x33f   :  { %4925 = vmatprep.subr.bf16.mxu0 %v5200_v0 }
 0x342   :  { %4927 = vmatpush3.bf16.msra.mxu0 %v5411_v19 }
 0x343   :  { %4934 = vmatprep.subr.bf16.mxu0 %v5200_v0 }
 0x37d   :  { %v247_v53 = vpop.xlane.xlu0 %246 }
 0x37e   :  { %5065 = vrcp.f32 %v247_v53 }
 0x381   :  { %v251_v54 = vpop.permute.xlu0 %250  ;;  %v412_v55 = vpop.xlane.xlu1 %411 }
 0x382   :  { %5067 = vrcp.f32 %v412_v55  ;;  %4565 = vmatpush3.msra.mxu1 %v251_v54  ;;  %v74_v54 = vld [vmem:[%s6068_s6 + $0x18] sm:$0xff] }
 0x383   :  { %4574 = vmatprep.subr.mxu1 %v5202_v1 }
 0x388   :  { %v5066_v56 = vpop.eup %5065 }
 0x389   :  { %v742_v57 = vpop.xlane.xlu1 %741  ;;  %v249_v58 = vmul.f32 %v5066_v56, %v5058_v40  ;;  %v75_v56 = vld [vmem:[%s6068_s6 + $0x20] sm:$0xff] }
 0x38b   :  { %4567 = vmatmul.mubr.msk.f32.vlgmr.msra.gmra.mrb[4].mxu1 %vm164_vm2, %v249_v58 }
 0x38c   :  { %v5068_v59 = vpop.eup %5067  ;;  %4575 = vmatpush3.msra.mxu1 %v416_v52  ;;  %4576 = vmatprep.mubr.msk.f32.mxu1 %vm5201_vm0, %v5202_v1  ;;  %v73_v52 = vld [vmem:[%s6068_s6 + $0x10] sm:$0xff] }
 0x38d   :  { %v414_v60 = vmul.f32 %v5068_v59, %v5060_v43  ;;  %v581_v61 = vpop.permute.xlu1 %580  ;;  %4584 = vmatprep.subr.mxu1 %v5202_v1  ;;  %v5472_v55 = vpack.c.bf16 %v74_v54, %v73_v52 }
 0x38f   :  { %4577 = vmatmul.mubr.msk.f32.vlgmr.msra.gmra.mrb[6].mxu1 %vm164_vm2, %v414_v60 }
 0x390   :  { %4585 = vmatpush3.msra.mxu1 %v581_v61  ;;  %4586 = vmatprep.mubr.msk.f32.mxu1 %vm5201_vm0, %v5202_v1 }
 0x391   :  { %4594 = vmatprep.subr.mxu1 %v5202_v1 }
 0x3b2   :  { %v577_v62 = vpop.xlane.xlu0 %576 }
 0x3b3   :  { %5069 = vrcp.f32 %v577_v62  ;;  %v932_v62 = vsub.s32 2, %v5423_v31 }
 0x3b4   :  { %5071 = vrcp.f32 %v742_v57  ;;  %v76_v57 = vld [vmem:[%s6068_s6 + $0x28] sm:$0xff] }
 0x3b5   :  { %v5482_v58 = vpack.c.bf16 %v76_v57, %v75_v56 }
 0x3b6   :  { %v746_v4 = vpop.permute.xlu0 %745 }
 0x3bd   :  { %v5070_v63 = vpop.eup %5069 }
 0x3be   :  { %v579_v2 = vmul.f32 %v5070_v63, %v5064_v50  ;;  %v5072_v3 = vpop.eup %5071  ;;  %v71_v50 = vld [vmem:[%s6068_s6] sm:$0xff]  ;;  %v937_v63 = vsub.s32 3, %v5423_v31 }
 0x3bf   :  { %v744_v6 = vmul.f32 %v5072_v3, %v5062_v45  ;;  %v66_v45 = vld [vmem:[%s6066_s4] sm:$0xff]  ;;  %v5466_v53 = vpack.c.bf16 %v72_v51, %v71_v50 }
 0x3c0   :  { %4587 = vmatmul.mubr.msk.f32.vlgmr.msra.gmra.mrb[8].mxu1 %vm164_vm2, %v579_v2  ;;  %v5443_v47 = vpack.c.bf16 %v67_v46, %v66_v45  ;;  %v5491_v2 = vrot.slane %v79_v33, %v932_v62 }
 0x3c1   :  { %4595 = vmatpush3.msra.mxu1 %v746_v4  ;;  %4596 = vmatprep.mubr.msk.f32.mxu1 %vm5201_vm0, %v5202_v1 }
 0x3c2   :  { %4928 = vmatprep.subr.bf16.mxu1 %v5200_v0 }
 0x3c4   :  { %4597 = vmatmul.mubr.msk.f32.vlgmr.msra.gmra.mrb[10].mxu1 %vm164_vm2, %v744_v6  ;;  %v5495_v6 = vrot.slane %v79_v33, %v937_v63 }
 0x3c5   :  { %4618 = vmatprep.mubr.msk.f32.mxu1 %vm5201_vm0, %v5202_v1  ;;  %4930 = vmatpush3.bf16.msra.mxu1 %v5443_v47 }
 0x3c6   :  { %4931 = vmatprep.subr.bf16.mxu1 %v5200_v0 }
 0x45e   :  { %v322_v13 = vpop.f32.mrb[4].mxu1 }
 0x45f   :  { %v4568_v14 = vpop.f32.mrb[5].mxu1 }
 0x460   :  { %v78_v14 = vld [vmem:[%s6068_s6 + $0x38] sm:$0xff] }
 0x462   :  { %v487_v15 = vpop.f32.mrb[6].mxu1 }
 0x463   :  { %822 = vrot.lane.b32.xlu1 %v487_v15, %s5196_s16  ;;  %v4578_v16 = vpop.f32.mrb[7].mxu1 }
 0x493   :  { %v652_v20 = vpop.f32.mrb[8].mxu1 }
 0x494   :  { %826 = vrot.lane.b32.xlu0 %v652_v20, %s5198_s0  ;;  %v4588_v21 = vpop.f32.mrb[9].mxu1 }
 0x497   :  { %v817_v22 = vpop.f32.mrb[10].mxu1 }
 0x498   :  { %830 = vrot.lane.b32.xlu1 %v817_v22, %s5214_s17  ;;  %v4598_v23 = vpop.f32.mrb[11].mxu1 }
 0x4d5   :  { %v823_v24 = vpop.permute.xlu1 %822 }
 0x4d6   :  { %v833_v26 = vsel %vm164_vm2, %v322_v13, %v823_v24  ;;  %v5508_v13 = vld [vmem:[#allocation2 + $0x8] sm:$0xff] }
 0x506   :  { %v827_v25 = vpop.permute.xlu0 %826 }
 0x507   :  { %v835_v27 = vsel %vm834_vm3, %v833_v26, %v827_v25 }
 0x50a   :  { %v831_v28 = vpop.permute.xlu1 %830 }
 0x50b   :  { %v837_v29 = vsel %vm836_vm4, %v835_v27, %v831_v28 }
 0x50c   :  { %4608 = vmatmul.mubr.msk.f32.vlgmr.msra.gmra.mrb[6].mxu0 %vm87_vm1, %v837_v29 }
 0x50d   :  { %4637 = vmatprep.mubr.msk.f32.mxu0 %vm5201_vm0, %v5202_v1  ;;  %4936 = vmatpush3.bf16.msra.mxu0 %v5466_v53 }
 0x50e   :  { %4937 = vmatprep.subr.bf16.mxu0 %v5200_v0 }
 0x511   :  { %4939 = vmatpush3.bf16.msra.mxu0 %v5472_v55 }
 0x512   :  { %4940 = vmatprep.subr.bf16.mxu0 %v5200_v0 }
 0x515   :  { %4942 = vmatpush3.bf16.msra.mxu0 %v5482_v58 }
 0x516   :  { %4943 = vmatprep.subr.bf16.mxu0 %v5200_v0 }
 0x5df   :  { %v911_v35 = vpop.f32.mrb[6].mxu0 }
 0x5e0   :  { %v912_v36 = vadd.f32 %v911_v35, %v5431_v34  ;;  %v4609_v37 = vpop.f32.mrb[7].mxu0 }
 0x5e2   :  { %v915_v38 = vadd.f32 %v912_v36, %v5312_v8  ;;  %v68_v8 = vld [vmem:[%s6066_s4 + $0x10] sm:$0xff] }
 0x5e3   :  { %v5453_v49 = vpack.c.bf16 %v69_v48, %v68_v8 }
 0x5e4   :  { %v916_v39 = vsel %vm87_vm1, %v915_v38, 0.0 }
 0x5e5   :  { %917 = vadd.xlane.f32.xlu0 %v916_v39  ;;  %4933 = vmatpush3.bf16.msra.mxu1 %v5453_v49 }
 0x5e6   :  { %4946 = vmatprep.subr.bf16.mxu1 %v5200_v0 }
 0x672   :  { %v918_v40 = vpop.xlane.xlu0 %917 }
 0x673   :  { %v920_v41 = vmul.f32 0.03125, %v918_v40 }
 0x675   :  { %v921_v42 = vsub.f32 %v915_v38, %v920_v41 }
 0x677   :  { %v922_v43 = vmul.f32 %v921_v42, %v921_v42 }
 0x679   :  { %v923_v44 = vsel %vm87_vm1, %v922_v43, 0.0 }
 0x67a   :  { %924 = vadd.xlane.f32.xlu1 %v923_v44 }
 0x707   :  { %v925_v59 = vpop.xlane.xlu1 %924 }
 0x708   :  { %v926_v60 = vmul.f32 0.03125, %v925_v59 }
 0x70a   :  { %v927_v61 = vadd.f32 1e-05, %v926_v60 }
 0x70c   :  { %5073 = vrsqrt.f32 %v927_v61 }
 0x716   :  { %v5074_v3 = vpop.eup %5073 }
 0x717   :  { %v929_v4 = vmul.f32 %v5074_v3, %v921_v42 }
 0x719   :  { %v934_v10 = vmul.f32 %v5491_v2, %v929_v4 }
 0x71b   :  { %v5499_v11 = vadd.f32 %v5495_v6, %v934_v10 }
 0x71d   :  { %4619 = vmatmul.mubr.msk.f32.vlgmr.msra.gmra.mrb[12].mxu1 %vm87_vm1, %v5499_v11 }
 0x71e   :  { %4948 = vmatpush3.bf16.msra.mxu1 %v5302_v5  ;;  %4648 = vmatprep.mubr.msk.f32.mxu1 %vm5201_vm0, %v5202_v1  ;;  %v77_v5 = vld [vmem:[%s6068_s6 + $0x30] sm:$0xff] }
 0x71f   :  { %4949 = vmatprep.subr.bf16.mxu1 %v5200_v0  ;;  %v5521_v15 = vpack.c.bf16 %v78_v14, %v77_v5 }
 0x721   :  { %4945 = vmatpush3.bf16.msra.mxu0 %v5521_v15 }
 0x722   :  { %4951 = vmatpush3.bf16.msra.mxu1 %v5308_v7  ;;  %4661 = vmatprep.subr.mxu0 %v5202_v1  ;;  %v5525_v7 = vld [vmem:[#allocation4] ss:$0 sm:$0xff] }
 0x723   :  { %4651 = vmatprep.subr.mxu1 %v5202_v1 }
 0x725   :  { %4649 = vmatmul.mubr.msk.f32.vlgmr.msra.gmra.mrb[14].mxu1 %vm87_vm1, %v5508_v13 }
 0x726   :  { %4653 = vmatprep.mubr.msk.f32.mxu1 %vm5201_vm0, %v5202_v1 }
 0x7f0   :  { %v1015_v16 = vpop.f32.mrb[12].mxu1 }
 0x7f1   :  { %v1016_v17 = vadd.f32 %v5525_v7, %v1015_v16  ;;  %v4620_v18 = vpop.f32.mrb[13].mxu1 }
 0x7f3   :  { %v1019_v20 = vmax.f32 %v1016_v17, 0.0 }
 0x7f5   :  { %4638 = vmatmul.mubr.msk.f32.vlgmr.msra.gmra.mrb[8].mxu0 %vm1024_vm5, %v1019_v20 }
 0x7f6   :  { %4663 = vmatprep.mubr.msk.f32.mxu0 %vm5201_vm0, %v5202_v1 }
 0x7f8   :  { %v1217_v21 = vpop.f32.mrb[14].mxu1 }
 0x7f9   :  { %v5532_v22 = vadd.f32 %v5322_v9, %v1217_v21  ;;  %v4650_v23 = vpop.f32.mrb[15].mxu1 }
 0x7fb   :  { %1387 = vrot.lane.b32.xlu1 %v5532_v22, %s5206_s23  ;;  %1222 = vrot.lane.b32.xlu0 %v5532_v22, %s5204_s21 }
 0x7ff   :  { %1552 = vrot.lane.b32.xlu1 %v5532_v22, %s5205_s22  ;;  %1385 = vrot.lane.b32.xlu0 %v5532_v22, %s5203_s20 }
 0x803   :  { %1717 = vrot.lane.b32.xlu1 %v5532_v22, %s5207_s24  ;;  %1550 = vrot.lane.b32.xlu0 %v5532_v22, %s5208_s25 }
 0x807   :  { %1715 = vrot.lane.b32.xlu0 %v5532_v22, %s5209_s26 }
 0x86d   :  { %v1388_v9 = vpop.permute.xlu1 %1387  ;;  %v1223_v24 = vpop.permute.xlu0 %1222 }
 0x86e   :  { %4652 = vmatpush3.xpose.msk.msra.mxu1 %vm164_vm2, %v1223_v24  ;;  %4662 = vmatpush3.xpose.msk.msra.mxu0 %vm164_vm2, %v1388_v9 }
 0x86f   :  { %4671 = vmatprep.subr.mxu0 %v5202_v1  ;;  %4656 = vmatprep.subr.mxu1 %v5202_v1 }
 0x871   :  { %v1553_v25 = vpop.permute.xlu1 %1552  ;;  %4654 = vmatmul.mubr.msk.f32.vlgmr.msra.gmra.mrb[16].mxu1 %vm164_vm2, %v5532_v22  ;;  %v1386_v26 = vpop.permute.xlu0 %1385 }
 0x872   :  { %4664 = vmatmul.mubr.msk.f32.vlgmr.msra.gmra.mrb[10].mxu0 %vm164_vm2, %v1386_v26  ;;  %4658 = vmatprep.mubr.msk.f32.mxu1 %vm5201_vm0, %v5202_v1 }
 0x873   :  { %4672 = vmatpush3.xpose.msk.msra.mxu0 %vm164_vm2, %v1553_v25  ;;  %4673 = vmatprep.mubr.msk.f32.mxu0 %vm5201_vm0, %v5202_v1 }
 0x874   :  { %4681 = vmatprep.subr.mxu0 %v5202_v1 }
 0x875   :  { %v1718_v27 = vpop.permute.xlu1 %1717  ;;  %v1551_v28 = vpop.permute.xlu0 %1550 }
 0x876   :  { %4674 = vmatmul.mubr.msk.f32.vlgmr.msra.gmra.mrb[12].mxu0 %vm164_vm2, %v1551_v28 }
 0x877   :  { %4682 = vmatpush3.xpose.msk.msra.mxu0 %vm164_vm2, %v1718_v27  ;;  %4683 = vmatprep.mubr.msk.f32.mxu0 %vm5201_vm0, %v5202_v1 }
 0x878   :  { %4952 = vmatprep.subr.bf16.mxu0 %v5200_v0 }
 0x879   :  { %v1716_v29 = vpop.permute.xlu0 %1715 }
 0x87a   :  { %4684 = vmatmul.mubr.msk.f32.vlgmr.msra.gmra.mrb[14].mxu0 %vm164_vm2, %v1716_v29 }
 0x87b   :  { %4954 = vmatpush3.bf16.msra.mxu0 %v5400_v12  ;;  %4699 = vmatprep.mubr.msk.f32.mxu0 %vm5201_vm0, %v5202_v1 }
 0x87c   :  { %4955 = vmatprep.subr.bf16.mxu0 %v5200_v0 }
 0x87f   :  { %4957 = vmatpush3.bf16.msra.mxu0 %v5411_v19 }
 0x880   :  { %4964 = vmatprep.subr.bf16.mxu0 %v5200_v0 }
 0x8c8   :  { %v5573_v30 = vpop.f32.mrb[8].mxu0 }
 0x8c9   :  { %v4639_v33 = vpop.f32.mrb[9].mxu0 }
 0x944   :  { %v1294_v35 = vpop.f32.mrb[16].mxu1 }
 0x945   :  { %v4655_v36 = vpop.f32.mrb[17].mxu1  ;;  %v1459_v37 = vpop.f32.mrb[10].mxu0  ;;  %v1298_v38 = vsel %vm164_vm2, %v1294_v35, -inf }
 0x946   :  { %v4665_v39 = vpop.f32.mrb[11].mxu0  ;;  %1299 = vmax.xlane.f32.xlu1 %v1298_v38  ;;  %v1463_v12 = vsel %vm164_vm2, %v1459_v37, -inf }
 0x947   :  { %1464 = vmax.xlane.f32.xlu0 %v1463_v12 }
 0x949   :  { %v1624_v40 = vpop.f32.mrb[12].mxu0 }
 0x94a   :  { %v4675_v41 = vpop.f32.mrb[13].mxu0  ;;  %v1628_v42 = vsel %vm164_vm2, %v1624_v40, -inf }
 0x94b   :  { %1629 = vmax.xlane.f32.xlu0 %v1628_v42 }
 0x94d   :  { %v1789_v19 = vpop.f32.mrb[14].mxu0 }
 0x94e   :  { %v4685_v43 = vpop.f32.mrb[15].mxu0  ;;  %v1793_v44 = vsel %vm164_vm2, %v1789_v19, -inf }
 0x94f   :  { %1794 = vmax.xlane.f32.xlu1 %v1793_v44 }
 0x960   :  { %1474 = vrot.lane.b32.xlu1 %v5532_v22, %s5210_s27 }
 0x9d3   :  { %v1300_v45 = vpop.xlane.xlu1 %1299 }
 0x9d4   :  { %v1301_v46 = vsub.f32 %v1294_v35, %v1300_v45  ;;  %v1465_v8 = vpop.xlane.xlu0 %1464 }
 0x9d5   :  { %v1466_v48 = vsub.f32 %v1459_v37, %v1465_v8 }
 0x9d6   :  { %v1302_v50 = vmul.f32 1.442695, %v1301_v46 }
 0x9d7   :  { %v1467_v51 = vmul.f32 1.442695, %v1466_v48 }
 0x9d8   :  { %5075 = vpow2.f32 %v1302_v50  ;;  %v1630_v10 = vpop.xlane.xlu0 %1629 }
 0x9d9   :  { %5077 = vpow2.f32 %v1467_v51  ;;  %v1631_v5 = vsub.f32 %v1624_v40, %v1630_v10 }
 0x9db   :  { %v1632_v14 = vmul.f32 1.442695, %v1631_v5 }
 0x9dc   :  { %v1795_v52 = vpop.xlane.xlu1 %1794 }
 0x9dd   :  { %v1796_v54 = vsub.f32 %v1789_v19, %v1795_v52 }
 0x9df   :  { %v1797_v56 = vmul.f32 1.442695, %v1796_v54 }
 0x9e0   :  { %v1475_v18 = vpop.permute.xlu1 %1474 }
 0x9e1   :  { %5079 = vpow2.f32 %v1797_v56 }
 0x9e2   :  { %v5076_v57 = vpop.eup %5075  ;;  %5081 = vpow2.f32 %v1632_v14  ;;  %v4325_v14 = vld [vmem:[%s6063_s1 + $0x30] sm:$0xff] }
 0x9e3   :  { %v5078_v59 = vpop.eup %5077  ;;  %v1304_v60 = vsel %vm164_vm2, %v5076_v57, 0.0 }
 0x9e4   :  { %1305 = vadd.xlane.f32.xlu0 %v1304_v60  ;;  %v1469_v61 = vsel %vm164_vm2, %v5078_v59, 0.0 }
 0x9e5   :  { %1470 = vadd.xlane.f32.xlu1 %v1469_v61 }
 0x9eb   :  { %v5080_v3 = vpop.eup %5079 }
 0x9ec   :  { %v1799_v4 = vsel %vm164_vm2, %v5080_v3, 0.0  ;;  %v5082_v16 = vpop.eup %5081 }
 0x9ed   :  { %1800 = vadd.xlane.f32.xlu1 %v1799_v4  ;;  %v1634_v17 = vsel %vm164_vm2, %v5082_v16, 0.0 }
 0x9fa   :  { %1309 = vrot.lane.b32.xlu0 %v5532_v22, %s5211_s29 }
 0x9fe   :  { %1639 = vrot.lane.b32.xlu1 %v5532_v22, %s5212_s28 }
 0xa19   :  { %1635 = vadd.xlane.f32.xlu0 %v1634_v17 }
 0xa2f   :  { %1804 = vrot.lane.b32.xlu0 %v5532_v22, %s5213_s30 }
 0xa71   :  { %v1306_v20 = vpop.xlane.xlu0 %1305 }
 0xa72   :  { %5083 = vrcp.f32 %v1306_v20  ;;  %v1471_v21 = vpop.xlane.xlu1 %1470 }
 0xa73   :  { %5085 = vrcp.f32 %v1471_v21 }
 0xa75   :  { %v1310_v23 = vpop.permute.xlu0 %1309 }
 0xa76   :  { %4657 = vmatpush3.msra.mxu1 %v1310_v23  ;;  %v5671_v23 = vld [vmem:[%s6064_s2 + $0x1] ss:$0 sm:$0xff] }
 0xa77   :  { %4666 = vmatprep.subr.mxu1 %v5202_v1 }
 0xa7a   :  { %v1801_v25 = vpop.xlane.xlu1 %1800 }
 0xa7c   :  { %v5084_v9 = vpop.eup %5083 }
 0xa7d   :  { %v1308_v24 = vmul.f32 %v5084_v9, %v5076_v57  ;;  %v5086_v26 = vpop.eup %5085 }
 0xa7e   :  { %v1473_v22 = vmul.f32 %v5086_v26, %v5078_v59  ;;  %v1640_v27 = vpop.permute.xlu1 %1639 }
 0xa7f   :  { %4659 = vmatmul.mubr.msk.f32.vlgmr.msra.gmra.mrb[18].mxu1 %vm164_vm2, %v1308_v24 }
 0xa80   :  { %4667 = vmatpush3.msra.mxu1 %v1475_v18  ;;  %4668 = vmatprep.mubr.msk.f32.mxu1 %vm5201_vm0, %v5202_v1 }
 0xa81   :  { %4676 = vmatprep.subr.mxu1 %v5202_v1 }
 0xa83   :  { %4669 = vmatmul.mubr.msk.f32.vlgmr.msra.gmra.mrb[20].mxu1 %vm164_vm2, %v1473_v22 }
 0xa84   :  { %4677 = vmatpush3.msra.mxu1 %v1640_v27  ;;  %4678 = vmatprep.mubr.msk.f32.mxu1 %vm5201_vm0, %v5202_v1 }
 0xa85   :  { %4686 = vmatprep.subr.mxu1 %v5202_v1 }
 0xaa6   :  { %v1636_v28 = vpop.xlane.xlu0 %1635 }
 0xaa7   :  { %5087 = vrcp.f32 %v1636_v28 }
 0xaa8   :  { %5089 = vrcp.f32 %v1801_v25 }
 0xaaa   :  { %v1805_v36 = vpop.permute.xlu0 %1804 }
 0xab1   :  { %v5088_v29 = vpop.eup %5087 }
 0xab2   :  { %v1638_v33 = vmul.f32 %v5088_v29, %v5082_v16  ;;  %v5090_v35 = vpop.eup %5089  ;;  %v4326_v16 = vld [vmem:[%s6063_s1 + $0x38] sm:$0xff] }
 0xab3   :  { %v1803_v37 = vmul.f32 %v5090_v35, %v5080_v3  ;;  %v5653_v17 = vpack.c.bf16 %v4326_v16, %v4325_v14 }
 0xab4   :  { %4679 = vmatmul.mubr.msk.f32.vlgmr.msra.gmra.mrb[22].mxu1 %vm164_vm2, %v1638_v33 }
 0xab5   :  { %4687 = vmatpush3.msra.mxu1 %v1805_v36  ;;  %4688 = vmatprep.mubr.msk.f32.mxu1 %vm5201_vm0, %v5202_v1 }
 0xab6   :  { %4958 = vmatprep.subr.bf16.mxu1 %v5200_v0 }
 0xab8   :  { %4689 = vmatmul.mubr.msk.f32.vlgmr.msra.gmra.mrb[24].mxu1 %vm164_vm2, %v1803_v37 }
 0xab9   :  { %4960 = vmatpush3.bf16.msra.mxu1 %v5443_v47  ;;  %4710 = vmatprep.mubr.msk.f32.mxu1 %vm5201_vm0, %v5202_v1 }
 0xaba   :  { %4961 = vmatprep.subr.bf16.mxu1 %v5200_v0 }
 0xabd   :  { %4963 = vmatpush3.bf16.msra.mxu1 %v5453_v49 }
 0xabe   :  { %4976 = vmatprep.subr.bf16.mxu1 %v5200_v0 }
 0xb52   :  { %v1381_v38 = vpop.f32.mrb[18].mxu1 }
 0xb53   :  { %v4660_v39 = vpop.f32.mrb[19].mxu1 }
 0xb56   :  { %v1546_v12 = vpop.f32.mrb[20].mxu1 }
 0xb57   :  { %1881 = vrot.lane.b32.xlu1 %v1546_v12, %s5196_s16  ;;  %v4670_v40 = vpop.f32.mrb[21].mxu1 }
 0xb87   :  { %v1711_v41 = vpop.f32.mrb[22].mxu1 }
 0xb88   :  { %1885 = vrot.lane.b32.xlu0 %v1711_v41, %s5198_s0  ;;  %v4680_v42 = vpop.f32.mrb[23].mxu1 }
 0xb8b   :  { %v1876_v47 = vpop.f32.mrb[24].mxu1 }
 0xb8c   :  { %1889 = vrot.lane.b32.xlu1 %v1876_v47, %s5214_s17  ;;  %v4690_v19 = vpop.f32.mrb[25].mxu1 }
 0xbc9   :  { %v1882_v43 = vpop.permute.xlu1 %1881 }
 0xbca   :  { %v1892_v49 = vsel %vm164_vm2, %v1381_v38, %v1882_v43 }
 0xbfa   :  { %v1886_v44 = vpop.permute.xlu0 %1885 }
 0xbfb   :  { %v1893_v45 = vsel %vm834_vm3, %v1892_v49, %v1886_v44 }
 0xbfe   :  { %v1890_v46 = vpop.permute.xlu1 %1889 }
 0xbff   :  { %v1894_v8 = vsel %vm836_vm4, %v1893_v45, %v1890_v46 }
 0xc00   :  { %4700 = vmatmul.mubr.msk.f32.vlgmr.msra.gmra.mrb[16].mxu0 %vm87_vm1, %v1894_v8 }
 0xc01   :  { %4966 = vmatpush3.bf16.msra.mxu0 %v5466_v53  ;;  %4729 = vmatprep.mubr.msk.f32.mxu0 %vm5201_vm0, %v5202_v1 }
 0xc02   :  { %4967 = vmatprep.subr.bf16.mxu0 %v5200_v0 }
 0xc05   :  { %4969 = vmatpush3.bf16.msra.mxu0 %v5472_v55 }
 0xc06   :  { %4970 = vmatprep.subr.bf16.mxu0 %v5200_v0 }
 0xc09   :  { %4972 = vmatpush3.bf16.msra.mxu0 %v5482_v58 }
 0xc0a   :  { %4973 = vmatprep.subr.bf16.mxu0 %v5200_v0 }
 0xc0d   :  { %4975 = vmatpush3.bf16.msra.mxu0 %v5521_v15 }
 0xc0e   :  { %4753 = vmatprep.subr.mxu0 %v5202_v1 }
 0xcd3   :  { %v1964_v48 = vpop.f32.mrb[16].mxu0 }
 0xcd4   :  { %v1965_v53 = vadd.f32 %v1964_v48, %v5431_v34  ;;  %v4701_v50 = vpop.f32.mrb[17].mxu0  ;;  %v4323_v34 = vld [vmem:[%s6063_s1 + $0x20] sm:$0xff] }
 0xcd6   :  { %v1968_v51 = vadd.f32 %v1965_v53, %v5508_v13  ;;  %v4324_v13 = vld [vmem:[%s6063_s1 + $0x28] sm:$0xff] }
 0xcd7   :  { %v5639_v10 = vpack.c.bf16 %v4324_v13, %v4323_v34 }
 0xcd8   :  { %v1969_v52 = vsel %vm87_vm1, %v1968_v51, 0.0 }
 0xcd9   :  { %1970 = vadd.xlane.f32.xlu0 %v1969_v52 }
 0xd66   :  { %v1971_v55 = vpop.xlane.xlu0 %1970 }
 0xd67   :  { %v1972_v54 = vmul.f32 0.03125, %v1971_v55 }
 0xd69   :  { %v1973_v56 = vsub.f32 %v1968_v51, %v1972_v54 }
 0xd6b   :  { %v1974_v57 = vmul.f32 %v1973_v56, %v1973_v56 }
 0xd6d   :  { %v1975_v58 = vsel %vm87_vm1, %v1974_v57, 0.0 }
 0xd6e   :  { %1976 = vadd.xlane.f32.xlu1 %v1975_v58 }
 0xdfb   :  { %v1977_v59 = vpop.xlane.xlu1 %1976 }
 0xdfc   :  { %v1978_v15 = vmul.f32 0.03125, %v1977_v59 }
 0xdfe   :  { %v1979_v60 = vadd.f32 1e-05, %v1978_v15 }
 0xe00   :  { %5091 = vrsqrt.f32 %v1979_v60 }
 0xe0a   :  { %v5092_v61 = vpop.eup %5091 }
 0xe0b   :  { %v1981_v3 = vmul.f32 %v5092_v61, %v1973_v56 }
 0xe0d   :  { %v1982_v4 = vmul.f32 %v1981_v3, %v5491_v2  ;;  %v5659_v2 = vld [vmem:[#allocation2 + $0x4] sm:$0xf] }
 0xe0f   :  { %v5642_v5 = vadd.f32 %v1982_v4, %v5495_v6 }
 0xe11   :  { %4711 = vmatmul.mubr.msk.f32.vlgmr.msra.gmra.mrb[26].mxu1 %vm87_vm1, %v5642_v5 }
 0xe12   :  { %4978 = vmatpush3.bf16.msra.mxu1 %v5639_v10  ;;  %4740 = vmatprep.mubr.msk.f32.mxu1 %vm5201_vm0, %v5202_v1 }
 0xe13   :  { %4979 = vmatprep.subr.bf16.mxu1 %v5200_v0 }
 0xe16   :  { %4981 = vmatpush3.bf16.msra.mxu1 %v5653_v17 }
 0xe17   :  { %4743 = vmatprep.subr.mxu1 %v5202_v1 }
 0xe19   :  { %4741 = vmatmul.mubr.msk.f32.vlgmr.msra.gmra.mrb[28].mxu1 %vm87_vm1, %v5659_v2 }
 0xe1a   :  { %4745 = vmatprep.mubr.msk.f32.mxu1 %vm5201_vm0, %v5202_v1 }
 0xee4   :  { %v2053_v6 = vpop.f32.mrb[26].mxu1 }
 0xee5   :  { %v2054_v18 = vadd.f32 %v5525_v7, %v2053_v6  ;;  %v4712_v20 = vpop.f32.mrb[27].mxu1 }
 0xee7   :  { %v2057_v21 = vmax.f32 %v2054_v18, 0.0 }
 0xee9   :  { %4730 = vmatmul.mubr.msk.f32.vlgmr.msra.gmra.mrb[18].mxu0 %vm1024_vm5, %v2057_v21 }
 0xeea   :  { %4755 = vmatprep.mubr.msk.f32.mxu0 %vm5201_vm0, %v5202_v1 }
 0xeec   :  { %v2270_v9 = vpop.f32.mrb[28].mxu1 }
 0xeed   :  { %v5676_v24 = vadd.f32 %v5671_v23, %v2270_v9  ;;  %v4742_v25 = vpop.f32.mrb[29].mxu1 }
 0xeef   :  { %2444 = vrot.lane.b32.xlu1 %v5676_v24, %s5206_s23  ;;  %2275 = vrot.lane.b32.xlu0 %v5676_v24, %s5204_s21 }
 0xef3   :  { %2610 = vrot.lane.b32.xlu1 %v5676_v24, %s5205_s22  ;;  %2442 = vrot.lane.b32.xlu0 %v5676_v24, %s5203_s20 }
 0xef7   :  { %2776 = vrot.lane.b32.xlu1 %v5676_v24, %s5207_s24  ;;  %2608 = vrot.lane.b32.xlu0 %v5676_v24, %s5208_s25 }
 0xefb   :  { %2774 = vrot.lane.b32.xlu0 %v5676_v24, %s5209_s26 }
 0xf61   :  { %v2445_v7 = vpop.permute.xlu1 %2444  ;;  %v2276_v26 = vpop.permute.xlu0 %2275 }
 0xf62   :  { %4744 = vmatpush3.xpose.msk.msra.mxu1 %vm164_vm2, %v2276_v26  ;;  %4754 = vmatpush3.xpose.msk.msra.mxu0 %vm164_vm2, %v2445_v7 }
 0xf63   :  { %4763 = vmatprep.subr.mxu0 %v5202_v1  ;;  %4748 = vmatprep.subr.mxu1 %v5202_v1 }
 0xf65   :  { %v2611_v22 = vpop.permute.xlu1 %2610  ;;  %4746 = vmatmul.mubr.msk.f32.vlgmr.msra.gmra.mrb[30].mxu1 %vm164_vm2, %v5676_v24  ;;  %v2443_v27 = vpop.permute.xlu0 %2442 }
 0xf66   :  { %4756 = vmatmul.mubr.msk.f32.vlgmr.msra.gmra.mrb[20].mxu0 %vm164_vm2, %v2443_v27  ;;  %4750 = vmatprep.mubr.msk.f32.mxu1 %vm5201_vm0, %v5202_v1 }
 0xf67   :  { %4764 = vmatpush3.xpose.msk.msra.mxu0 %vm164_vm2, %v2611_v22  ;;  %4765 = vmatprep.mubr.msk.f32.mxu0 %vm5201_vm0, %v5202_v1 }
 0xf68   :  { %4773 = vmatprep.subr.mxu0 %v5202_v1 }
 0xf69   :  { %v2777_v28 = vpop.permute.xlu1 %2776  ;;  %v2609_v29 = vpop.permute.xlu0 %2608 }
 0xf6a   :  { %4766 = vmatmul.mubr.msk.f32.vlgmr.msra.gmra.mrb[22].mxu0 %vm164_vm2, %v2609_v29 }
 0xf6b   :  { %4774 = vmatpush3.xpose.msk.msra.mxu0 %vm164_vm2, %v2777_v28  ;;  %4775 = vmatprep.mubr.msk.f32.mxu0 %vm5201_vm0, %v5202_v1 }
 0xf6c   :  { %4982 = vmatprep.subr.bf16.mxu0 %v5200_v0 }
 0xf6d   :  { %v2775_v33 = vpop.permute.xlu0 %2774 }
 0xf6e   :  { %4776 = vmatmul.mubr.msk.f32.vlgmr.msra.gmra.mrb[24].mxu0 %vm164_vm2, %v2775_v33  ;;  %v4328_v33 = vld [vmem:[%s6065_s3 + $0x20] sm:$0xff] }
 0xf6f   :  { %4791 = vmatprep.mubr.msk.f32.mxu0 %vm5201_vm0, %v5202_v1 }
 0xfbc   :  { %v5713_v35 = vpop.f32.mrb[18].mxu0 }
 0xfbd   :  { %v4731_v36 = vpop.f32.mrb[19].mxu0 }
 0xfbe   :  { %v4329_v36 = vld [vmem:[%s6065_s3 + $0x28] sm:$0xff] }
0x1038   :  { %v2347_v37 = vpop.f32.mrb[30].mxu1 }
0x1039   :  { %v4747_v38 = vpop.f32.mrb[31].mxu1  ;;  %v2516_v39 = vpop.f32.mrb[20].mxu0  ;;  %v2352_v12 = vsel %vm2351_vm6, %v2347_v37, -inf }
0x103a   :  { %v4757_v40 = vpop.f32.mrb[21].mxu0  ;;  %2353 = vmax.xlane.f32.xlu1 %v2352_v12  ;;  %v2520_v41 = vsel %vm2351_vm6, %v2516_v39, -inf }
0x103b   :  { %2521 = vmax.xlane.f32.xlu0 %v2520_v41  ;;  %v4330_v41 = vld [vmem:[%s6065_s3 + $0x30] sm:$0xff] }
0x103d   :  { %v2682_v42 = vpop.f32.mrb[22].mxu0 }
0x103e   :  { %v4767_v47 = vpop.f32.mrb[23].mxu0  ;;  %v2686_v19 = vsel %vm2351_vm6, %v2682_v42, -inf }
0x103f   :  { %2687 = vmax.xlane.f32.xlu0 %v2686_v19 }
0x1041   :  { %v2848_v43 = vpop.f32.mrb[24].mxu0 }
0x1042   :  { %v4777_v44 = vpop.f32.mrb[25].mxu0  ;;  %v2852_v49 = vsel %vm2351_vm6, %v2848_v43, -inf }
0x1043   :  { %2853 = vmax.xlane.f32.xlu1 %v2852_v49 }
0x1054   :  { %2531 = vrot.lane.b32.xlu1 %v5676_v24, %s5210_s27 }
0x10c7   :  { %v2354_v45 = vpop.xlane.xlu1 %2353 }
0x10c8   :  { %v2355_v46 = vsub.f32 %v2347_v37, %v2354_v45  ;;  %v2522_v8 = vpop.xlane.xlu0 %2521  ;;  %v5757_v37 = vpack.c.bf16 %v4329_v36, %v4328_v33 }
0x10c9   :  { %v2523_v48 = vsub.f32 %v2516_v39, %v2522_v8 }
0x10ca   :  { %v2356_v53 = vmul.f32 1.442695, %v2355_v46  ;;  %4984 = vmatpush3.bf16.msra.mxu0 %v5757_v37 }
0x10cb   :  { %v2524_v50 = vmul.f32 1.442695, %v2523_v48  ;;  %4985 = vmatprep.subr.bf16.mxu0 %v5200_v0 }
0x10cc   :  { %5093 = vpow2.f32 %v2356_v53  ;;  %v2688_v60 = vpop.xlane.xlu0 %2687 }
0x10cd   :  { %5095 = vpow2.f32 %v2524_v50  ;;  %v2689_v61 = vsub.f32 %v2682_v42, %v2688_v60  ;;  %v4331_v42 = vld [vmem:[%s6065_s3 + $0x38] sm:$0xff] }
0x10ce   :  { %v5768_v47 = vpack.c.bf16 %v4331_v42, %v4330_v41 }
0x10cf   :  { %v2690_v3 = vmul.f32 1.442695, %v2689_v61 }
0x10d0   :  { %v2854_v51 = vpop.xlane.xlu1 %2853  ;;  %4987 = vmatpush3.bf16.msra.mxu0 %v5768_v47 }
0x10d1   :  { %v2855_v52 = vsub.f32 %v2848_v43, %v2854_v51  ;;  %4994 = vmatprep.subr.bf16.mxu0 %v5200_v0  ;;  %v5783_v51 = vld [vmem:[%s6069_s7 + $0x8] sm:$0xff] }
0x10d2   :  { %v5852_v36 = vrot.slane %v5783_v51, %v937_v63  ;;  %v4342_v63 = vld [vmem:[%s6068_s6 + $0x70] sm:$0xff] }
0x10d3   :  { %v2856_v55 = vmul.f32 1.442695, %v2855_v52  ;;  %v5788_v52 = vrot.slane %v5783_v51, %v840_v32  ;;  %v4332_v32 = vld [vmem:[%s6066_s4 + $0x20] sm:$0xff] }
0x10d4   :  { %v2532_v4 = vpop.permute.xlu1 %2531 }
0x10d5   :  { %5097 = vpow2.f32 %v2856_v55 }
0x10d6   :  { %v5094_v54 = vpop.eup %5093  ;;  %5099 = vpow2.f32 %v2690_v3 }
0x10d7   :  { %v5096_v56 = vpop.eup %5095  ;;  %v2358_v57 = vsel %vm2351_vm6, %v5094_v54, 0.0 }
0x10d8   :  { %2359 = vadd.xlane.f32.xlu0 %v2358_v57  ;;  %v2526_v58 = vsel %vm2351_vm6, %v5096_v56, 0.0 }
0x10d9   :  { %2527 = vadd.xlane.f32.xlu1 %v2526_v58 }
0x10df   :  { %v5098_v59 = vpop.eup %5097 }
0x10e0   :  { %v2858_v15 = vsel %vm2351_vm6, %v5098_v59, 0.0  ;;  %v5100_v34 = vpop.eup %5099 }
0x10e1   :  { %2859 = vadd.xlane.f32.xlu1 %v2858_v15  ;;  %v2692_v13 = vsel %vm2351_vm6, %v5100_v34, 0.0 }
0x10ee   :  { %2363 = vrot.lane.b32.xlu0 %v5676_v24, %s5211_s29 }
0x10f2   :  { %2697 = vrot.lane.b32.xlu1 %v5676_v24, %s5212_s28 }
0x110d   :  { %2693 = vadd.xlane.f32.xlu0 %v2692_v13 }
0x1123   :  { %2863 = vrot.lane.b32.xlu0 %v5676_v24, %s5213_s30 }
0x1165   :  { %v2360_v14 = vpop.xlane.xlu0 %2359 }
0x1166   :  { %5101 = vrcp.f32 %v2360_v14  ;;  %v2528_v16 = vpop.xlane.xlu1 %2527 }
0x1167   :  { %5103 = vrcp.f32 %v2528_v16  ;;  %v4336_v16 = vld [vmem:[%s6068_s6 + $0x40] sm:$0xff] }
0x1169   :  { %v2364_v6 = vpop.permute.xlu0 %2363 }
0x116a   :  { %4749 = vmatpush3.msk.msra.mxu1 %vm2369_vm7, %v2364_v6  ;;  %v4337_v6 = vld [vmem:[%s6068_s6 + $0x48] sm:$0xff] }
0x116b   :  { %4758 = vmatprep.subr.mxu1 %v5202_v1 }
0x116e   :  { %v2860_v21 = vpop.xlane.xlu1 %2859 }
0x1170   :  { %v5102_v18 = vpop.eup %5101 }
0x1171   :  { %v2362_v20 = vmul.f32 %v5102_v18, %v5094_v54  ;;  %v5104_v9 = vpop.eup %5103  ;;  %v4338_v18 = vld [vmem:[%s6068_s6 + $0x50] sm:$0xff] }
0x1172   :  { %v2530_v24 = vmul.f32 %v5104_v9, %v5096_v56  ;;  %v2698_v25 = vpop.permute.xlu1 %2697 }
0x1173   :  { %4751 = vmatmul.mubr.msk.f32.vlgmr.msra.gmra.mrb[32].mxu1 %vm2365_vm8, %v2362_v20  ;;  %v5823_v20 = vpack.c.bf16 %v4337_v6, %v4336_v16 }
0x1174   :  { %4759 = vmatpush3.msk.msra.mxu1 %vm2369_vm7, %v2532_v4  ;;  %4760 = vmatprep.mubr.msk.f32.mxu1 %vm5201_vm0, %v5202_v1  ;;  %v4335_v4 = vld [vmem:[%s6066_s4 + $0x38] sm:$0xff] }
0x1175   :  { %4768 = vmatprep.subr.mxu1 %v5202_v1 }
0x1177   :  { %4761 = vmatmul.mubr.msk.f32.vlgmr.msra.gmra.mrb[34].mxu1 %vm2365_vm8, %v2530_v24  ;;  %v4340_v24 = vld [vmem:[%s6068_s6 + $0x60] sm:$0xff] }
0x1178   :  { %4769 = vmatpush3.msk.msra.mxu1 %vm2369_vm7, %v2698_v25  ;;  %4770 = vmatprep.mubr.msk.f32.mxu1 %vm5201_vm0, %v5202_v1  ;;  %v4341_v25 = vld [vmem:[%s6068_s6 + $0x68] sm:$0xff] }
0x1179   :  { %4778 = vmatprep.subr.mxu1 %v5202_v1 }
0x119a   :  { %v2694_v7 = vpop.xlane.xlu0 %2693 }
0x119b   :  { %5105 = vrcp.f32 %v2694_v7  ;;  %v5839_v7 = vpack.c.bf16 %v4341_v25, %v4340_v24 }
0x119c   :  { %5107 = vrcp.f32 %v2860_v21  ;;  %v4339_v21 = vld [vmem:[%s6068_s6 + $0x58] sm:$0xff] }
0x119d   :  { %v5829_v9 = vpack.c.bf16 %v4339_v21, %v4338_v18 }
0x119e   :  { %v2864_v28 = vpop.permute.xlu0 %2863 }
0x11a5   :  { %v5106_v26 = vpop.eup %5105 }
0x11a6   :  { %v2696_v22 = vmul.f32 %v5106_v26, %v5100_v34  ;;  %v5108_v27 = vpop.eup %5107  ;;  %v4333_v34 = vld [vmem:[%s6066_s4 + $0x28] sm:$0xff] }
0x11a7   :  { %v2862_v29 = vmul.f32 %v5108_v27, %v5098_v59  ;;  %v5800_v13 = vpack.c.bf16 %v4333_v34, %v4332_v32 }
0x11a8   :  { %4771 = vmatmul.mubr.msk.f32.vlgmr.msra.gmra.mrb[36].mxu1 %vm2365_vm8, %v2696_v22 }
0x11a9   :  { %4779 = vmatpush3.msk.msra.mxu1 %vm2369_vm7, %v2864_v28  ;;  %4780 = vmatprep.mubr.msk.f32.mxu1 %vm5201_vm0, %v5202_v1  ;;  %v5847_v28 = vrot.slane %v5783_v51, %v932_v62  ;;  %v5865_v62 = vld [vmem:[#allocation2 + $0xc] sm:$0xf] }
0x11aa   :  { %4988 = vmatprep.subr.bf16.mxu1 %v5200_v0 }
0x11ac   :  { %4781 = vmatmul.mubr.msk.f32.vlgmr.msra.gmra.mrb[38].mxu1 %vm2365_vm8, %v2862_v29 }
0x11ad   :  { %4802 = vmatprep.mubr.msk.f32.mxu1 %vm5201_vm0, %v5202_v1  ;;  %4990 = vmatpush3.bf16.msra.mxu1 %v5800_v13 }
0x11ae   :  { %4991 = vmatprep.subr.bf16.mxu1 %v5200_v0 }
0x1246   :  { %v2438_v38 = vpop.f32.mrb[32].mxu1 }
0x1247   :  { %v4752_v39 = vpop.f32.mrb[33].mxu1 }
0x124a   :  { %v2604_v12 = vpop.f32.mrb[34].mxu1 }
0x124b   :  { %2941 = vrot.lane.b32.xlu1 %v2604_v12, %s5196_s16  ;;  %v4762_v40 = vpop.f32.mrb[35].mxu1 }
0x127b   :  { %v2770_v19 = vpop.f32.mrb[36].mxu1 }
0x127c   :  { %2945 = vrot.lane.b32.xlu0 %v2770_v19, %s5198_s0  ;;  %v4772_v43 = vpop.f32.mrb[37].mxu1 }
0x127f   :  { %v2936_v44 = vpop.f32.mrb[38].mxu1 }
0x1280   :  { %2949 = vrot.lane.b32.xlu1 %v2936_v44, %s5214_s17  ;;  %v4782_v49 = vpop.f32.mrb[39].mxu1 }
0x12bd   :  { %v2942_v45 = vpop.permute.xlu1 %2941 }
0x12be   :  { %v2952_v8 = vsel %vm164_vm2, %v2438_v38, %v2942_v45 }
0x12ee   :  { %v2946_v46 = vpop.permute.xlu0 %2945 }
0x12ef   :  { %v2953_v48 = vsel %vm834_vm3, %v2952_v8, %v2946_v46 }
0x12f2   :  { %v2950_v53 = vpop.permute.xlu1 %2949 }
0x12f3   :  { %v2954_v50 = vsel %vm836_vm4, %v2953_v48, %v2950_v53 }
0x12f4   :  { %4792 = vmatmul.mubr.msk.f32.vlgmr.msra.gmra.mrb[26].mxu0 %vm87_vm1, %v2954_v50 }
0x12f5   :  { %4821 = vmatprep.mubr.msk.f32.mxu0 %vm5201_vm0, %v5202_v1  ;;  %4996 = vmatpush3.bf16.msra.mxu0 %v5823_v20 }
0x12f6   :  { %4997 = vmatprep.subr.bf16.mxu0 %v5200_v0 }
0x12f9   :  { %4999 = vmatpush3.bf16.msra.mxu0 %v5829_v9 }
0x12fa   :  { %5000 = vmatprep.subr.bf16.mxu0 %v5200_v0 }
0x12fd   :  { %5002 = vmatpush3.bf16.msra.mxu0 %v5839_v7 }
0x12fe   :  { %5003 = vmatprep.subr.bf16.mxu0 %v5200_v0 }
0x13c7   :  { %v3028_v55 = vpop.f32.mrb[26].mxu0 }
0x13c8   :  { %v3029_v54 = vadd.f32 %v3028_v55, %v5788_v52  ;;  %v4793_v56 = vpop.f32.mrb[27].mxu0 }
0x13ca   :  { %v3032_v57 = vadd.f32 %v3029_v54, %v5659_v2  ;;  %v4334_v2 = vld [vmem:[%s6066_s4 + $0x30] sm:$0xff] }
0x13cb   :  { %v5810_v14 = vpack.c.bf16 %v4335_v4, %v4334_v2 }
0x13cc   :  { %v3034_v58 = vsel %vm3033_vm9, %v3032_v57, 0.0 }
0x13cd   :  { %3035 = vadd.xlane.f32.xlu0 %v3034_v58  ;;  %4993 = vmatpush3.bf16.msra.mxu1 %v5810_v14 }
0x13ce   :  { %5006 = vmatprep.subr.bf16.mxu1 %v5200_v0 }
0x145a   :  { %v3036_v59 = vpop.xlane.xlu0 %3035 }
0x145b   :  { %v3037_v15 = vmul.f32 0.03125, %v3036_v59 }
0x145d   :  { %v3038_v60 = vsub.f32 %v3032_v57, %v3037_v15 }
0x145f   :  { %v3039_v61 = vmul.f32 %v3038_v60, %v3038_v60 }
0x1461   :  { %v3040_v3 = vsel %vm3033_vm9, %v3039_v61, 0.0 }
0x1462   :  { %3041 = vadd.xlane.f32.xlu1 %v3040_v3 }
0x14ef   :  { %v3042_v26 = vpop.xlane.xlu1 %3041 }
0x14f0   :  { %v3043_v22 = vmul.f32 0.03125, %v3042_v26 }
0x14f2   :  { %v3044_v27 = vadd.f32 1e-05, %v3043_v22 }
0x14f4   :  { %5109 = vrsqrt.f32 %v3044_v27 }
0x14fe   :  { %v5110_v29 = vpop.eup %5109 }
0x14ff   :  { %v3046_v33 = vmul.f32 %v5110_v29, %v3038_v60 }
0x1501   :  { %v3051_v38 = vmul.f32 %v5847_v28, %v3046_v33 }
0x1503   :  { %v5856_v39 = vadd.f32 %v5852_v36, %v3051_v38 }
0x1505   :  { %4803 = vmatmul.mubr.msk.f32.vlgmr.msra.gmra.mrb[40].mxu1 %vm87_vm1, %v5856_v39 }
0x1506   :  { %5008 = vmatpush3.bf16.msra.mxu1 %v5639_v10  ;;  %4832 = vmatprep.mubr.msk.f32.mxu1 %vm5201_vm0, %v5202_v1  ;;  %v4343_v10 = vld [vmem:[%s6068_s6 + $0x78] sm:$0xff] }
0x1507   :  { %5009 = vmatprep.subr.bf16.mxu1 %v5200_v0  ;;  %v5878_v12 = vpack.c.bf16 %v4343_v10, %v4342_v63 }
0x1509   :  { %5005 = vmatpush3.bf16.msra.mxu0 %v5878_v12 }
0x150a   :  { %5011 = vmatpush3.bf16.msra.mxu1 %v5653_v17  ;;  %4845 = vmatprep.subr.mxu0 %v5202_v1  ;;  %v5882_v17 = vld [vmem:[#allocation4 + $0x1] ss:$0 sm:$0xff] }
0x150b   :  { %4835 = vmatprep.subr.mxu1 %v5202_v1 }
0x150d   :  { %4833 = vmatmul.mubr.msk.f32.vlgmr.msra.gmra.mrb[42].mxu1 %vm87_vm1, %v5865_v62 }
0x150e   :  { %4837 = vmatprep.mubr.msk.f32.mxu1 %vm5201_vm0, %v5202_v1 }
0x15d8   :  { %v3132_v40 = vpop.f32.mrb[40].mxu1 }
0x15d9   :  { %v3133_v41 = vadd.f32 %v5882_v17, %v3132_v40  ;;  %v4804_v42 = vpop.f32.mrb[41].mxu1 }
0x15db   :  { %v3136_v19 = vmax.f32 %v3133_v41, 0.0 }
0x15dd   :  { %4822 = vmatmul.mubr.msk.f32.vlgmr.msra.gmra.mrb[28].mxu0 %vm1024_vm5, %v3136_v19 }
0x15de   :  { %4847 = vmatprep.mubr.msk.f32.mxu0 %vm5201_vm0, %v5202_v1 }
0x15e0   :  { %v3332_v43 = vpop.f32.mrb[42].mxu1 }
0x15e1   :  { %v5889_v44 = vadd.f32 %v5671_v23, %v3332_v43  ;;  %v4834_v49 = vpop.f32.mrb[43].mxu1 }
0x15e3   :  { %3503 = vrot.lane.b32.xlu1 %v5889_v44, %s5206_s23  ;;  %3337 = vrot.lane.b32.xlu0 %v5889_v44, %s5204_s21 }
0x15e7   :  { %3669 = vrot.lane.b32.xlu1 %v5889_v44, %s5205_s22  ;;  %3501 = vrot.lane.b32.xlu0 %v5889_v44, %s5203_s20 }
0x15eb   :  { %3835 = vrot.lane.b32.xlu1 %v5889_v44, %s5207_s24  ;;  %3667 = vrot.lane.b32.xlu0 %v5889_v44, %s5208_s25 }
0x15ef   :  { %3833 = vrot.lane.b32.xlu0 %v5889_v44, %s5209_s26 }
0x1655   :  { %v3504_v23 = vpop.permute.xlu1 %3503  ;;  %v3338_v45 = vpop.permute.xlu0 %3337 }
0x1656   :  { %4836 = vmatpush3.xpose.msk.msra.mxu1 %vm164_vm2, %v3338_v45  ;;  %4846 = vmatpush3.xpose.msk.msra.mxu0 %vm164_vm2, %v3504_v23 }
0x1657   :  { %4855 = vmatprep.subr.mxu0 %v5202_v1  ;;  %4840 = vmatprep.subr.mxu1 %v5202_v1 }
0x1659   :  { %v3670_v46 = vpop.permute.xlu1 %3669  ;;  %4838 = vmatmul.mubr.msk.f32.vlgmr.msra.gmra.mrb[44].mxu1 %vm164_vm2, %v5889_v44  ;;  %v3502_v8 = vpop.permute.xlu0 %3501 }
0x165a   :  { %4848 = vmatmul.mubr.msk.f32.vlgmr.msra.gmra.mrb[30].mxu0 %vm164_vm2, %v3502_v8  ;;  %4842 = vmatprep.mubr.msk.f32.mxu1 %vm5201_vm0, %v5202_v1 }
0x165b   :  { %4856 = vmatpush3.xpose.msk.msra.mxu0 %vm164_vm2, %v3670_v46  ;;  %4857 = vmatprep.mubr.msk.f32.mxu0 %vm5201_vm0, %v5202_v1 }
0x165c   :  { %4865 = vmatprep.subr.mxu0 %v5202_v1 }
0x165d   :  { %v3836_v48 = vpop.permute.xlu1 %3835  ;;  %v3668_v53 = vpop.permute.xlu0 %3667 }
0x165e   :  { %4858 = vmatmul.mubr.msk.f32.vlgmr.msra.gmra.mrb[32].mxu0 %vm164_vm2, %v3668_v53 }
0x165f   :  { %4866 = vmatpush3.xpose.msk.msra.mxu0 %vm164_vm2, %v3836_v48  ;;  %4867 = vmatprep.mubr.msk.f32.mxu0 %vm5201_vm0, %v5202_v1 }
0x1660   :  { %5012 = vmatprep.subr.bf16.mxu0 %v5200_v0 }
0x1661   :  { %v3834_v50 = vpop.permute.xlu0 %3833 }
0x1662   :  { %4868 = vmatmul.mubr.msk.f32.vlgmr.msra.gmra.mrb[34].mxu0 %vm164_vm2, %v3834_v50 }
0x1663   :  { %5014 = vmatpush3.bf16.msra.mxu0 %v5757_v37  ;;  %4883 = vmatprep.mubr.msk.f32.mxu0 %vm5201_vm0, %v5202_v1 }
0x1664   :  { %5015 = vmatprep.subr.bf16.mxu0 %v5200_v0 }
0x1667   :  { %5017 = vmatpush3.bf16.msra.mxu0 %v5768_v47 }
0x1668   :  { %5024 = vmatprep.subr.bf16.mxu0 %v5200_v0 }
0x16b0   :  { %v5930_v55 = vpop.f32.mrb[28].mxu0 }
0x16b1   :  { %v4823_v54 = vpop.f32.mrb[29].mxu0 }
0x172c   :  { %v3409_v56 = vpop.f32.mrb[44].mxu1 }
0x172d   :  { %v4839_v57 = vpop.f32.mrb[45].mxu1  ;;  %v3575_v58 = vpop.f32.mrb[30].mxu0  ;;  %v3413_v59 = vsel %vm2351_vm6, %v3409_v56, -inf }
0x172e   :  { %v4849_v15 = vpop.f32.mrb[31].mxu0  ;;  %3414 = vmax.xlane.f32.xlu1 %v3413_v59  ;;  %v3579_v37 = vsel %vm2351_vm6, %v3575_v58, -inf }
0x172f   :  { %3580 = vmax.xlane.f32.xlu0 %v3579_v37 }
0x1731   :  { %v3741_v60 = vpop.f32.mrb[32].mxu0 }
0x1732   :  { %v4859_v61 = vpop.f32.mrb[33].mxu0  ;;  %v3745_v3 = vsel %vm2351_vm6, %v3741_v60, -inf }
0x1733   :  { %3746 = vmax.xlane.f32.xlu0 %v3745_v3 }
0x1735   :  { %v3907_v47 = vpop.f32.mrb[34].mxu0 }
0x1736   :  { %v4869_v32 = vpop.f32.mrb[35].mxu0  ;;  %v3911_v34 = vsel %vm2351_vm6, %v3907_v47, -inf }
0x1737   :  { %3912 = vmax.xlane.f32.xlu1 %v3911_v34 }
0x1748   :  { %3590 = vrot.lane.b32.xlu1 %v5889_v44, %s5210_s27 }
0x17bb   :  { %v3415_v2 = vpop.xlane.xlu1 %3414 }
0x17bc   :  { %v3416_v4 = vsub.f32 %v3409_v56, %v3415_v2  ;;  %v3581_v16 = vpop.xlane.xlu0 %3580 }
0x17bd   :  { %v3582_v6 = vsub.f32 %v3575_v58, %v3581_v16 }
0x17be   :  { %v3417_v18 = vmul.f32 1.442695, %v3416_v4 }
0x17bf   :  { %v3583_v21 = vmul.f32 1.442695, %v3582_v6 }
0x17c0   :  { %5111 = vpow2.f32 %v3417_v18  ;;  %v3747_v10 = vpop.xlane.xlu0 %3746 }
0x17c1   :  { %5113 = vpow2.f32 %v3583_v21  ;;  %v3748_v40 = vsub.f32 %v3741_v60, %v3747_v10  ;;  %v1022_v21 = vsub.s32 1, %v5423_v31 }
0x17c3   :  { %v3749_v41 = vmul.f32 1.442695, %v3748_v40 }
0x17c4   :  { %v3913_v24 = vpop.xlane.xlu1 %3912 }
0x17c5   :  { %v3914_v25 = vsub.f32 %v3907_v47, %v3913_v24 }
0x17c7   :  { %v3915_v26 = vmul.f32 1.442695, %v3914_v25 }
0x17c8   :  { %v3591_v43 = vpop.permute.xlu1 %3590 }
0x17c9   :  { %5115 = vpow2.f32 %v3915_v26 }
0x17ca   :  { %v5112_v22 = vpop.eup %5111  ;;  %5117 = vpow2.f32 %v3749_v41 }
0x17cb   :  { %v5114_v27 = vpop.eup %5113  ;;  %v3419_v29 = vsel %vm2351_vm6, %v5112_v22, 0.0 }
0x17cc   :  { %3420 = vadd.xlane.f32.xlu0 %v3419_v29  ;;  %v3585_v33 = vsel %vm2351_vm6, %v5114_v27, 0.0 }
0x17cd   :  { %3586 = vadd.xlane.f32.xlu1 %v3585_v33 }
0x17d3   :  { %v5116_v38 = vpop.eup %5115 }
0x17d4   :  { %v3917_v63 = vsel %vm2351_vm6, %v5116_v38, 0.0  ;;  %v5118_v42 = vpop.eup %5117 }
0x17d5   :  { %3918 = vadd.xlane.f32.xlu1 %v3917_v63  ;;  %v3751_v19 = vsel %vm2351_vm6, %v5118_v42, 0.0 }
0x17e2   :  { %3424 = vrot.lane.b32.xlu0 %v5889_v44, %s5211_s29 }
0x17e6   :  { %3756 = vrot.lane.b32.xlu1 %v5889_v44, %s5212_s28 }
0x1801   :  { %3752 = vadd.xlane.f32.xlu0 %v3751_v19 }
0x1817   :  { %3922 = vrot.lane.b32.xlu0 %v5889_v44, %s5213_s30 }
0x1859   :  { %v3421_v49 = vpop.xlane.xlu0 %3420 }
0x185a   :  { %5119 = vrcp.f32 %v3421_v49  ;;  %v3587_v23 = vpop.xlane.xlu1 %3586 }
0x185b   :  { %5121 = vrcp.f32 %v3587_v23 }
0x185d   :  { %v3425_v45 = vpop.permute.xlu0 %3424 }
0x185e   :  { %4841 = vmatpush3.msk.msra.mxu1 %vm2369_vm7, %v3425_v45 }
0x185f   :  { %4850 = vmatprep.subr.mxu1 %v5202_v1 }
0x1862   :  { %v3919_v48 = vpop.xlane.xlu1 %3918 }
0x1864   :  { %v5120_v46 = vpop.eup %5119 }
0x1865   :  { %v3423_v8 = vmul.f32 %v5120_v46, %v5112_v22  ;;  %v5122_v53 = vpop.eup %5121 }
0x1866   :  { %v3589_v44 = vmul.f32 %v5122_v53, %v5114_v27  ;;  %v3757_v50 = vpop.permute.xlu1 %3756 }
0x1867   :  { %4843 = vmatmul.mubr.msk.f32.vlgmr.msra.gmra.mrb[46].mxu1 %vm2365_vm8, %v3423_v8 }
0x1868   :  { %4851 = vmatpush3.msk.msra.mxu1 %vm2369_vm7, %v3591_v43  ;;  %4852 = vmatprep.mubr.msk.f32.mxu1 %vm5201_vm0, %v5202_v1 }
0x1869   :  { %4860 = vmatprep.subr.mxu1 %v5202_v1 }
0x186b   :  { %4853 = vmatmul.mubr.msk.f32.vlgmr.msra.gmra.mrb[48].mxu1 %vm2365_vm8, %v3589_v44 }
0x186c   :  { %4861 = vmatpush3.msk.msra.mxu1 %vm2369_vm7, %v3757_v50  ;;  %4862 = vmatprep.mubr.msk.f32.mxu1 %vm5201_vm0, %v5202_v1 }
0x186d   :  { %4870 = vmatprep.subr.mxu1 %v5202_v1 }
0x188e   :  { %v3753_v54 = vpop.xlane.xlu0 %3752 }
0x188f   :  { %5123 = vrcp.f32 %v3753_v54 }
0x1890   :  { %5125 = vrcp.f32 %v3919_v48 }
0x1892   :  { %v3923_v59 = vpop.permute.xlu0 %3922 }
0x1899   :  { %v5124_v56 = vpop.eup %5123 }
0x189a   :  { %v3755_v57 = vmul.f32 %v5124_v56, %v5118_v42  ;;  %v5126_v58 = vpop.eup %5125 }
0x189b   :  { %v3921_v15 = vmul.f32 %v5126_v58, %v5116_v38 }
0x189c   :  { %4863 = vmatmul.mubr.msk.f32.vlgmr.msra.gmra.mrb[50].mxu1 %vm2365_vm8, %v3755_v57 }
0x189d   :  { %4871 = vmatpush3.msk.msra.mxu1 %vm2369_vm7, %v3923_v59  ;;  %4872 = vmatprep.mubr.msk.f32.mxu1 %vm5201_vm0, %v5202_v1  ;;  %v1114_v59 = vsub.s32 4, %v5423_v31 }
0x189e   :  { %5018 = vmatprep.subr.bf16.mxu1 %v5200_v0 }
0x18a0   :  { %4873 = vmatmul.mubr.msk.f32.vlgmr.msra.gmra.mrb[52].mxu1 %vm2365_vm8, %v3921_v15 }
0x18a1   :  { %5020 = vmatpush3.bf16.msra.mxu1 %v5800_v13  ;;  %4894 = vmatprep.mubr.msk.f32.mxu1 %vm5201_vm0, %v5202_v1 }
0x18a2   :  { %5021 = vmatprep.subr.bf16.mxu1 %v5200_v0 }
0x18a5   :  { %5023 = vmatpush3.bf16.msra.mxu1 %v5810_v14 }
0x193a   :  { %v3497_v37 = vpop.f32.mrb[46].mxu1 }
0x193b   :  { %v4844_v60 = vpop.f32.mrb[47].mxu1 }
0x193e   :  { %v3663_v61 = vpop.f32.mrb[48].mxu1 }
0x193f   :  { %4000 = vrot.lane.b32.xlu1 %v3663_v61, %s5196_s16  ;;  %v4854_v3 = vpop.f32.mrb[49].mxu1 }
0x196f   :  { %v3829_v47 = vpop.f32.mrb[50].mxu1 }
0x1970   :  { %4004 = vrot.lane.b32.xlu0 %v3829_v47, %s5198_s0  ;;  %v4864_v32 = vpop.f32.mrb[51].mxu1 }
0x1973   :  { %v3995_v34 = vpop.f32.mrb[52].mxu1 }
0x1974   :  { %4008 = vrot.lane.b32.xlu1 %v3995_v34, %s5214_s17  ;;  %v4874_v13 = vpop.f32.mrb[53].mxu1 }
0x19b1   :  { %v4001_v2 = vpop.permute.xlu1 %4000 }
0x19b2   :  { %v4011_v16 = vsel %vm164_vm2, %v3497_v37, %v4001_v2  ;;  %v1119_v37 = vsub.s32 5, %v5423_v31 }
0x19e2   :  { %v4005_v4 = vpop.permute.xlu0 %4004 }
0x19e3   :  { %v4012_v14 = vsel %vm834_vm3, %v4011_v16, %v4005_v4 }
0x19e6   :  { %v4009_v6 = vpop.permute.xlu1 %4008 }
0x19e7   :  { %v4013_v18 = vsel %vm836_vm4, %v4012_v14, %v4009_v6 }
0x19e8   :  { %4884 = vmatmul.mubr.msk.f32.vlgmr.msra.gmra.mrb[36].mxu0 %vm87_vm1, %v4013_v18 }
0x19e9   :  { %5026 = vmatpush3.bf16.msra.mxu0 %v5823_v20  ;;  %4913 = vmatprep.mubr.msk.f32.mxu0 %vm5201_vm0, %v5202_v1  ;;  %v5991_v20 = vld [vmem:[%s6069_s7] sm:$0xff] }
0x19ea   :  { %5027 = vmatprep.subr.bf16.mxu0 %v5200_v0  ;;  %v1023_v1 = vrot.slane %v5991_v20, %v1022_v21  ;;  %v1120_v34 = vrot.slane %v5991_v20, %v1119_v37 }
0x19ed   :  { %5029 = vmatpush3.bf16.msra.mxu0 %v5829_v9  ;;  %v1095_v9 = vadd.f32 %v5573_v30, %v1023_v1  ;;  %v3140_v30 = vrot.slane %v5783_v51, %v1022_v21 }
0x19ee   :  { %5030 = vmatprep.subr.bf16.mxu0 %v5200_v0 }
0x19ef   :  { %v1098_v22 = vadd.f32 %v1095_v9, %v5499_v11 }
0x19f1   :  { %5032 = vmatpush3.bf16.msra.mxu0 %v5839_v7  ;;  %v1099_v29 = vsel %vm87_vm1, %v1098_v22, 0.0 }
0x19f2   :  { %5033 = vmatprep.subr.bf16.mxu0 %v5200_v0  ;;  %v2128_v0 = vadd.f32 %v5713_v35, %v1023_v1 }
0x19f4   :  { %v2131_v27 = vadd.f32 %v2128_v0, %v5642_v5 }
0x19f5   :  { %5035 = vmatpush3.bf16.msra.mxu0 %v5878_v12 }
0x19f6   :  { %v2132_v33 = vsel %vm87_vm1, %v2131_v27, 0.0 }
0x1abb   :  { %v4083_v24 = vpop.f32.mrb[36].mxu0 }
0x1abc   :  { %v4084_v25 = vadd.f32 %v4083_v24, %v5788_v52  ;;  %v4885_v26 = vpop.f32.mrb[37].mxu0 }
0x1abe   :  { %v4087_v7 = vadd.f32 %v4084_v25, %v5865_v62  ;;  %v3211_v62 = vadd.f32 %v5930_v55, %v3140_v30 }
0x1ac0   :  { %v4088_v12 = vsel %vm3033_vm9, %v4087_v7, 0.0  ;;  %v3214_v5 = vadd.f32 %v3211_v62, %v5856_v39 }
0x1ac1   :  { %4089 = vadd.xlane.f32.xlu0 %v4088_v12 }
0x1ac2   :  { %v3215_v42 = vsel %vm3033_vm9, %v3214_v5, 0.0 }
0x1ac5   :  { %1100 = vadd.xlane.f32.xlu0 %v1099_v29 }
0x1ac9   :  { %2133 = vadd.xlane.f32.xlu0 %v2132_v33 }
0x1b4e   :  { %v4090_v52 = vpop.xlane.xlu0 %4089 }
0x1b4f   :  { %v4091_v38 = vmul.f32 0.03125, %v4090_v52 }
0x1b51   :  { %v4092_v35 = vsub.f32 %v4087_v7, %v4091_v38 }
0x1b52   :  { %v1101_v63 = vpop.xlane.xlu0 %1100 }
0x1b53   :  { %v1102_v10 = vmul.f32 0.03125, %v1101_v63  ;;  %v4093_v40 = vmul.f32 %v4092_v35, %v4092_v35 }
0x1b55   :  { %v1103_v11 = vsub.f32 %v1098_v22, %v1102_v10  ;;  %v4094_v41 = vsel %vm3033_vm9, %v4093_v40, 0.0 }
0x1b56   :  { %4095 = vadd.xlane.f32.xlu1 %v4094_v41  ;;  %v1142_v41 = vsub.s32 7, %v5423_v31 }
0x1b57   :  { %v1104_v19 = vmul.f32 %v1103_v11, %v1103_v11 }
0x1b59   :  { %v1105_v43 = vsel %vm87_vm1, %v1104_v19, 0.0  ;;  %v1143_v19 = vrot.slane %v5991_v20, %v1142_v41 }
0x1b5a   :  { %3216 = vadd.xlane.f32.xlu1 %v3215_v42 }
0x1b5e   :  { %1106 = vadd.xlane.f32.xlu1 %v1105_v43 }
0x1be3   :  { %v4096_v49 = vpop.xlane.xlu1 %4095 }
0x1be4   :  { %v4097_v23 = vmul.f32 0.03125, %v4096_v49 }
0x1be6   :  { %v4098_v55 = vadd.f32 1e-05, %v4097_v23 }
0x1be7   :  { %v3217_v54 = vpop.xlane.xlu1 %3216 }
0x1be8   :  { %5127 = vrsqrt.f32 %v4098_v55  ;;  %v3218_v22 = vmul.f32 0.03125, %v3217_v54 }
0x1bea   :  { %v3219_v33 = vsub.f32 %v3214_v5, %v3218_v22 }
0x1beb   :  { %v1107_v56 = vpop.xlane.xlu1 %1106 }
0x1bec   :  { %v1108_v57 = vmul.f32 0.03125, %v1107_v56  ;;  %v3220_v62 = vmul.f32 %v3219_v33, %v3219_v33 }
0x1bee   :  { %v1109_v58 = vadd.f32 1e-05, %v1108_v57  ;;  %v3236_v57 = vrot.slane %v5783_v51, %v1119_v37 }
0x1bf0   :  { %5129 = vrsqrt.f32 %v1109_v58 }
0x1bf2   :  { %v5128_v45 = vpop.eup %5127 }
0x1bf3   :  { %v4100_v46 = vmul.f32 %v5128_v45, %v4092_v35  ;;  %v3221_v35 = vsel %vm3033_vm9, %v3220_v62, 0.0 }
0x1bf5   :  { %v4101_v8 = vmul.f32 %v4100_v46, %v5847_v28 }
0x1bf7   :  { %v4102_v48 = vadd.f32 %v4101_v8, %v5852_v36  ;;  %v1115_v36 = vrot.slane %v5991_v20, %v1114_v59 }
0x1bf9   :  { %4895 = vmatmul.mubr.msk.f32.vlgmr.msra.gmra.mrb[54].mxu1 %vm87_vm1, %v4102_v48 }
0x1bfa   :  { %v5130_v15 = vpop.eup %5129 }
0x1bfb   :  { %v1111_v28 = vmul.f32 %v5130_v15, %v1103_v11  ;;  %v1137_v11 = vsub.s32 6, %v5423_v31 }
0x1bfd   :  { %v1116_v32 = vmul.f32 %v1115_v36, %v1111_v28  ;;  %v1138_v42 = vrot.slane %v5991_v20, %v1137_v11 }
0x1bff   :  { %v1121_v16 = vadd.f32 %v1120_v34, %v1116_v32 }
0x1c01   :  { %v1122_v14 = vsel %vm87_vm1, %v1121_v16, 0.0 }
0x1ccc   :  { %v4172_v39 = vpop.f32.mrb[54].mxu1 }
0x1ccd   :  { %v4173_v53 = vadd.f32 %v5882_v17, %v4172_v39  ;;  %v4896_v44 = vpop.f32.mrb[55].mxu1  ;;  %v2134_v17 = vpop.xlane.xlu0 %2133 }
0x1cce   :  { %v2135_v61 = vmul.f32 0.03125, %v2134_v17 }
0x1ccf   :  { %v4176_v50 = vmax.f32 %v4173_v53, 0.0 }
0x1cd0   :  { %v2136_v2 = vsub.f32 %v2131_v27, %v2135_v61 }
0x1cd1   :  { %4914 = vmatmul.mubr.msk.f32.vlgmr.msra.gmra.mrb[38].mxu0 %vm1024_vm5, %v4176_v50  ;;  %v3231_v50 = vrot.slane %v5783_v51, %v1114_v59 }
0x1cd2   :  { %v2137_v6 = vmul.f32 %v2136_v2, %v2136_v2 }
0x1cd4   :  { %v2138_v18 = vsel %vm87_vm1, %v2137_v6, 0.0 }
0x1da4   :  { %v4246_v60 = vpop.f32.mrb[38].mxu0 }
0x1da5   :  { %v4247_v3 = vadd.f32 %v4246_v60, %v3140_v30  ;;  %v4915_v47 = vpop.f32.mrb[39].mxu0 }
0x1da7   :  { %v4250_v13 = vadd.f32 %v4247_v3, %v4102_v48 }
0x1da9   :  { %v4251_v4 = vsel %vm3033_vm9, %v4250_v13, 0.0 }
0x1daa   :  { %4252 = vadd.xlane.f32.xlu0 %v4251_v4 }
0x1dae   :  { %1123 = vadd.xlane.f32.xlu0 %v1122_v14 }
0x1db2   :  { %2139 = vadd.xlane.f32.xlu0 %v2138_v18 }
0x1e37   :  { %v4253_v21 = vpop.xlane.xlu0 %4252 }
0x1e38   :  { %v4254_v20 = vmul.f32 0.03125, %v4253_v21 }
0x1e3a   :  { %v4255_v58 = vsub.f32 %v4250_v13, %v4254_v20 }
0x1e3b   :  { %v1124_v1 = vpop.xlane.xlu0 %1123 }
0x1e3c   :  { %v1125_v24 = vmul.f32 0.03125, %v1124_v1  ;;  %v4256_v17 = vmul.f32 %v4255_v58, %v4255_v58 }
0x1e3e   :  { %v1126_v9 = vsub.f32 %v1121_v16, %v1125_v24  ;;  %v4257_v60 = vsel %vm3033_vm9, %v4256_v17, 0.0 }
0x1e3f   :  { %v2140_v25 = vpop.xlane.xlu0 %2139 }
0x1e40   :  { %v2141_v26 = vmul.f32 0.03125, %v2140_v25  ;;  %v1127_v7 = vmul.f32 %v1126_v9, %v1126_v9 }
0x1e42   :  { %v2142_v0 = vadd.f32 1e-05, %v2141_v26  ;;  %v1128_v12 = vsel %vm87_vm1, %v1127_v7, 0.0 }
0x1e43   :  { %1129 = vadd.xlane.f32.xlu1 %v1128_v12  ;;  %v3254_v12 = vrot.slane %v5783_v51, %v1137_v11 }
0x1e44   :  { %5131 = vrsqrt.f32 %v2142_v0 }
0x1e4e   :  { %v5132_v27 = vpop.eup %5131 }
0x1e4f   :  { %v2144_v29 = vmul.f32 %v5132_v27, %v2136_v2  ;;  %v3259_v27 = vrot.slane %v5783_v51, %v1142_v41 }
0x1e51   :  { %v2145_v30 = vmul.f32 %v2144_v29, %v1115_v36 }
0x1e53   :  { %v2146_v52 = vadd.f32 %v2145_v30, %v1120_v34 }
0x1e55   :  { %v2147_v38 = vsel %vm87_vm1, %v2146_v52, 0.0 }
0x1e56   :  { %2148 = vadd.xlane.f32.xlu1 %v2147_v38 }
0x1e5a   :  { %3222 = vadd.xlane.f32.xlu1 %v3221_v35 }
0x1ed0   :  { %v1130_v63 = vpop.xlane.xlu1 %1129 }
0x1ed1   :  { %v1131_v10 = vmul.f32 0.03125, %v1130_v63 }
0x1ed3   :  { %v1132_v40 = vadd.f32 1e-05, %v1131_v10 }
0x1ed5   :  { %5133 = vrsqrt.f32 %v1132_v40 }
0x1edf   :  { %v5134_v5 = vpop.eup %5133 }
0x1ee0   :  { %v1134_v43 = vmul.f32 %v5134_v5, %v1126_v9 }
0x1ee2   :  { %v1139_v49 = vmul.f32 %v1138_v42, %v1134_v43 }
0x1ee3   :  { %v2149_v23 = vpop.xlane.xlu1 %2148 }
0x1ee4   :  { %v1144_v55 = vadd.f32 %v1143_v19, %v1139_v49  ;;  %v2150_v45 = vmul.f32 0.03125, %v2149_v23 }
0x1ee6   :  { %1145 = vst.msk [vmem:[%s6070_s8] sm:$0xff] %vm87_vm1, %v1144_v55  ;;  %v2151_v46 = vsub.f32 %v2146_v52, %v2150_v45 }
0x1ee7   :  { %v3223_v8 = vpop.xlane.xlu1 %3222 }
0x1ee8   :  { %v3224_v48 = vmul.f32 0.03125, %v3223_v8  ;;  %v2152_v39 = vmul.f32 %v2151_v46, %v2151_v46 }
0x1eea   :  { %v3225_v53 = vadd.f32 1e-05, %v3224_v48  ;;  %v2153_v44 = vsel %vm87_vm1, %v2152_v39, 0.0 }
0x1eeb   :  { %2154 = vadd.xlane.f32.xlu0 %v2153_v44 }
0x1eec   :  { %5135 = vrsqrt.f32 %v3225_v53 }
0x1ef6   :  { %v5136_v54 = vpop.eup %5135 }
0x1ef7   :  { %v3227_v56 = vmul.f32 %v5136_v54, %v3219_v33 }
0x1ef9   :  { %v3232_v15 = vmul.f32 %v3231_v50, %v3227_v56 }
0x1efb   :  { %v3237_v28 = vadd.f32 %v3236_v57, %v3232_v15 }
0x1efd   :  { %v3238_v36 = vsel %vm3033_vm9, %v3237_v28, 0.0 }
0x1efe   :  { %3239 = vadd.xlane.f32.xlu0 %v3238_v36 }
0x1f02   :  { %4258 = vadd.xlane.f32.xlu0 %v4257_v60 }
0x1f78   :  { %v2155_v61 = vpop.xlane.xlu0 %2154 }
0x1f79   :  { %v2156_v3 = vmul.f32 0.03125, %v2155_v61 }
0x1f7b   :  { %v2157_v47 = vadd.f32 1e-05, %v2156_v3 }
0x1f7d   :  { %5137 = vrsqrt.f32 %v2157_v47 }
0x1f87   :  { %v5138_v59 = vpop.eup %5137 }
0x1f88   :  { %v2159_v32 = vmul.f32 %v5138_v59, %v2151_v46 }
0x1f8a   :  { %v2160_v34 = vmul.f32 %v2159_v32, %v1138_v42 }
0x1f8b   :  { %v3240_v31 = vpop.xlane.xlu0 %3239 }
0x1f8c   :  { %v2161_v2 = vadd.f32 %v2160_v34, %v1143_v19  ;;  %v3241_v37 = vmul.f32 0.03125, %v3240_v31 }
0x1f8e   :  { %4322 = vst.msk [vmem:[%s6070_s8 + $0x10] sm:$0xff] %vm87_vm1, %v2161_v2  ;;  %v3242_v13 = vsub.f32 %v3237_v28, %v3241_v37 }
0x1f8f   :  { %v4259_v4 = vpop.xlane.xlu0 %4258 }
0x1f90   :  { %v4260_v16 = vmul.f32 0.03125, %v4259_v4  ;;  %v3243_v14 = vmul.f32 %v3242_v13, %v3242_v13 }
0x1f92   :  { %v4261_v6 = vadd.f32 1e-05, %v4260_v16  ;;  %v3244_v18 = vsel %vm3033_vm9, %v3243_v14, 0.0 }
0x1f93   :  { %3245 = vadd.xlane.f32.xlu1 %v3244_v18 }
0x1f94   :  { %5139 = vrsqrt.f32 %v4261_v6 }
0x1f9e   :  { %v5140_v21 = vpop.eup %5139 }
0x1f9f   :  { %v4263_v1 = vmul.f32 %v5140_v21, %v4255_v58 }
0x1fa1   :  { %v4264_v24 = vmul.f32 %v4263_v1, %v3231_v50 }
0x1fa3   :  { %v4265_v9 = vadd.f32 %v4264_v24, %v3236_v57 }
0x1fa5   :  { %v4266_v25 = vsel %vm3033_vm9, %v4265_v9, 0.0 }
0x1fa6   :  { %4267 = vadd.xlane.f32.xlu1 %v4266_v25 }
0x2020   :  { %v3246_v26 = vpop.xlane.xlu1 %3245 }
0x2021   :  { %v3247_v7 = vmul.f32 0.03125, %v3246_v26 }
0x2023   :  { %v3248_v0 = vadd.f32 1e-05, %v3247_v7 }
0x2025   :  { %5141 = vrsqrt.f32 %v3248_v0 }
0x202f   :  { %v5142_v22 = vpop.eup %5141 }
0x2030   :  { %v3250_v29 = vmul.f32 %v5142_v22, %v3242_v13 }
0x2032   :  { %v3255_v33 = vmul.f32 %v3254_v12, %v3250_v29 }
0x2033   :  { %v4268_v30 = vpop.xlane.xlu1 %4267 }
0x2034   :  { %v3260_v52 = vadd.f32 %v3259_v27, %v3255_v33  ;;  %v4269_v38 = vmul.f32 0.03125, %v4268_v30 }
0x2036   :  { %3261 = vst.msk [vmem:[%s6070_s8 + $0x8] sm:$0xf] %vm3033_vm9, %v3260_v52  ;;  %v4270_v62 = vsub.f32 %v4265_v9, %v4269_v38 }
0x2038   :  { %v4271_v35 = vmul.f32 %v4270_v62, %v4270_v62 }
0x203a   :  { %v4272_v63 = vsel %vm3033_vm9, %v4271_v35, 0.0 }
0x203b   :  { %4273 = vadd.xlane.f32.xlu0 %v4272_v63 }
0x20c8   :  { %v4274_v10 = vpop.xlane.xlu0 %4273 }
0x20c9   :  { %v4275_v40 = vmul.f32 0.03125, %v4274_v10 }
0x20cb   :  { %v4276_v11 = vadd.f32 1e-05, %v4275_v40 }
0x20cd   :  { %5143 = vrsqrt.f32 %v4276_v11 }
0x20d7   :  { %v5144_v51 = vpop.eup %5143 }
0x20d8   :  { %v4278_v41 = vmul.f32 %v5144_v51, %v4270_v62 }
0x20da   :  { %v4279_v42 = vmul.f32 %v4278_v41, %v3254_v12 }
0x20dc   :  { %v4280_v5 = vadd.f32 %v4279_v42, %v3259_v27 }
0x20de   :  { %4387 = vst.msk [vmem:[%s6070_s8 + $0x18] sm:$0xf] %vm3033_vm9, %v4280_v5 }
0x20df   :  { %4286 = vsyncpa [#allocation3], 1 }
0x20e0   :  { %4287 = vsyncpa [#allocation5], 1 }

</bundles_post_ra>
